<compile_context>
chip_gen: v5e
topology: v5e:2x2
jax: 0.10.0
libtpu: 0.0.40
codegen_flags: <defaults>
</compile_context>

<pallas_src>
import jax
import jax.numpy as jnp
import numpy as np
from jax import lax
from jax.experimental import pallas as pl
from jax.experimental.pallas import tpu as pltpu

BN_EPS = 1e-5
_HIGH = jax.lax.Precision.HIGHEST


def _make_kernel(N, H, W, C):
    NH, WC = N * H, W * C
    pow2_h = (H & (H - 1)) == 0

    def kernel(w_ref,                       # SMEM (8,)    architecture weights
               x_ref,                       # VMEM (NH,WC) input slab, f32
               aw_ref, gn_ref,              # VMEM (WC,WC) bf16: avg-pool W matrix, BN mean matrix
               b_s3a, b_s3b,                # VMEM (3WC,WC) bf16 sep_conv_3x3 fused stages
               b_s5a, b_s5b,                # VMEM (5WC,WC) bf16 sep_conv_5x5 fused stages
               b_d3, b_d5,                  # VMEM (3WC,WC)/(5WC,WC) bf16 dil_conv stages
               out_ref):                    # VMEM (NH,WC) f32
        f32 = jnp.float32
        bf16 = jnp.bfloat16

        def mm(a, b):
            # MXU matmul: bf16 operands (matrices are pre-cast), f32 accumulation.
            return jnp.dot(a.astype(bf16), b.astype(bf16), preferred_element_type=f32)

        row = lax.broadcasted_iota(jnp.int32, (NH, WC), 0)
        col = lax.broadcasted_iota(jnp.int32, (NH, WC), 1)
        h_idx = (row & (H - 1)) if pow2_h else (row % H)     # image-row index per element

        def shift_h(y, d, fill=0.0):
            # out[n*H+h] = y[n*H+h+d] if 0 <= h+d < H else fill  (XLU roll + VPU mask;
            # the mask also kills wrap-around leakage between batch images).
            if d == 0:
                return y
            rolled = pltpu.roll(y, (-d) % NH, axis=0)
            mask = jnp.logical_and(h_idx + d >= 0, h_idx + d < H)
            return jnp.where(mask, rolled, fill)

        def shift_w(y, dx, fill=0.0):
            # out[.., w*C+c] = y[.., (w+dx)*C+c] if 0 <= w+dx < W else fill.
            if dx == 0:
                return y
            rolled = pltpu.roll(y, (-dx * C) % WC, axis=1)
            lo, hi = max(0, -dx) * C, min(W, W - dx) * C
            mask = jnp.logical_and(col >= lo, col < hi)
            return jnp.where(mask, rolled, fill)

        def batchnorm(y, scale):
            # BatchNorm2d(affine=False), training mode: per-channel batch stats, biased
            # var; the architecture weight is folded into the rsqrt scale.  sum(y) and
            # sum(y*y) share ONE Gn matmul; var = E[y^2] - mu^2 (activations are O(1)).
            s1 = jnp.sum(y, axis=0, keepdims=True)
            s2 = jnp.sum(y * y, axis=0, keepdims=True)
            stats = mm(jnp.concatenate([s1, s2], axis=0), gn_ref[...])   # (2,WC): mu, E[y^2]
            mu = stats[0:1, :]
            var = jnp.maximum(stats[1:2, :] - mu * mu, 0.0)
            return (y - mu) * (lax.rsqrt(var + BN_EPS) * scale)

        def dw_pw(src, b_ref, K, dil):
            # depthwise KxK (stride 1, SAME, dilation dil) + 1x1 conv as ONE matmul:
            #   LHS = [shift_h(src,d_0) | ... | shift_h(src,d_{K-1})]   (NH, K*WC)
            #   RHS = wrapper-stacked folded tap/pointwise matrices     (K*WC, WC)
            pad = dil * (K - 1) // 2
            lhs = jnp.concatenate([shift_h(src, ki * dil - pad) for ki in range(K)], axis=1)
            return mm(lhs, b_ref[...])

        x = x_ref[...]
        rx = jnp.maximum(x, 0.0)            # shared ReLU(x) for all 4 conv branches

        def sep_conv(b1_ref, b2_ref, K, wscale):
            h = jnp.maximum(batchnorm(dw_pw(rx, b1_ref, K, 1), 1.0), 0.0)
            return batchnorm(dw_pw(h, b2_ref, K, 1), wscale)

        def dil_conv(b_ref, K, wscale):
            return batchnorm(dw_pw(rx, b_ref, K, 2), wscale)

        def max_pool3(y):
            # MaxPool2d(3, stride=1, padding=1): -inf fill at image borders; every window
            # contains the finite center pixel so the result is finite.
            fill = -jnp.inf
            best = None
            for dy in (-1, 0, 1):
                yr = shift_h(y, dy, fill)
                cand = jnp.maximum(jnp.maximum(yr, shift_w(yr, -1, fill)),
                                   shift_w(yr, 1, fill))
                best = cand if best is None else jnp.maximum(best, cand)
            return best

        def avg_pool3(y):
            # AvgPool2d(3, stride=1, padding=1, count_include_pad=False):
            # H direction = rolls + 1/count broadcast multiply (VPU), W direction and its
            # 1/count folded into the Aw matmul.
            rowsum = shift_h(y, -1) + y + shift_h(y, 1)
            edge = jnp.logical_or(h_idx == 0, h_idx == H - 1)
            rowsum = rowsum * jnp.where(edge, 0.5, 1.0 / 3.0)
            return mm(rowsum, aw_ref[...])

        # weights[0] * Zero(x) == 0 for finite inputs -> folded out.
        acc = w_ref[3] * x                                          # skip_connect (stride 1)
        acc = acc + batchnorm(max_pool3(x), w_ref[1])
        acc = acc + batchnorm(avg_pool3(x), w_ref[2])
        acc = acc + sep_conv(b_s3a, b_s3b, 3, w_ref[4])
        acc = acc + sep_conv(b_s5a, b_s5b, 5, w_ref[5])
        acc = acc + dil_conv(b_d3, 3, w_ref[6])
        acc = acc + dil_conv(b_d5, 5, w_ref[7])
        out_ref[...] = acc

    return kernel


def _build_matrices(params, N, H, W, C):
    """Fold W-direction shifts, depthwise taps, 1x1 convs, avg-pool W-counts and the BN
    channel-mean reduction into small dense bf16 matrices applied on the MXU.
    Slab layout: row r = n*H + h, lane l = w*C + c."""
    WC = W * C
    f32 = np.float32

    def wshift_mat(dx):
        # (y @ M)[..., w*C + c] = y[..., (w + dx)*C + c] if 0 <= w + dx < W else 0
        return np.kron(np.eye(W, k=-dx, dtype=f32), np.eye(C, dtype=f32))

    # 3x3 avg pool, W direction: neighbor sum with the 1/count (count_include_pad=False).
    ww = np.arange(WC) // C
    cw = 3.0 - (ww == 0) - (ww == W - 1)
    Aw = (sum(wshift_mat(d) for d in (-1, 0, 1)) / cw[None, :]).astype(f32)

    # BN helper: (column-sums @ Gn) == per-channel mean replicated over all lanes.
    Gn = (np.kron(np.ones((W, W), f32), np.eye(C, dtype=f32)) / float(N * H * W)).astype(f32)

    eyeW = jnp.eye(W, dtype=jnp.float32)

    def stage_mats(dw, pw, dil):
        # dw: (K,K,C) depthwise taps; pw: (C_in,C_out) pointwise (out = in @ pw).
        # Block ki folds kernel-row ki's W taps, per-channel depthwise weights and the 1x1
        # conv; blocks are stacked along the contraction axis -> (K*WC, WC) so the whole
        # dw+pw stage is ONE matmul against the kernel's concatenated shifted LHS.
        K = dw.shape[0]
        pad = dil * (K - 1) // 2
        pwk = jnp.kron(eyeW, pw.astype(jnp.float32))                  # (WC, WC)
        blocks = []
        for ki in range(K):
            M = jnp.zeros((WC, WC), jnp.float32)
            for kj in range(K):
                dx = kj * dil - pad
                sw = np.eye(W, k=-dx, dtype=f32)
                M = M + jnp.kron(jnp.asarray(sw), jnp.diag(dw[ki, kj].astype(jnp.float32)))
            blocks.append(jnp.matmul(M, pwk, precision=_HIGH))
        return jnp.concatenate(blocks, axis=0).astype(jnp.bfloat16)   # (K*WC, WC)

    pr = params
    return [jnp.asarray(Aw).astype(jnp.bfloat16), jnp.asarray(Gn).astype(jnp.bfloat16),
            stage_mats(pr["s3_dw1"], pr["s3_pw1"], 1), stage_mats(pr["s3_dw2"], pr["s3_pw2"], 1),
            stage_mats(pr["s5_dw1"], pr["s5_pw1"], 1), stage_mats(pr["s5_dw2"], pr["s5_pw2"], 1),
            stage_mats(pr["d3_dw"], pr["d3_pw"], 2), stage_mats(pr["d5_dw"], pr["d5_pw"], 2)]


def mixed_op(x_nchw, weights, params):
    """x_nchw: (N,C,H,W) like PyTorch; weights: (8,) architecture weights."""
    x = jnp.transpose(x_nchw, (0, 2, 3, 1)).astype(jnp.float32)          # NCHW -> NHWC
    N, H, W, C = x.shape
    NH, WC = N * H, W * C
    x_slab = x.reshape(NH, WC)                                           # lane-dense layout

    mats = _build_matrices(params, N, H, W, C)

    # Advisory cost: conv stages (contraction K*WC), avg-pool Aw, 8 small BN-stat matmuls.
    mm_cols = 2 * 3 + 2 * 5 + 3 + 5 + 1
    flops = 2 * NH * WC * WC * mm_cols + 8 * (2 * 2 * WC * WC)
    mats_bytes = sum(int(np.prod(m.shape)) * m.dtype.itemsize for m in mats)
    cost = pl.CostEstimate(flops=int(flops), transcendentals=int(8 * WC),
                           bytes_accessed=int(2 * NH * WC * 4 + mats_bytes + 8 * 4))

    out_slab = pl.pallas_call(
        _make_kernel(N, H, W, C),
        out_shape=jax.ShapeDtypeStruct((NH, WC), jnp.float32),
        in_specs=[pl.BlockSpec(memory_space=pltpu.MemorySpace.SMEM)]
                 + [pl.BlockSpec(memory_space=pltpu.MemorySpace.VMEM)] * (1 + len(mats)),
        out_specs=pl.BlockSpec(memory_space=pltpu.MemorySpace.VMEM),
        cost_estimate=cost,
        compiler_params=pltpu.CompilerParams(vmem_limit_bytes=64 * 1024 * 1024),
    )(weights.astype(jnp.float32), x_slab, *mats)

    return jnp.transpose(out_slab.reshape(N, H, W, C), (0, 3, 1, 2))     # NHWC -> NCHW


def init_params(key, C):
    """Deterministic synthetic weights (shapes match the PyTorch module's convs).
    Depthwise Conv2d(C,C,K,groups=C) weight (C,1,K,K) is stored as (K,K,C);
    1x1 Conv2d(C,C,1) weight (C_out,C_in,1,1) is stored transposed as (C_in,C_out)."""
    ks = jax.random.split(key, 12)

    def dw(k, K):
        return (0.2 * jax.random.normal(k, (K, K, C))).astype(jnp.float32)

    def pw(k):
        return (0.2 * jax.random.normal(k, (C, C))).astype(jnp.float32)

    return dict(
        s3_dw1=dw(ks[0], 3), s3_pw1=pw(ks[1]), s3_dw2=dw(ks[2], 3), s3_pw2=pw(ks[3]),
        s5_dw1=dw(ks[4], 5), s5_pw1=pw(ks[5]), s5_dw2=dw(ks[6], 5), s5_pw2=pw(ks[7]),
        d3_dw=dw(ks[8], 3), d3_pw=pw(ks[9]),
        d5_dw=dw(ks[10], 5), d5_pw=pw(ks[11]),
    )


def _ref_mixed_op(x_nchw, weights, params):
    """Pure-JAX reference with identical semantics (for verification)."""
    x = jnp.transpose(x_nchw, (0, 2, 3, 1)).astype(jnp.float32)
    N, H, W, C = x.shape

    def dwconv(y, kw, K, dil):
        p = dil * (K - 1) // 2
        yp = jnp.pad(y, ((0, 0), (p, p), (p, p), (0, 0)))
        out = jnp.zeros_like(y)
        for ki in range(K):
            for kj in range(K):
                out = out + yp[:, ki * dil:ki * dil + H, kj * dil:kj * dil + W, :] * kw[ki, kj]
        return out

    def pwconv(y, w):
        return jnp.einsum('nhwc,cd->nhwd', y, w, precision=_HIGH)

    def bn(y):
        mu = jnp.mean(y, axis=(0, 1, 2), keepdims=True)
        var = jnp.mean(jnp.square(y - mu), axis=(0, 1, 2), keepdims=True)
        return (y - mu) / jnp.sqrt(var + BN_EPS)

    relu = lambda y: jnp.maximum(y, 0.0)

    def maxpool(y):
        yp = jnp.pad(y, ((0, 0), (1, 1), (1, 1), (0, 0)), constant_values=-jnp.inf)
        out = jnp.full_like(y, -jnp.inf)
        for ki in range(3):
            for kj in range(3):
                out = jnp.maximum(out, yp[:, ki:ki + H, kj:kj + W, :])
        return out

    def avgpool(y):
        yp = jnp.pad(y, ((0, 0), (1, 1), (1, 1), (0, 0)))
        s = jnp.zeros_like(y)
        for ki in range(3):
            for kj in range(3):
                s = s + yp[:, ki:ki + H, kj:kj + W, :]
        ih = jnp.arange(H)[None, :, None, None]
        iw = jnp.arange(W)[None, None, :, None]
        ch = 3.0 - (ih == 0) - (ih == H - 1)
        cw = 3.0 - (iw == 0) - (iw == W - 1)
        return s / (ch * cw)

    p = params

    def sep(dw1, pw1, dw2, pw2, K):
        h = relu(x); h = dwconv(h, dw1, K, 1); h = pwconv(h, pw1); h = bn(h)
        h = relu(h); h = dwconv(h, dw2, K, 1); h = pwconv(h, pw2); h = bn(h)
        return h

    def dil(dw, pwm, K):
        h = relu(x); h = dwconv(h, dw, K, 2); h = pwconv(h, pwm); h = bn(h)
        return h

    out = (weights[1] * bn(maxpool(x)) + weights[2] * bn(avgpool(x)) + weights[3] * x
           + weights[4] * sep(p['s3_dw1'], p['s3_pw1'], p['s3_dw2'], p['s3_pw2'], 3)
           + weights[5] * sep(p['s5_dw1'], p['s5_pw1'], p['s5_dw2'], p['s5_pw2'], 5)
           + weights[6] * dil(p['d3_dw'], p['d3_pw'], 3)
           + weights[7] * dil(p['d5_dw'], p['d5_pw'], 5))
    return jnp.transpose(out, (0, 3, 1, 2))


if __name__ == "__main__":
    key = jax.random.PRNGKey(0)
    kx, ka, kp = jax.random.split(key, 3)
    N, C, H, W = 2, 8, 16, 16          # W*C = 128 -> fully lane-dense slabs

    x = jax.random.normal(kx, (N, C, H, W), jnp.float32)      # PyTorch-style NCHW input
    alphas = jax.random.normal(ka, (8,), jnp.float32)
    weights = jax.nn.softmax(alphas)                          # DARTS architecture weights
    params = init_params(kp, C)

    out = jax.block_until_ready(mixed_op(x, weights, params))
    ref = jax.block_until_ready(_ref_mixed_op(x, weights, params))

    assert out.shape == (N, C, H, W)
    # Tolerance covers bf16 MXU operands (matrices stored in bf16, default-precision
    # matmuls) and the batched E[x^2]-mu^2 BN statistics; structural/shift bugs would be
    # O(0.1-1) off.
    np.testing.assert_allclose(np.asarray(out), np.asarray(ref), rtol=2e-2, atol=3e-2)
    print("KERNEL_OK")
</pallas_src>

<mosaic_0001>
module attributes {stable_mosaic.version = 11 : i64} {
  func.func @kernel(%arg0: memref<8xf32, #tpu.memory_space<smem>>, %arg1: memref<32x128xf32, #tpu.memory_space<vmem>>, %arg2: memref<128x128xbf16, #tpu.memory_space<vmem>>, %arg3: memref<128x128xbf16, #tpu.memory_space<vmem>>, %arg4: memref<384x128xbf16, #tpu.memory_space<vmem>>, %arg5: memref<384x128xbf16, #tpu.memory_space<vmem>>, %arg6: memref<640x128xbf16, #tpu.memory_space<vmem>>, %arg7: memref<640x128xbf16, #tpu.memory_space<vmem>>, %arg8: memref<384x128xbf16, #tpu.memory_space<vmem>>, %arg9: memref<640x128xbf16, #tpu.memory_space<vmem>>, %arg10: memref<32x128xf32, #tpu.memory_space<vmem>>) attributes {dimension_semantics = [], scalar_prefetch = 0 : i64, scratch_operands = 0 : i64, tpu.core_type = #tpu.core_type<tc>} {
    %0 = tpu.iota {dimensions = array<i32: 0>} : vector<32x128xi32>
    %1 = tpu.iota {dimensions = array<i32: 1>} : vector<32x128xi32>
    %c15_i32 = arith.constant 15 : i32
    %2 = vector.broadcast %c15_i32 : i32 to vector<32x128xi32>
    %3 = arith.andi %0, %2 : vector<32x128xi32>
    %c0 = arith.constant 0 : index
    %c0_0 = arith.constant 0 : index
    %4 = vector.load %arg1[%c0, %c0_0] : memref<32x128xf32, #tpu.memory_space<vmem>>, vector<32x128xf32>
    %cst = arith.constant 0.000000e+00 : f32
    %5 = vector.broadcast %cst : f32 to vector<32x128xf32>
    %6 = arith.maximumf %4, %5 : vector<32x128xf32>
    %c3 = arith.constant 3 : index
    %7 = memref.load %arg0[%c3] : memref<8xf32, #tpu.memory_space<smem>>
    %8 = vector.broadcast %7 : f32 to vector<32x128xf32>
    %9 = arith.mulf %8, %4 : vector<32x128xf32>
    %c1_i32 = arith.constant 1 : i32
    %10 = tpu.dynamic_rotate %4 by %c1_i32 dim 0 : vector<32x128xf32>, i32 -> vector<32x128xf32>
    %c-1_i32 = arith.constant -1 : i32
    %11 = vector.broadcast %c-1_i32 : i32 to vector<32x128xi32>
    %12 = arith.addi %3, %11 : vector<32x128xi32>
    %c0_i32 = arith.constant 0 : i32
    %13 = vector.broadcast %c0_i32 : i32 to vector<32x128xi32>
    %14 = arith.cmpi sge, %12, %13 : vector<32x128xi32>
    %c-1_i32_1 = arith.constant -1 : i32
    %15 = vector.broadcast %c-1_i32_1 : i32 to vector<32x128xi32>
    %16 = arith.addi %3, %15 : vector<32x128xi32>
    %c16_i32 = arith.constant 16 : i32
    %17 = vector.broadcast %c16_i32 : i32 to vector<32x128xi32>
    %18 = arith.cmpi slt, %16, %17 : vector<32x128xi32>
    %19 = arith.andi %14, %18 : vector<32x128xi1>
    %cst_2 = arith.constant 0xFF800000 : f32
    %20 = vector.broadcast %cst_2 : f32 to vector<32x128xf32>
    %21 = arith.select %19, %10, %20 : vector<32x128xi1>, vector<32x128xf32>
    %c8_i32 = arith.constant 8 : i32
    %22 = tpu.dynamic_rotate %21 by %c8_i32 dim 1 : vector<32x128xf32>, i32 -> vector<32x128xf32>
    %c8_i32_3 = arith.constant 8 : i32
    %23 = vector.broadcast %c8_i32_3 : i32 to vector<32x128xi32>
    %24 = arith.cmpi sge, %1, %23 : vector<32x128xi32>
    %c128_i32 = arith.constant 128 : i32
    %25 = vector.broadcast %c128_i32 : i32 to vector<32x128xi32>
    %26 = arith.cmpi slt, %1, %25 : vector<32x128xi32>
    %27 = arith.andi %24, %26 : vector<32x128xi1>
    %cst_4 = arith.constant 0xFF800000 : f32
    %28 = vector.broadcast %cst_4 : f32 to vector<32x128xf32>
    %29 = arith.select %27, %22, %28 : vector<32x128xi1>, vector<32x128xf32>
    %30 = arith.maximumf %21, %29 : vector<32x128xf32>
    %c120_i32 = arith.constant 120 : i32
    %31 = tpu.dynamic_rotate %21 by %c120_i32 dim 1 : vector<32x128xf32>, i32 -> vector<32x128xf32>
    %c0_i32_5 = arith.constant 0 : i32
    %32 = vector.broadcast %c0_i32_5 : i32 to vector<32x128xi32>
    %33 = arith.cmpi sge, %1, %32 : vector<32x128xi32>
    %c120_i32_6 = arith.constant 120 : i32
    %34 = vector.broadcast %c120_i32_6 : i32 to vector<32x128xi32>
    %35 = arith.cmpi slt, %1, %34 : vector<32x128xi32>
    %36 = arith.andi %33, %35 : vector<32x128xi1>
    %cst_7 = arith.constant 0xFF800000 : f32
    %37 = vector.broadcast %cst_7 : f32 to vector<32x128xf32>
    %38 = arith.select %36, %31, %37 : vector<32x128xi1>, vector<32x128xf32>
    %39 = arith.maximumf %30, %38 : vector<32x128xf32>
    %c8_i32_8 = arith.constant 8 : i32
    %40 = tpu.dynamic_rotate %4 by %c8_i32_8 dim 1 : vector<32x128xf32>, i32 -> vector<32x128xf32>
    %c8_i32_9 = arith.constant 8 : i32
    %41 = vector.broadcast %c8_i32_9 : i32 to vector<32x128xi32>
    %42 = arith.cmpi sge, %1, %41 : vector<32x128xi32>
    %c128_i32_10 = arith.constant 128 : i32
    %43 = vector.broadcast %c128_i32_10 : i32 to vector<32x128xi32>
    %44 = arith.cmpi slt, %1, %43 : vector<32x128xi32>
    %45 = arith.andi %42, %44 : vector<32x128xi1>
    %cst_11 = arith.constant 0xFF800000 : f32
    %46 = vector.broadcast %cst_11 : f32 to vector<32x128xf32>
    %47 = arith.select %45, %40, %46 : vector<32x128xi1>, vector<32x128xf32>
    %48 = arith.maximumf %4, %47 : vector<32x128xf32>
    %c120_i32_12 = arith.constant 120 : i32
    %49 = tpu.dynamic_rotate %4 by %c120_i32_12 dim 1 : vector<32x128xf32>, i32 -> vector<32x128xf32>
    %c0_i32_13 = arith.constant 0 : i32
    %50 = vector.broadcast %c0_i32_13 : i32 to vector<32x128xi32>
    %51 = arith.cmpi sge, %1, %50 : vector<32x128xi32>
    %c120_i32_14 = arith.constant 120 : i32
    %52 = vector.broadcast %c120_i32_14 : i32 to vector<32x128xi32>
    %53 = arith.cmpi slt, %1, %52 : vector<32x128xi32>
    %54 = arith.andi %51, %53 : vector<32x128xi1>
    %cst_15 = arith.constant 0xFF800000 : f32
    %55 = vector.broadcast %cst_15 : f32 to vector<32x128xf32>
    %56 = arith.select %54, %49, %55 : vector<32x128xi1>, vector<32x128xf32>
    %57 = arith.maximumf %48, %56 : vector<32x128xf32>
    %58 = arith.maximumf %39, %57 : vector<32x128xf32>
    %c31_i32 = arith.constant 31 : i32
    %59 = tpu.dynamic_rotate %4 by %c31_i32 dim 0 : vector<32x128xf32>, i32 -> vector<32x128xf32>
    %c1_i32_16 = arith.constant 1 : i32
    %60 = vector.broadcast %c1_i32_16 : i32 to vector<32x128xi32>
    %61 = arith.addi %3, %60 : vector<32x128xi32>
    %c0_i32_17 = arith.constant 0 : i32
    %62 = vector.broadcast %c0_i32_17 : i32 to vector<32x128xi32>
    %63 = arith.cmpi sge, %61, %62 : vector<32x128xi32>
    %c1_i32_18 = arith.constant 1 : i32
    %64 = vector.broadcast %c1_i32_18 : i32 to vector<32x128xi32>
    %65 = arith.addi %3, %64 : vector<32x128xi32>
    %c16_i32_19 = arith.constant 16 : i32
    %66 = vector.broadcast %c16_i32_19 : i32 to vector<32x128xi32>
    %67 = arith.cmpi slt, %65, %66 : vector<32x128xi32>
    %68 = arith.andi %63, %67 : vector<32x128xi1>
    %cst_20 = arith.constant 0xFF800000 : f32
    %69 = vector.broadcast %cst_20 : f32 to vector<32x128xf32>
    %70 = arith.select %68, %59, %69 : vector<32x128xi1>, vector<32x128xf32>
    %c8_i32_21 = arith.constant 8 : i32
    %71 = tpu.dynamic_rotate %70 by %c8_i32_21 dim 1 : vector<32x128xf32>, i32 -> vector<32x128xf32>
    %c8_i32_22 = arith.constant 8 : i32
    %72 = vector.broadcast %c8_i32_22 : i32 to vector<32x128xi32>
    %73 = arith.cmpi sge, %1, %72 : vector<32x128xi32>
    %c128_i32_23 = arith.constant 128 : i32
    %74 = vector.broadcast %c128_i32_23 : i32 to vector<32x128xi32>
    %75 = arith.cmpi slt, %1, %74 : vector<32x128xi32>
    %76 = arith.andi %73, %75 : vector<32x128xi1>
    %cst_24 = arith.constant 0xFF800000 : f32
    %77 = vector.broadcast %cst_24 : f32 to vector<32x128xf32>
    %78 = arith.select %76, %71, %77 : vector<32x128xi1>, vector<32x128xf32>
    %79 = arith.maximumf %70, %78 : vector<32x128xf32>
    %c120_i32_25 = arith.constant 120 : i32
    %80 = tpu.dynamic_rotate %70 by %c120_i32_25 dim 1 : vector<32x128xf32>, i32 -> vector<32x128xf32>
    %c0_i32_26 = arith.constant 0 : i32
    %81 = vector.broadcast %c0_i32_26 : i32 to vector<32x128xi32>
    %82 = arith.cmpi sge, %1, %81 : vector<32x128xi32>
    %c120_i32_27 = arith.constant 120 : i32
    %83 = vector.broadcast %c120_i32_27 : i32 to vector<32x128xi32>
    %84 = arith.cmpi slt, %1, %83 : vector<32x128xi32>
    %85 = arith.andi %82, %84 : vector<32x128xi1>
    %cst_28 = arith.constant 0xFF800000 : f32
    %86 = vector.broadcast %cst_28 : f32 to vector<32x128xf32>
    %87 = arith.select %85, %80, %86 : vector<32x128xi1>, vector<32x128xf32>
    %88 = arith.maximumf %79, %87 : vector<32x128xf32>
    %89 = arith.maximumf %58, %88 : vector<32x128xf32>
    %c1 = arith.constant 1 : index
    %90 = memref.load %arg0[%c1] : memref<8xf32, #tpu.memory_space<smem>>
    %cst_29 = arith.constant dense<0.000000e+00> : vector<128xf32>
    %91 = vector.multi_reduction <add>, %89, %cst_29 [0] : vector<32x128xf32> to vector<128xf32>
    %92 = vector.shape_cast %91 : vector<128xf32> to vector<1x128xf32>
    %93 = arith.mulf %89, %89 : vector<32x128xf32>
    %cst_30 = arith.constant dense<0.000000e+00> : vector<128xf32>
    %94 = vector.multi_reduction <add>, %93, %cst_30 [0] : vector<32x128xf32> to vector<128xf32>
    %95 = vector.shape_cast %94 : vector<128xf32> to vector<1x128xf32>
    %96 = tpu.concatenate %92, %95 in 0 : vector<1x128xf32>, vector<1x128xf32> -> vector<2x128xf32>
    %c0_31 = arith.constant 0 : index
    %c0_32 = arith.constant 0 : index
    %97 = vector.load %arg3[%c0_31, %c0_32] : memref<128x128xbf16, #tpu.memory_space<vmem>>, vector<128x128xbf16>
    %98 = arith.truncf %96 : vector<2x128xf32> to vector<2x128xbf16>
    %cst_33 = arith.constant dense<0.000000e+00> : vector<2x128xf32>
    %99 = tpu.matmul %98, %97, %cst_33 {dimension_numbers = #tpu.dot_dimension_numbers<[1], [0], [0], [1], [0, 0, 1, 1], [], []>} : vector<2x128xbf16>, vector<128x128xbf16>, vector<2x128xf32> -> vector<2x128xf32>
    %100 = vector.extract_strided_slice %99 {offsets = [0, 0], sizes = [1, 128], strides = [1, 1]} : vector<2x128xf32> to vector<1x128xf32>
    %101 = vector.extract_strided_slice %99 {offsets = [1, 0], sizes = [1, 128], strides = [1, 1]} : vector<2x128xf32> to vector<1x128xf32>
    %102 = arith.mulf %100, %100 : vector<1x128xf32>
    %103 = arith.subf %101, %102 : vector<1x128xf32>
    %cst_34 = arith.constant 0.000000e+00 : f32
    %104 = vector.broadcast %cst_34 : f32 to vector<1x128xf32>
    %105 = arith.maximumf %103, %104 : vector<1x128xf32>
    %106 = vector.broadcast %100 : vector<1x128xf32> to vector<32x128xf32>
    %107 = arith.subf %89, %106 : vector<32x128xf32>
    %cst_35 = arith.constant 9.99999974E-6 : f32
    %108 = vector.broadcast %cst_35 : f32 to vector<1x128xf32>
    %109 = arith.addf %105, %108 : vector<1x128xf32>
    %110 = math.rsqrt %109 : vector<1x128xf32>
    %111 = vector.broadcast %90 : f32 to vector<1x128xf32>
    %112 = arith.mulf %110, %111 : vector<1x128xf32>
    %113 = vector.broadcast %112 : vector<1x128xf32> to vector<32x128xf32>
    %114 = arith.mulf %107, %113 : vector<32x128xf32>
    %115 = arith.addf %9, %114 : vector<32x128xf32>
    %c1_i32_36 = arith.constant 1 : i32
    %116 = tpu.dynamic_rotate %4 by %c1_i32_36 dim 0 : vector<32x128xf32>, i32 -> vector<32x128xf32>
    %c-1_i32_37 = arith.constant -1 : i32
    %117 = vector.broadcast %c-1_i32_37 : i32 to vector<32x128xi32>
    %118 = arith.addi %3, %117 : vector<32x128xi32>
    %c0_i32_38 = arith.constant 0 : i32
    %119 = vector.broadcast %c0_i32_38 : i32 to vector<32x128xi32>
    %120 = arith.cmpi sge, %118, %119 : vector<32x128xi32>
    %c-1_i32_39 = arith.constant -1 : i32
    %121 = vector.broadcast %c-1_i32_39 : i32 to vector<32x128xi32>
    %122 = arith.addi %3, %121 : vector<32x128xi32>
    %c16_i32_40 = arith.constant 16 : i32
    %123 = vector.broadcast %c16_i32_40 : i32 to vector<32x128xi32>
    %124 = arith.cmpi slt, %122, %123 : vector<32x128xi32>
    %125 = arith.andi %120, %124 : vector<32x128xi1>
    %cst_41 = arith.constant 0.000000e+00 : f32
    %126 = vector.broadcast %cst_41 : f32 to vector<32x128xf32>
    %127 = arith.select %125, %116, %126 : vector<32x128xi1>, vector<32x128xf32>
    %128 = arith.addf %127, %4 : vector<32x128xf32>
    %c31_i32_42 = arith.constant 31 : i32
    %129 = tpu.dynamic_rotate %4 by %c31_i32_42 dim 0 : vector<32x128xf32>, i32 -> vector<32x128xf32>
    %c1_i32_43 = arith.constant 1 : i32
    %130 = vector.broadcast %c1_i32_43 : i32 to vector<32x128xi32>
    %131 = arith.addi %3, %130 : vector<32x128xi32>
    %c0_i32_44 = arith.constant 0 : i32
    %132 = vector.broadcast %c0_i32_44 : i32 to vector<32x128xi32>
    %133 = arith.cmpi sge, %131, %132 : vector<32x128xi32>
    %c1_i32_45 = arith.constant 1 : i32
    %134 = vector.broadcast %c1_i32_45 : i32 to vector<32x128xi32>
    %135 = arith.addi %3, %134 : vector<32x128xi32>
    %c16_i32_46 = arith.constant 16 : i32
    %136 = vector.broadcast %c16_i32_46 : i32 to vector<32x128xi32>
    %137 = arith.cmpi slt, %135, %136 : vector<32x128xi32>
    %138 = arith.andi %133, %137 : vector<32x128xi1>
    %cst_47 = arith.constant 0.000000e+00 : f32
    %139 = vector.broadcast %cst_47 : f32 to vector<32x128xf32>
    %140 = arith.select %138, %129, %139 : vector<32x128xi1>, vector<32x128xf32>
    %141 = arith.addf %128, %140 : vector<32x128xf32>
    %c0_i32_48 = arith.constant 0 : i32
    %142 = vector.broadcast %c0_i32_48 : i32 to vector<32x128xi32>
    %143 = arith.cmpi eq, %3, %142 : vector<32x128xi32>
    %c15_i32_49 = arith.constant 15 : i32
    %144 = vector.broadcast %c15_i32_49 : i32 to vector<32x128xi32>
    %145 = arith.cmpi eq, %3, %144 : vector<32x128xi32>
    %146 = arith.ori %143, %145 : vector<32x128xi1>
    %cst_50 = arith.constant 5.000000e-01 : f32
    %cst_51 = arith.constant 0.333333343 : f32
    %147 = vector.broadcast %cst_50 : f32 to vector<32x128xf32>
    %148 = vector.broadcast %cst_51 : f32 to vector<32x128xf32>
    %149 = arith.select %146, %147, %148 : vector<32x128xi1>, vector<32x128xf32>
    %150 = arith.mulf %141, %149 : vector<32x128xf32>
    %c0_52 = arith.constant 0 : index
    %c0_53 = arith.constant 0 : index
    %151 = vector.load %arg2[%c0_52, %c0_53] : memref<128x128xbf16, #tpu.memory_space<vmem>>, vector<128x128xbf16>
    %152 = arith.truncf %150 : vector<32x128xf32> to vector<32x128xbf16>
    %cst_54 = arith.constant dense<0.000000e+00> : vector<32x128xf32>
    %153 = tpu.matmul %152, %151, %cst_54 {dimension_numbers = #tpu.dot_dimension_numbers<[1], [0], [0], [1], [0, 0, 1, 1], [], []>} : vector<32x128xbf16>, vector<128x128xbf16>, vector<32x128xf32> -> vector<32x128xf32>
    %c2 = arith.constant 2 : index
    %154 = memref.load %arg0[%c2] : memref<8xf32, #tpu.memory_space<smem>>
    %cst_55 = arith.constant dense<0.000000e+00> : vector<128xf32>
    %155 = vector.multi_reduction <add>, %153, %cst_55 [0] : vector<32x128xf32> to vector<128xf32>
    %156 = vector.shape_cast %155 : vector<128xf32> to vector<1x128xf32>
    %157 = arith.mulf %153, %153 : vector<32x128xf32>
    %cst_56 = arith.constant dense<0.000000e+00> : vector<128xf32>
    %158 = vector.multi_reduction <add>, %157, %cst_56 [0] : vector<32x128xf32> to vector<128xf32>
    %159 = vector.shape_cast %158 : vector<128xf32> to vector<1x128xf32>
    %160 = tpu.concatenate %156, %159 in 0 : vector<1x128xf32>, vector<1x128xf32> -> vector<2x128xf32>
    %c0_57 = arith.constant 0 : index
    %c0_58 = arith.constant 0 : index
    %161 = vector.load %arg3[%c0_57, %c0_58] : memref<128x128xbf16, #tpu.memory_space<vmem>>, vector<128x128xbf16>
    %162 = arith.truncf %160 : vector<2x128xf32> to vector<2x128xbf16>
    %cst_59 = arith.constant dense<0.000000e+00> : vector<2x128xf32>
    %163 = tpu.matmul %162, %161, %cst_59 {dimension_numbers = #tpu.dot_dimension_numbers<[1], [0], [0], [1], [0, 0, 1, 1], [], []>} : vector<2x128xbf16>, vector<128x128xbf16>, vector<2x128xf32> -> vector<2x128xf32>
    %164 = vector.extract_strided_slice %163 {offsets = [0, 0], sizes = [1, 128], strides = [1, 1]} : vector<2x128xf32> to vector<1x128xf32>
    %165 = vector.extract_strided_slice %163 {offsets = [1, 0], sizes = [1, 128], strides = [1, 1]} : vector<2x128xf32> to vector<1x128xf32>
    %166 = arith.mulf %164, %164 : vector<1x128xf32>
    %167 = arith.subf %165, %166 : vector<1x128xf32>
    %cst_60 = arith.constant 0.000000e+00 : f32
    %168 = vector.broadcast %cst_60 : f32 to vector<1x128xf32>
    %169 = arith.maximumf %167, %168 : vector<1x128xf32>
    %170 = vector.broadcast %164 : vector<1x128xf32> to vector<32x128xf32>
    %171 = arith.subf %153, %170 : vector<32x128xf32>
    %cst_61 = arith.constant 9.99999974E-6 : f32
    %172 = vector.broadcast %cst_61 : f32 to vector<1x128xf32>
    %173 = arith.addf %169, %172 : vector<1x128xf32>
    %174 = math.rsqrt %173 : vector<1x128xf32>
    %175 = vector.broadcast %154 : f32 to vector<1x128xf32>
    %176 = arith.mulf %174, %175 : vector<1x128xf32>
    %177 = vector.broadcast %176 : vector<1x128xf32> to vector<32x128xf32>
    %178 = arith.mulf %171, %177 : vector<32x128xf32>
    %179 = arith.addf %115, %178 : vector<32x128xf32>
    %c4 = arith.constant 4 : index
    %180 = memref.load %arg0[%c4] : memref<8xf32, #tpu.memory_space<smem>>
    %c1_i32_62 = arith.constant 1 : i32
    %181 = tpu.dynamic_rotate %6 by %c1_i32_62 dim 0 : vector<32x128xf32>, i32 -> vector<32x128xf32>
    %c-1_i32_63 = arith.constant -1 : i32
    %182 = vector.broadcast %c-1_i32_63 : i32 to vector<32x128xi32>
    %183 = arith.addi %3, %182 : vector<32x128xi32>
    %c0_i32_64 = arith.constant 0 : i32
    %184 = vector.broadcast %c0_i32_64 : i32 to vector<32x128xi32>
    %185 = arith.cmpi sge, %183, %184 : vector<32x128xi32>
    %c-1_i32_65 = arith.constant -1 : i32
    %186 = vector.broadcast %c-1_i32_65 : i32 to vector<32x128xi32>
    %187 = arith.addi %3, %186 : vector<32x128xi32>
    %c16_i32_66 = arith.constant 16 : i32
    %188 = vector.broadcast %c16_i32_66 : i32 to vector<32x128xi32>
    %189 = arith.cmpi slt, %187, %188 : vector<32x128xi32>
    %190 = arith.andi %185, %189 : vector<32x128xi1>
    %cst_67 = arith.constant 0.000000e+00 : f32
    %191 = vector.broadcast %cst_67 : f32 to vector<32x128xf32>
    %192 = arith.select %190, %181, %191 : vector<32x128xi1>, vector<32x128xf32>
    %c31_i32_68 = arith.constant 31 : i32
    %193 = tpu.dynamic_rotate %6 by %c31_i32_68 dim 0 : vector<32x128xf32>, i32 -> vector<32x128xf32>
    %c1_i32_69 = arith.constant 1 : i32
    %194 = vector.broadcast %c1_i32_69 : i32 to vector<32x128xi32>
    %195 = arith.addi %3, %194 : vector<32x128xi32>
    %c0_i32_70 = arith.constant 0 : i32
    %196 = vector.broadcast %c0_i32_70 : i32 to vector<32x128xi32>
    %197 = arith.cmpi sge, %195, %196 : vector<32x128xi32>
    %c1_i32_71 = arith.constant 1 : i32
    %198 = vector.broadcast %c1_i32_71 : i32 to vector<32x128xi32>
    %199 = arith.addi %3, %198 : vector<32x128xi32>
    %c16_i32_72 = arith.constant 16 : i32
    %200 = vector.broadcast %c16_i32_72 : i32 to vector<32x128xi32>
    %201 = arith.cmpi slt, %199, %200 : vector<32x128xi32>
    %202 = arith.andi %197, %201 : vector<32x128xi1>
    %cst_73 = arith.constant 0.000000e+00 : f32
    %203 = vector.broadcast %cst_73 : f32 to vector<32x128xf32>
    %204 = arith.select %202, %193, %203 : vector<32x128xi1>, vector<32x128xf32>
    %205 = tpu.concatenate %192, %6, %204 in 1 : vector<32x128xf32>, vector<32x128xf32>, vector<32x128xf32> -> vector<32x384xf32>
    %c0_74 = arith.constant 0 : index
    %c0_75 = arith.constant 0 : index
    %206 = vector.load %arg4[%c0_74, %c0_75] : memref<384x128xbf16, #tpu.memory_space<vmem>>, vector<384x128xbf16>
    %207 = arith.truncf %205 : vector<32x384xf32> to vector<32x384xbf16>
    %cst_76 = arith.constant dense<0.000000e+00> : vector<32x128xf32>
    %208 = tpu.matmul %207, %206, %cst_76 {dimension_numbers = #tpu.dot_dimension_numbers<[1], [0], [0], [1], [0, 0, 1, 1], [], []>} : vector<32x384xbf16>, vector<384x128xbf16>, vector<32x128xf32> -> vector<32x128xf32>
    %cst_77 = arith.constant dense<0.000000e+00> : vector<128xf32>
    %209 = vector.multi_reduction <add>, %208, %cst_77 [0] : vector<32x128xf32> to vector<128xf32>
    %210 = vector.shape_cast %209 : vector<128xf32> to vector<1x128xf32>
    %211 = arith.mulf %208, %208 : vector<32x128xf32>
    %cst_78 = arith.constant dense<0.000000e+00> : vector<128xf32>
    %212 = vector.multi_reduction <add>, %211, %cst_78 [0] : vector<32x128xf32> to vector<128xf32>
    %213 = vector.shape_cast %212 : vector<128xf32> to vector<1x128xf32>
    %214 = tpu.concatenate %210, %213 in 0 : vector<1x128xf32>, vector<1x128xf32> -> vector<2x128xf32>
    %c0_79 = arith.constant 0 : index
    %c0_80 = arith.constant 0 : index
    %215 = vector.load %arg3[%c0_79, %c0_80] : memref<128x128xbf16, #tpu.memory_space<vmem>>, vector<128x128xbf16>
    %216 = arith.truncf %214 : vector<2x128xf32> to vector<2x128xbf16>
    %cst_81 = arith.constant dense<0.000000e+00> : vector<2x128xf32>
    %217 = tpu.matmul %216, %215, %cst_81 {dimension_numbers = #tpu.dot_dimension_numbers<[1], [0], [0], [1], [0, 0, 1, 1], [], []>} : vector<2x128xbf16>, vector<128x128xbf16>, vector<2x128xf32> -> vector<2x128xf32>
    %218 = vector.extract_strided_slice %217 {offsets = [0, 0], sizes = [1, 128], strides = [1, 1]} : vector<2x128xf32> to vector<1x128xf32>
    %219 = vector.extract_strided_slice %217 {offsets = [1, 0], sizes = [1, 128], strides = [1, 1]} : vector<2x128xf32> to vector<1x128xf32>
    %220 = arith.mulf %218, %218 : vector<1x128xf32>
    %221 = arith.subf %219, %220 : vector<1x128xf32>
    %cst_82 = arith.constant 0.000000e+00 : f32
    %222 = vector.broadcast %cst_82 : f32 to vector<1x128xf32>
    %223 = arith.maximumf %221, %222 : vector<1x128xf32>
    %224 = vector.broadcast %218 : vector<1x128xf32> to vector<32x128xf32>
    %225 = arith.subf %208, %224 : vector<32x128xf32>
    %cst_83 = arith.constant 9.99999974E-6 : f32
    %226 = vector.broadcast %cst_83 : f32 to vector<1x128xf32>
    %227 = arith.addf %223, %226 : vector<1x128xf32>
    %228 = math.rsqrt %227 : vector<1x128xf32>
    %cst_84 = arith.constant 1.000000e+00 : f32
    %229 = vector.broadcast %cst_84 : f32 to vector<1x128xf32>
    %230 = arith.mulf %228, %229 : vector<1x128xf32>
    %231 = vector.broadcast %230 : vector<1x128xf32> to vector<32x128xf32>
    %232 = arith.mulf %225, %231 : vector<32x128xf32>
    %cst_85 = arith.constant 0.000000e+00 : f32
    %233 = vector.broadcast %cst_85 : f32 to vector<32x128xf32>
    %234 = arith.maximumf %232, %233 : vector<32x128xf32>
    %c1_i32_86 = arith.constant 1 : i32
    %235 = tpu.dynamic_rotate %234 by %c1_i32_86 dim 0 : vector<32x128xf32>, i32 -> vector<32x128xf32>
    %c-1_i32_87 = arith.constant -1 : i32
    %236 = vector.broadcast %c-1_i32_87 : i32 to vector<32x128xi32>
    %237 = arith.addi %3, %236 : vector<32x128xi32>
    %c0_i32_88 = arith.constant 0 : i32
    %238 = vector.broadcast %c0_i32_88 : i32 to vector<32x128xi32>
    %239 = arith.cmpi sge, %237, %238 : vector<32x128xi32>
    %c-1_i32_89 = arith.constant -1 : i32
    %240 = vector.broadcast %c-1_i32_89 : i32 to vector<32x128xi32>
    %241 = arith.addi %3, %240 : vector<32x128xi32>
    %c16_i32_90 = arith.constant 16 : i32
    %242 = vector.broadcast %c16_i32_90 : i32 to vector<32x128xi32>
    %243 = arith.cmpi slt, %241, %242 : vector<32x128xi32>
    %244 = arith.andi %239, %243 : vector<32x128xi1>
    %cst_91 = arith.constant 0.000000e+00 : f32
    %245 = vector.broadcast %cst_91 : f32 to vector<32x128xf32>
    %246 = arith.select %244, %235, %245 : vector<32x128xi1>, vector<32x128xf32>
    %c31_i32_92 = arith.constant 31 : i32
    %247 = tpu.dynamic_rotate %234 by %c31_i32_92 dim 0 : vector<32x128xf32>, i32 -> vector<32x128xf32>
    %c1_i32_93 = arith.constant 1 : i32
    %248 = vector.broadcast %c1_i32_93 : i32 to vector<32x128xi32>
    %249 = arith.addi %3, %248 : vector<32x128xi32>
    %c0_i32_94 = arith.constant 0 : i32
    %250 = vector.broadcast %c0_i32_94 : i32 to vector<32x128xi32>
    %251 = arith.cmpi sge, %249, %250 : vector<32x128xi32>
    %c1_i32_95 = arith.constant 1 : i32
    %252 = vector.broadcast %c1_i32_95 : i32 to vector<32x128xi32>
    %253 = arith.addi %3, %252 : vector<32x128xi32>
    %c16_i32_96 = arith.constant 16 : i32
    %254 = vector.broadcast %c16_i32_96 : i32 to vector<32x128xi32>
    %255 = arith.cmpi slt, %253, %254 : vector<32x128xi32>
    %256 = arith.andi %251, %255 : vector<32x128xi1>
    %cst_97 = arith.constant 0.000000e+00 : f32
    %257 = vector.broadcast %cst_97 : f32 to vector<32x128xf32>
    %258 = arith.select %256, %247, %257 : vector<32x128xi1>, vector<32x128xf32>
    %259 = tpu.concatenate %246, %234, %258 in 1 : vector<32x128xf32>, vector<32x128xf32>, vector<32x128xf32> -> vector<32x384xf32>
    %c0_98 = arith.constant 0 : index
    %c0_99 = arith.constant 0 : index
    %260 = vector.load %arg5[%c0_98, %c0_99] : memref<384x128xbf16, #tpu.memory_space<vmem>>, vector<384x128xbf16>
    %261 = arith.truncf %259 : vector<32x384xf32> to vector<32x384xbf16>
    %cst_100 = arith.constant dense<0.000000e+00> : vector<32x128xf32>
    %262 = tpu.matmul %261, %260, %cst_100 {dimension_numbers = #tpu.dot_dimension_numbers<[1], [0], [0], [1], [0, 0, 1, 1], [], []>} : vector<32x384xbf16>, vector<384x128xbf16>, vector<32x128xf32> -> vector<32x128xf32>
    %cst_101 = arith.constant dense<0.000000e+00> : vector<128xf32>
    %263 = vector.multi_reduction <add>, %262, %cst_101 [0] : vector<32x128xf32> to vector<128xf32>
    %264 = vector.shape_cast %263 : vector<128xf32> to vector<1x128xf32>
    %265 = arith.mulf %262, %262 : vector<32x128xf32>
    %cst_102 = arith.constant dense<0.000000e+00> : vector<128xf32>
    %266 = vector.multi_reduction <add>, %265, %cst_102 [0] : vector<32x128xf32> to vector<128xf32>
    %267 = vector.shape_cast %266 : vector<128xf32> to vector<1x128xf32>
    %268 = tpu.concatenate %264, %267 in 0 : vector<1x128xf32>, vector<1x128xf32> -> vector<2x128xf32>
    %c0_103 = arith.constant 0 : index
    %c0_104 = arith.constant 0 : index
    %269 = vector.load %arg3[%c0_103, %c0_104] : memref<128x128xbf16, #tpu.memory_space<vmem>>, vector<128x128xbf16>
    %270 = arith.truncf %268 : vector<2x128xf32> to vector<2x128xbf16>
    %cst_105 = arith.constant dense<0.000000e+00> : vector<2x128xf32>
    %271 = tpu.matmul %270, %269, %cst_105 {dimension_numbers = #tpu.dot_dimension_numbers<[1], [0], [0], [1], [0, 0, 1, 1], [], []>} : vector<2x128xbf16>, vector<128x128xbf16>, vector<2x128xf32> -> vector<2x128xf32>
    %272 = vector.extract_strided_slice %271 {offsets = [0, 0], sizes = [1, 128], strides = [1, 1]} : vector<2x128xf32> to vector<1x128xf32>
    %273 = vector.extract_strided_slice %271 {offsets = [1, 0], sizes = [1, 128], strides = [1, 1]} : vector<2x128xf32> to vector<1x128xf32>
    %274 = arith.mulf %272, %272 : vector<1x128xf32>
    %275 = arith.subf %273, %274 : vector<1x128xf32>
    %cst_106 = arith.constant 0.000000e+00 : f32
    %276 = vector.broadcast %cst_106 : f32 to vector<1x128xf32>
    %277 = arith.maximumf %275, %276 : vector<1x128xf32>
    %278 = vector.broadcast %272 : vector<1x128xf32> to vector<32x128xf32>
    %279 = arith.subf %262, %278 : vector<32x128xf32>
    %cst_107 = arith.constant 9.99999974E-6 : f32
    %280 = vector.broadcast %cst_107 : f32 to vector<1x128xf32>
    %281 = arith.addf %277, %280 : vector<1x128xf32>
    %282 = math.rsqrt %281 : vector<1x128xf32>
    %283 = vector.broadcast %180 : f32 to vector<1x128xf32>
    %284 = arith.mulf %282, %283 : vector<1x128xf32>
    %285 = vector.broadcast %284 : vector<1x128xf32> to vector<32x128xf32>
    %286 = arith.mulf %279, %285 : vector<32x128xf32>
    %287 = arith.addf %179, %286 : vector<32x128xf32>
    %c5 = arith.constant 5 : index
    %288 = memref.load %arg0[%c5] : memref<8xf32, #tpu.memory_space<smem>>
    %c2_i32 = arith.constant 2 : i32
    %289 = tpu.dynamic_rotate %6 by %c2_i32 dim 0 : vector<32x128xf32>, i32 -> vector<32x128xf32>
    %c-2_i32 = arith.constant -2 : i32
    %290 = vector.broadcast %c-2_i32 : i32 to vector<32x128xi32>
    %291 = arith.addi %3, %290 : vector<32x128xi32>
    %c0_i32_108 = arith.constant 0 : i32
    %292 = vector.broadcast %c0_i32_108 : i32 to vector<32x128xi32>
    %293 = arith.cmpi sge, %291, %292 : vector<32x128xi32>
    %c-2_i32_109 = arith.constant -2 : i32
    %294 = vector.broadcast %c-2_i32_109 : i32 to vector<32x128xi32>
    %295 = arith.addi %3, %294 : vector<32x128xi32>
    %c16_i32_110 = arith.constant 16 : i32
    %296 = vector.broadcast %c16_i32_110 : i32 to vector<32x128xi32>
    %297 = arith.cmpi slt, %295, %296 : vector<32x128xi32>
    %298 = arith.andi %293, %297 : vector<32x128xi1>
    %cst_111 = arith.constant 0.000000e+00 : f32
    %299 = vector.broadcast %cst_111 : f32 to vector<32x128xf32>
    %300 = arith.select %298, %289, %299 : vector<32x128xi1>, vector<32x128xf32>
    %c1_i32_112 = arith.constant 1 : i32
    %301 = tpu.dynamic_rotate %6 by %c1_i32_112 dim 0 : vector<32x128xf32>, i32 -> vector<32x128xf32>
    %c-1_i32_113 = arith.constant -1 : i32
    %302 = vector.broadcast %c-1_i32_113 : i32 to vector<32x128xi32>
    %303 = arith.addi %3, %302 : vector<32x128xi32>
    %c0_i32_114 = arith.constant 0 : i32
    %304 = vector.broadcast %c0_i32_114 : i32 to vector<32x128xi32>
    %305 = arith.cmpi sge, %303, %304 : vector<32x128xi32>
    %c-1_i32_115 = arith.constant -1 : i32
    %306 = vector.broadcast %c-1_i32_115 : i32 to vector<32x128xi32>
    %307 = arith.addi %3, %306 : vector<32x128xi32>
    %c16_i32_116 = arith.constant 16 : i32
    %308 = vector.broadcast %c16_i32_116 : i32 to vector<32x128xi32>
    %309 = arith.cmpi slt, %307, %308 : vector<32x128xi32>
    %310 = arith.andi %305, %309 : vector<32x128xi1>
    %cst_117 = arith.constant 0.000000e+00 : f32
    %311 = vector.broadcast %cst_117 : f32 to vector<32x128xf32>
    %312 = arith.select %310, %301, %311 : vector<32x128xi1>, vector<32x128xf32>
    %c31_i32_118 = arith.constant 31 : i32
    %313 = tpu.dynamic_rotate %6 by %c31_i32_118 dim 0 : vector<32x128xf32>, i32 -> vector<32x128xf32>
    %c1_i32_119 = arith.constant 1 : i32
    %314 = vector.broadcast %c1_i32_119 : i32 to vector<32x128xi32>
    %315 = arith.addi %3, %314 : vector<32x128xi32>
    %c0_i32_120 = arith.constant 0 : i32
    %316 = vector.broadcast %c0_i32_120 : i32 to vector<32x128xi32>
    %317 = arith.cmpi sge, %315, %316 : vector<32x128xi32>
    %c1_i32_121 = arith.constant 1 : i32
    %318 = vector.broadcast %c1_i32_121 : i32 to vector<32x128xi32>
    %319 = arith.addi %3, %318 : vector<32x128xi32>
    %c16_i32_122 = arith.constant 16 : i32
    %320 = vector.broadcast %c16_i32_122 : i32 to vector<32x128xi32>
    %321 = arith.cmpi slt, %319, %320 : vector<32x128xi32>
    %322 = arith.andi %317, %321 : vector<32x128xi1>
    %cst_123 = arith.constant 0.000000e+00 : f32
    %323 = vector.broadcast %cst_123 : f32 to vector<32x128xf32>
    %324 = arith.select %322, %313, %323 : vector<32x128xi1>, vector<32x128xf32>
    %c30_i32 = arith.constant 30 : i32
    %325 = tpu.dynamic_rotate %6 by %c30_i32 dim 0 : vector<32x128xf32>, i32 -> vector<32x128xf32>
    %c2_i32_124 = arith.constant 2 : i32
    %326 = vector.broadcast %c2_i32_124 : i32 to vector<32x128xi32>
    %327 = arith.addi %3, %326 : vector<32x128xi32>
    %c0_i32_125 = arith.constant 0 : i32
    %328 = vector.broadcast %c0_i32_125 : i32 to vector<32x128xi32>
    %329 = arith.cmpi sge, %327, %328 : vector<32x128xi32>
    %c2_i32_126 = arith.constant 2 : i32
    %330 = vector.broadcast %c2_i32_126 : i32 to vector<32x128xi32>
    %331 = arith.addi %3, %330 : vector<32x128xi32>
    %c16_i32_127 = arith.constant 16 : i32
    %332 = vector.broadcast %c16_i32_127 : i32 to vector<32x128xi32>
    %333 = arith.cmpi slt, %331, %332 : vector<32x128xi32>
    %334 = arith.andi %329, %333 : vector<32x128xi1>
    %cst_128 = arith.constant 0.000000e+00 : f32
    %335 = vector.broadcast %cst_128 : f32 to vector<32x128xf32>
    %336 = arith.select %334, %325, %335 : vector<32x128xi1>, vector<32x128xf32>
    %337 = tpu.concatenate %300, %312, %6, %324, %336 in 1 : vector<32x128xf32>, vector<32x128xf32>, vector<32x128xf32>, vector<32x128xf32>, vector<32x128xf32> -> vector<32x640xf32>
    %c0_129 = arith.constant 0 : index
    %c0_130 = arith.constant 0 : index
    %338 = vector.load %arg6[%c0_129, %c0_130] : memref<640x128xbf16, #tpu.memory_space<vmem>>, vector<640x128xbf16>
    %339 = arith.truncf %337 : vector<32x640xf32> to vector<32x640xbf16>
    %cst_131 = arith.constant dense<0.000000e+00> : vector<32x128xf32>
    %340 = tpu.matmul %339, %338, %cst_131 {dimension_numbers = #tpu.dot_dimension_numbers<[1], [0], [0], [1], [0, 0, 1, 1], [], []>} : vector<32x640xbf16>, vector<640x128xbf16>, vector<32x128xf32> -> vector<32x128xf32>
    %cst_132 = arith.constant dense<0.000000e+00> : vector<128xf32>
    %341 = vector.multi_reduction <add>, %340, %cst_132 [0] : vector<32x128xf32> to vector<128xf32>
    %342 = vector.shape_cast %341 : vector<128xf32> to vector<1x128xf32>
    %343 = arith.mulf %340, %340 : vector<32x128xf32>
    %cst_133 = arith.constant dense<0.000000e+00> : vector<128xf32>
    %344 = vector.multi_reduction <add>, %343, %cst_133 [0] : vector<32x128xf32> to vector<128xf32>
    %345 = vector.shape_cast %344 : vector<128xf32> to vector<1x128xf32>
    %346 = tpu.concatenate %342, %345 in 0 : vector<1x128xf32>, vector<1x128xf32> -> vector<2x128xf32>
    %c0_134 = arith.constant 0 : index
    %c0_135 = arith.constant 0 : index
    %347 = vector.load %arg3[%c0_134, %c0_135] : memref<128x128xbf16, #tpu.memory_space<vmem>>, vector<128x128xbf16>
    %348 = arith.truncf %346 : vector<2x128xf32> to vector<2x128xbf16>
    %cst_136 = arith.constant dense<0.000000e+00> : vector<2x128xf32>
    %349 = tpu.matmul %348, %347, %cst_136 {dimension_numbers = #tpu.dot_dimension_numbers<[1], [0], [0], [1], [0, 0, 1, 1], [], []>} : vector<2x128xbf16>, vector<128x128xbf16>, vector<2x128xf32> -> vector<2x128xf32>
    %350 = vector.extract_strided_slice %349 {offsets = [0, 0], sizes = [1, 128], strides = [1, 1]} : vector<2x128xf32> to vector<1x128xf32>
    %351 = vector.extract_strided_slice %349 {offsets = [1, 0], sizes = [1, 128], strides = [1, 1]} : vector<2x128xf32> to vector<1x128xf32>
    %352 = arith.mulf %350, %350 : vector<1x128xf32>
    %353 = arith.subf %351, %352 : vector<1x128xf32>
    %cst_137 = arith.constant 0.000000e+00 : f32
    %354 = vector.broadcast %cst_137 : f32 to vector<1x128xf32>
    %355 = arith.maximumf %353, %354 : vector<1x128xf32>
    %356 = vector.broadcast %350 : vector<1x128xf32> to vector<32x128xf32>
    %357 = arith.subf %340, %356 : vector<32x128xf32>
    %cst_138 = arith.constant 9.99999974E-6 : f32
    %358 = vector.broadcast %cst_138 : f32 to vector<1x128xf32>
    %359 = arith.addf %355, %358 : vector<1x128xf32>
    %360 = math.rsqrt %359 : vector<1x128xf32>
    %cst_139 = arith.constant 1.000000e+00 : f32
    %361 = vector.broadcast %cst_139 : f32 to vector<1x128xf32>
    %362 = arith.mulf %360, %361 : vector<1x128xf32>
    %363 = vector.broadcast %362 : vector<1x128xf32> to vector<32x128xf32>
    %364 = arith.mulf %357, %363 : vector<32x128xf32>
    %cst_140 = arith.constant 0.000000e+00 : f32
    %365 = vector.broadcast %cst_140 : f32 to vector<32x128xf32>
    %366 = arith.maximumf %364, %365 : vector<32x128xf32>
    %c2_i32_141 = arith.constant 2 : i32
    %367 = tpu.dynamic_rotate %366 by %c2_i32_141 dim 0 : vector<32x128xf32>, i32 -> vector<32x128xf32>
    %c-2_i32_142 = arith.constant -2 : i32
    %368 = vector.broadcast %c-2_i32_142 : i32 to vector<32x128xi32>
    %369 = arith.addi %3, %368 : vector<32x128xi32>
    %c0_i32_143 = arith.constant 0 : i32
    %370 = vector.broadcast %c0_i32_143 : i32 to vector<32x128xi32>
    %371 = arith.cmpi sge, %369, %370 : vector<32x128xi32>
    %c-2_i32_144 = arith.constant -2 : i32
    %372 = vector.broadcast %c-2_i32_144 : i32 to vector<32x128xi32>
    %373 = arith.addi %3, %372 : vector<32x128xi32>
    %c16_i32_145 = arith.constant 16 : i32
    %374 = vector.broadcast %c16_i32_145 : i32 to vector<32x128xi32>
    %375 = arith.cmpi slt, %373, %374 : vector<32x128xi32>
    %376 = arith.andi %371, %375 : vector<32x128xi1>
    %cst_146 = arith.constant 0.000000e+00 : f32
    %377 = vector.broadcast %cst_146 : f32 to vector<32x128xf32>
    %378 = arith.select %376, %367, %377 : vector<32x128xi1>, vector<32x128xf32>
    %c1_i32_147 = arith.constant 1 : i32
    %379 = tpu.dynamic_rotate %366 by %c1_i32_147 dim 0 : vector<32x128xf32>, i32 -> vector<32x128xf32>
    %c-1_i32_148 = arith.constant -1 : i32
    %380 = vector.broadcast %c-1_i32_148 : i32 to vector<32x128xi32>
    %381 = arith.addi %3, %380 : vector<32x128xi32>
    %c0_i32_149 = arith.constant 0 : i32
    %382 = vector.broadcast %c0_i32_149 : i32 to vector<32x128xi32>
    %383 = arith.cmpi sge, %381, %382 : vector<32x128xi32>
    %c-1_i32_150 = arith.constant -1 : i32
    %384 = vector.broadcast %c-1_i32_150 : i32 to vector<32x128xi32>
    %385 = arith.addi %3, %384 : vector<32x128xi32>
    %c16_i32_151 = arith.constant 16 : i32
    %386 = vector.broadcast %c16_i32_151 : i32 to vector<32x128xi32>
    %387 = arith.cmpi slt, %385, %386 : vector<32x128xi32>
    %388 = arith.andi %383, %387 : vector<32x128xi1>
    %cst_152 = arith.constant 0.000000e+00 : f32
    %389 = vector.broadcast %cst_152 : f32 to vector<32x128xf32>
    %390 = arith.select %388, %379, %389 : vector<32x128xi1>, vector<32x128xf32>
    %c31_i32_153 = arith.constant 31 : i32
    %391 = tpu.dynamic_rotate %366 by %c31_i32_153 dim 0 : vector<32x128xf32>, i32 -> vector<32x128xf32>
    %c1_i32_154 = arith.constant 1 : i32
    %392 = vector.broadcast %c1_i32_154 : i32 to vector<32x128xi32>
    %393 = arith.addi %3, %392 : vector<32x128xi32>
    %c0_i32_155 = arith.constant 0 : i32
    %394 = vector.broadcast %c0_i32_155 : i32 to vector<32x128xi32>
    %395 = arith.cmpi sge, %393, %394 : vector<32x128xi32>
    %c1_i32_156 = arith.constant 1 : i32
    %396 = vector.broadcast %c1_i32_156 : i32 to vector<32x128xi32>
    %397 = arith.addi %3, %396 : vector<32x128xi32>
    %c16_i32_157 = arith.constant 16 : i32
    %398 = vector.broadcast %c16_i32_157 : i32 to vector<32x128xi32>
    %399 = arith.cmpi slt, %397, %398 : vector<32x128xi32>
    %400 = arith.andi %395, %399 : vector<32x128xi1>
    %cst_158 = arith.constant 0.000000e+00 : f32
    %401 = vector.broadcast %cst_158 : f32 to vector<32x128xf32>
    %402 = arith.select %400, %391, %401 : vector<32x128xi1>, vector<32x128xf32>
    %c30_i32_159 = arith.constant 30 : i32
    %403 = tpu.dynamic_rotate %366 by %c30_i32_159 dim 0 : vector<32x128xf32>, i32 -> vector<32x128xf32>
    %c2_i32_160 = arith.constant 2 : i32
    %404 = vector.broadcast %c2_i32_160 : i32 to vector<32x128xi32>
    %405 = arith.addi %3, %404 : vector<32x128xi32>
    %c0_i32_161 = arith.constant 0 : i32
    %406 = vector.broadcast %c0_i32_161 : i32 to vector<32x128xi32>
    %407 = arith.cmpi sge, %405, %406 : vector<32x128xi32>
    %c2_i32_162 = arith.constant 2 : i32
    %408 = vector.broadcast %c2_i32_162 : i32 to vector<32x128xi32>
    %409 = arith.addi %3, %408 : vector<32x128xi32>
    %c16_i32_163 = arith.constant 16 : i32
    %410 = vector.broadcast %c16_i32_163 : i32 to vector<32x128xi32>
    %411 = arith.cmpi slt, %409, %410 : vector<32x128xi32>
    %412 = arith.andi %407, %411 : vector<32x128xi1>
    %cst_164 = arith.constant 0.000000e+00 : f32
    %413 = vector.broadcast %cst_164 : f32 to vector<32x128xf32>
    %414 = arith.select %412, %403, %413 : vector<32x128xi1>, vector<32x128xf32>
    %415 = tpu.concatenate %378, %390, %366, %402, %414 in 1 : vector<32x128xf32>, vector<32x128xf32>, vector<32x128xf32>, vector<32x128xf32>, vector<32x128xf32> -> vector<32x640xf32>
    %c0_165 = arith.constant 0 : index
    %c0_166 = arith.constant 0 : index
    %416 = vector.load %arg7[%c0_165, %c0_166] : memref<640x128xbf16, #tpu.memory_space<vmem>>, vector<640x128xbf16>
    %417 = arith.truncf %415 : vector<32x640xf32> to vector<32x640xbf16>
    %cst_167 = arith.constant dense<0.000000e+00> : vector<32x128xf32>
    %418 = tpu.matmul %417, %416, %cst_167 {dimension_numbers = #tpu.dot_dimension_numbers<[1], [0], [0], [1], [0, 0, 1, 1], [], []>} : vector<32x640xbf16>, vector<640x128xbf16>, vector<32x128xf32> -> vector<32x128xf32>
    %cst_168 = arith.constant dense<0.000000e+00> : vector<128xf32>
    %419 = vector.multi_reduction <add>, %418, %cst_168 [0] : vector<32x128xf32> to vector<128xf32>
    %420 = vector.shape_cast %419 : vector<128xf32> to vector<1x128xf32>
    %421 = arith.mulf %418, %418 : vector<32x128xf32>
    %cst_169 = arith.constant dense<0.000000e+00> : vector<128xf32>
    %422 = vector.multi_reduction <add>, %421, %cst_169 [0] : vector<32x128xf32> to vector<128xf32>
    %423 = vector.shape_cast %422 : vector<128xf32> to vector<1x128xf32>
    %424 = tpu.concatenate %420, %423 in 0 : vector<1x128xf32>, vector<1x128xf32> -> vector<2x128xf32>
    %c0_170 = arith.constant 0 : index
    %c0_171 = arith.constant 0 : index
    %425 = vector.load %arg3[%c0_170, %c0_171] : memref<128x128xbf16, #tpu.memory_space<vmem>>, vector<128x128xbf16>
    %426 = arith.truncf %424 : vector<2x128xf32> to vector<2x128xbf16>
    %cst_172 = arith.constant dense<0.000000e+00> : vector<2x128xf32>
    %427 = tpu.matmul %426, %425, %cst_172 {dimension_numbers = #tpu.dot_dimension_numbers<[1], [0], [0], [1], [0, 0, 1, 1], [], []>} : vector<2x128xbf16>, vector<128x128xbf16>, vector<2x128xf32> -> vector<2x128xf32>
    %428 = vector.extract_strided_slice %427 {offsets = [0, 0], sizes = [1, 128], strides = [1, 1]} : vector<2x128xf32> to vector<1x128xf32>
    %429 = vector.extract_strided_slice %427 {offsets = [1, 0], sizes = [1, 128], strides = [1, 1]} : vector<2x128xf32> to vector<1x128xf32>
    %430 = arith.mulf %428, %428 : vector<1x128xf32>
    %431 = arith.subf %429, %430 : vector<1x128xf32>
    %cst_173 = arith.constant 0.000000e+00 : f32
    %432 = vector.broadcast %cst_173 : f32 to vector<1x128xf32>
    %433 = arith.maximumf %431, %432 : vector<1x128xf32>
    %434 = vector.broadcast %428 : vector<1x128xf32> to vector<32x128xf32>
    %435 = arith.subf %418, %434 : vector<32x128xf32>
    %cst_174 = arith.constant 9.99999974E-6 : f32
    %436 = vector.broadcast %cst_174 : f32 to vector<1x128xf32>
    %437 = arith.addf %433, %436 : vector<1x128xf32>
    %438 = math.rsqrt %437 : vector<1x128xf32>
    %439 = vector.broadcast %288 : f32 to vector<1x128xf32>
    %440 = arith.mulf %438, %439 : vector<1x128xf32>
    %441 = vector.broadcast %440 : vector<1x128xf32> to vector<32x128xf32>
    %442 = arith.mulf %435, %441 : vector<32x128xf32>
    %443 = arith.addf %287, %442 : vector<32x128xf32>
    %c6 = arith.constant 6 : index
    %444 = memref.load %arg0[%c6] : memref<8xf32, #tpu.memory_space<smem>>
    %c2_i32_175 = arith.constant 2 : i32
    %445 = tpu.dynamic_rotate %6 by %c2_i32_175 dim 0 : vector<32x128xf32>, i32 -> vector<32x128xf32>
    %c-2_i32_176 = arith.constant -2 : i32
    %446 = vector.broadcast %c-2_i32_176 : i32 to vector<32x128xi32>
    %447 = arith.addi %3, %446 : vector<32x128xi32>
    %c0_i32_177 = arith.constant 0 : i32
    %448 = vector.broadcast %c0_i32_177 : i32 to vector<32x128xi32>
    %449 = arith.cmpi sge, %447, %448 : vector<32x128xi32>
    %c-2_i32_178 = arith.constant -2 : i32
    %450 = vector.broadcast %c-2_i32_178 : i32 to vector<32x128xi32>
    %451 = arith.addi %3, %450 : vector<32x128xi32>
    %c16_i32_179 = arith.constant 16 : i32
    %452 = vector.broadcast %c16_i32_179 : i32 to vector<32x128xi32>
    %453 = arith.cmpi slt, %451, %452 : vector<32x128xi32>
    %454 = arith.andi %449, %453 : vector<32x128xi1>
    %cst_180 = arith.constant 0.000000e+00 : f32
    %455 = vector.broadcast %cst_180 : f32 to vector<32x128xf32>
    %456 = arith.select %454, %445, %455 : vector<32x128xi1>, vector<32x128xf32>
    %c30_i32_181 = arith.constant 30 : i32
    %457 = tpu.dynamic_rotate %6 by %c30_i32_181 dim 0 : vector<32x128xf32>, i32 -> vector<32x128xf32>
    %c2_i32_182 = arith.constant 2 : i32
    %458 = vector.broadcast %c2_i32_182 : i32 to vector<32x128xi32>
    %459 = arith.addi %3, %458 : vector<32x128xi32>
    %c0_i32_183 = arith.constant 0 : i32
    %460 = vector.broadcast %c0_i32_183 : i32 to vector<32x128xi32>
    %461 = arith.cmpi sge, %459, %460 : vector<32x128xi32>
    %c2_i32_184 = arith.constant 2 : i32
    %462 = vector.broadcast %c2_i32_184 : i32 to vector<32x128xi32>
    %463 = arith.addi %3, %462 : vector<32x128xi32>
    %c16_i32_185 = arith.constant 16 : i32
    %464 = vector.broadcast %c16_i32_185 : i32 to vector<32x128xi32>
    %465 = arith.cmpi slt, %463, %464 : vector<32x128xi32>
    %466 = arith.andi %461, %465 : vector<32x128xi1>
    %cst_186 = arith.constant 0.000000e+00 : f32
    %467 = vector.broadcast %cst_186 : f32 to vector<32x128xf32>
    %468 = arith.select %466, %457, %467 : vector<32x128xi1>, vector<32x128xf32>
    %469 = tpu.concatenate %456, %6, %468 in 1 : vector<32x128xf32>, vector<32x128xf32>, vector<32x128xf32> -> vector<32x384xf32>
    %c0_187 = arith.constant 0 : index
    %c0_188 = arith.constant 0 : index
    %470 = vector.load %arg8[%c0_187, %c0_188] : memref<384x128xbf16, #tpu.memory_space<vmem>>, vector<384x128xbf16>
    %471 = arith.truncf %469 : vector<32x384xf32> to vector<32x384xbf16>
    %cst_189 = arith.constant dense<0.000000e+00> : vector<32x128xf32>
    %472 = tpu.matmul %471, %470, %cst_189 {dimension_numbers = #tpu.dot_dimension_numbers<[1], [0], [0], [1], [0, 0, 1, 1], [], []>} : vector<32x384xbf16>, vector<384x128xbf16>, vector<32x128xf32> -> vector<32x128xf32>
    %cst_190 = arith.constant dense<0.000000e+00> : vector<128xf32>
    %473 = vector.multi_reduction <add>, %472, %cst_190 [0] : vector<32x128xf32> to vector<128xf32>
    %474 = vector.shape_cast %473 : vector<128xf32> to vector<1x128xf32>
    %475 = arith.mulf %472, %472 : vector<32x128xf32>
    %cst_191 = arith.constant dense<0.000000e+00> : vector<128xf32>
    %476 = vector.multi_reduction <add>, %475, %cst_191 [0] : vector<32x128xf32> to vector<128xf32>
    %477 = vector.shape_cast %476 : vector<128xf32> to vector<1x128xf32>
    %478 = tpu.concatenate %474, %477 in 0 : vector<1x128xf32>, vector<1x128xf32> -> vector<2x128xf32>
    %c0_192 = arith.constant 0 : index
    %c0_193 = arith.constant 0 : index
    %479 = vector.load %arg3[%c0_192, %c0_193] : memref<128x128xbf16, #tpu.memory_space<vmem>>, vector<128x128xbf16>
    %480 = arith.truncf %478 : vector<2x128xf32> to vector<2x128xbf16>
    %cst_194 = arith.constant dense<0.000000e+00> : vector<2x128xf32>
    %481 = tpu.matmul %480, %479, %cst_194 {dimension_numbers = #tpu.dot_dimension_numbers<[1], [0], [0], [1], [0, 0, 1, 1], [], []>} : vector<2x128xbf16>, vector<128x128xbf16>, vector<2x128xf32> -> vector<2x128xf32>
    %482 = vector.extract_strided_slice %481 {offsets = [0, 0], sizes = [1, 128], strides = [1, 1]} : vector<2x128xf32> to vector<1x128xf32>
    %483 = vector.extract_strided_slice %481 {offsets = [1, 0], sizes = [1, 128], strides = [1, 1]} : vector<2x128xf32> to vector<1x128xf32>
    %484 = arith.mulf %482, %482 : vector<1x128xf32>
    %485 = arith.subf %483, %484 : vector<1x128xf32>
    %cst_195 = arith.constant 0.000000e+00 : f32
    %486 = vector.broadcast %cst_195 : f32 to vector<1x128xf32>
    %487 = arith.maximumf %485, %486 : vector<1x128xf32>
    %488 = vector.broadcast %482 : vector<1x128xf32> to vector<32x128xf32>
    %489 = arith.subf %472, %488 : vector<32x128xf32>
    %cst_196 = arith.constant 9.99999974E-6 : f32
    %490 = vector.broadcast %cst_196 : f32 to vector<1x128xf32>
    %491 = arith.addf %487, %490 : vector<1x128xf32>
    %492 = math.rsqrt %491 : vector<1x128xf32>
    %493 = vector.broadcast %444 : f32 to vector<1x128xf32>
    %494 = arith.mulf %492, %493 : vector<1x128xf32>
    %495 = vector.broadcast %494 : vector<1x128xf32> to vector<32x128xf32>
    %496 = arith.mulf %489, %495 : vector<32x128xf32>
    %497 = arith.addf %443, %496 : vector<32x128xf32>
    %c7 = arith.constant 7 : index
    %498 = memref.load %arg0[%c7] : memref<8xf32, #tpu.memory_space<smem>>
    %c4_i32 = arith.constant 4 : i32
    %499 = tpu.dynamic_rotate %6 by %c4_i32 dim 0 : vector<32x128xf32>, i32 -> vector<32x128xf32>
    %c-4_i32 = arith.constant -4 : i32
    %500 = vector.broadcast %c-4_i32 : i32 to vector<32x128xi32>
    %501 = arith.addi %3, %500 : vector<32x128xi32>
    %c0_i32_197 = arith.constant 0 : i32
    %502 = vector.broadcast %c0_i32_197 : i32 to vector<32x128xi32>
    %503 = arith.cmpi sge, %501, %502 : vector<32x128xi32>
    %c-4_i32_198 = arith.constant -4 : i32
    %504 = vector.broadcast %c-4_i32_198 : i32 to vector<32x128xi32>
    %505 = arith.addi %3, %504 : vector<32x128xi32>
    %c16_i32_199 = arith.constant 16 : i32
    %506 = vector.broadcast %c16_i32_199 : i32 to vector<32x128xi32>
    %507 = arith.cmpi slt, %505, %506 : vector<32x128xi32>
    %508 = arith.andi %503, %507 : vector<32x128xi1>
    %cst_200 = arith.constant 0.000000e+00 : f32
    %509 = vector.broadcast %cst_200 : f32 to vector<32x128xf32>
    %510 = arith.select %508, %499, %509 : vector<32x128xi1>, vector<32x128xf32>
    %c2_i32_201 = arith.constant 2 : i32
    %511 = tpu.dynamic_rotate %6 by %c2_i32_201 dim 0 : vector<32x128xf32>, i32 -> vector<32x128xf32>
    %c-2_i32_202 = arith.constant -2 : i32
    %512 = vector.broadcast %c-2_i32_202 : i32 to vector<32x128xi32>
    %513 = arith.addi %3, %512 : vector<32x128xi32>
    %c0_i32_203 = arith.constant 0 : i32
    %514 = vector.broadcast %c0_i32_203 : i32 to vector<32x128xi32>
    %515 = arith.cmpi sge, %513, %514 : vector<32x128xi32>
    %c-2_i32_204 = arith.constant -2 : i32
    %516 = vector.broadcast %c-2_i32_204 : i32 to vector<32x128xi32>
    %517 = arith.addi %3, %516 : vector<32x128xi32>
    %c16_i32_205 = arith.constant 16 : i32
    %518 = vector.broadcast %c16_i32_205 : i32 to vector<32x128xi32>
    %519 = arith.cmpi slt, %517, %518 : vector<32x128xi32>
    %520 = arith.andi %515, %519 : vector<32x128xi1>
    %cst_206 = arith.constant 0.000000e+00 : f32
    %521 = vector.broadcast %cst_206 : f32 to vector<32x128xf32>
    %522 = arith.select %520, %511, %521 : vector<32x128xi1>, vector<32x128xf32>
    %c30_i32_207 = arith.constant 30 : i32
    %523 = tpu.dynamic_rotate %6 by %c30_i32_207 dim 0 : vector<32x128xf32>, i32 -> vector<32x128xf32>
    %c2_i32_208 = arith.constant 2 : i32
    %524 = vector.broadcast %c2_i32_208 : i32 to vector<32x128xi32>
    %525 = arith.addi %3, %524 : vector<32x128xi32>
    %c0_i32_209 = arith.constant 0 : i32
    %526 = vector.broadcast %c0_i32_209 : i32 to vector<32x128xi32>
    %527 = arith.cmpi sge, %525, %526 : vector<32x128xi32>
    %c2_i32_210 = arith.constant 2 : i32
    %528 = vector.broadcast %c2_i32_210 : i32 to vector<32x128xi32>
    %529 = arith.addi %3, %528 : vector<32x128xi32>
    %c16_i32_211 = arith.constant 16 : i32
    %530 = vector.broadcast %c16_i32_211 : i32 to vector<32x128xi32>
    %531 = arith.cmpi slt, %529, %530 : vector<32x128xi32>
    %532 = arith.andi %527, %531 : vector<32x128xi1>
    %cst_212 = arith.constant 0.000000e+00 : f32
    %533 = vector.broadcast %cst_212 : f32 to vector<32x128xf32>
    %534 = arith.select %532, %523, %533 : vector<32x128xi1>, vector<32x128xf32>
    %c28_i32 = arith.constant 28 : i32
    %535 = tpu.dynamic_rotate %6 by %c28_i32 dim 0 : vector<32x128xf32>, i32 -> vector<32x128xf32>
    %c4_i32_213 = arith.constant 4 : i32
    %536 = vector.broadcast %c4_i32_213 : i32 to vector<32x128xi32>
    %537 = arith.addi %3, %536 : vector<32x128xi32>
    %c0_i32_214 = arith.constant 0 : i32
    %538 = vector.broadcast %c0_i32_214 : i32 to vector<32x128xi32>
    %539 = arith.cmpi sge, %537, %538 : vector<32x128xi32>
    %c4_i32_215 = arith.constant 4 : i32
    %540 = vector.broadcast %c4_i32_215 : i32 to vector<32x128xi32>
    %541 = arith.addi %3, %540 : vector<32x128xi32>
    %c16_i32_216 = arith.constant 16 : i32
    %542 = vector.broadcast %c16_i32_216 : i32 to vector<32x128xi32>
    %543 = arith.cmpi slt, %541, %542 : vector<32x128xi32>
    %544 = arith.andi %539, %543 : vector<32x128xi1>
    %cst_217 = arith.constant 0.000000e+00 : f32
    %545 = vector.broadcast %cst_217 : f32 to vector<32x128xf32>
    %546 = arith.select %544, %535, %545 : vector<32x128xi1>, vector<32x128xf32>
    %547 = tpu.concatenate %510, %522, %6, %534, %546 in 1 : vector<32x128xf32>, vector<32x128xf32>, vector<32x128xf32>, vector<32x128xf32>, vector<32x128xf32> -> vector<32x640xf32>
    %c0_218 = arith.constant 0 : index
    %c0_219 = arith.constant 0 : index
    %548 = vector.load %arg9[%c0_218, %c0_219] : memref<640x128xbf16, #tpu.memory_space<vmem>>, vector<640x128xbf16>
    %549 = arith.truncf %547 : vector<32x640xf32> to vector<32x640xbf16>
    %cst_220 = arith.constant dense<0.000000e+00> : vector<32x128xf32>
    %550 = tpu.matmul %549, %548, %cst_220 {dimension_numbers = #tpu.dot_dimension_numbers<[1], [0], [0], [1], [0, 0, 1, 1], [], []>} : vector<32x640xbf16>, vector<640x128xbf16>, vector<32x128xf32> -> vector<32x128xf32>
    %cst_221 = arith.constant dense<0.000000e+00> : vector<128xf32>
    %551 = vector.multi_reduction <add>, %550, %cst_221 [0] : vector<32x128xf32> to vector<128xf32>
    %552 = vector.shape_cast %551 : vector<128xf32> to vector<1x128xf32>
    %553 = arith.mulf %550, %550 : vector<32x128xf32>
    %cst_222 = arith.constant dense<0.000000e+00> : vector<128xf32>
    %554 = vector.multi_reduction <add>, %553, %cst_222 [0] : vector<32x128xf32> to vector<128xf32>
    %555 = vector.shape_cast %554 : vector<128xf32> to vector<1x128xf32>
    %556 = tpu.concatenate %552, %555 in 0 : vector<1x128xf32>, vector<1x128xf32> -> vector<2x128xf32>
    %c0_223 = arith.constant 0 : index
    %c0_224 = arith.constant 0 : index
    %557 = vector.load %arg3[%c0_223, %c0_224] : memref<128x128xbf16, #tpu.memory_space<vmem>>, vector<128x128xbf16>
    %558 = arith.truncf %556 : vector<2x128xf32> to vector<2x128xbf16>
    %cst_225 = arith.constant dense<0.000000e+00> : vector<2x128xf32>
    %559 = tpu.matmul %558, %557, %cst_225 {dimension_numbers = #tpu.dot_dimension_numbers<[1], [0], [0], [1], [0, 0, 1, 1], [], []>} : vector<2x128xbf16>, vector<128x128xbf16>, vector<2x128xf32> -> vector<2x128xf32>
    %560 = vector.extract_strided_slice %559 {offsets = [0, 0], sizes = [1, 128], strides = [1, 1]} : vector<2x128xf32> to vector<1x128xf32>
    %561 = vector.extract_strided_slice %559 {offsets = [1, 0], sizes = [1, 128], strides = [1, 1]} : vector<2x128xf32> to vector<1x128xf32>
    %562 = arith.mulf %560, %560 : vector<1x128xf32>
    %563 = arith.subf %561, %562 : vector<1x128xf32>
    %cst_226 = arith.constant 0.000000e+00 : f32
    %564 = vector.broadcast %cst_226 : f32 to vector<1x128xf32>
    %565 = arith.maximumf %563, %564 : vector<1x128xf32>
    %566 = vector.broadcast %560 : vector<1x128xf32> to vector<32x128xf32>
    %567 = arith.subf %550, %566 : vector<32x128xf32>
    %cst_227 = arith.constant 9.99999974E-6 : f32
    %568 = vector.broadcast %cst_227 : f32 to vector<1x128xf32>
    %569 = arith.addf %565, %568 : vector<1x128xf32>
    %570 = math.rsqrt %569 : vector<1x128xf32>
    %571 = vector.broadcast %498 : f32 to vector<1x128xf32>
    %572 = arith.mulf %570, %571 : vector<1x128xf32>
    %573 = vector.broadcast %572 : vector<1x128xf32> to vector<32x128xf32>
    %574 = arith.mulf %567, %573 : vector<32x128xf32>
    %575 = arith.addf %497, %574 : vector<32x128xf32>
    %c0_228 = arith.constant 0 : index
    %c0_229 = arith.constant 0 : index
    %576 = vector.load %arg10[%c0_228, %c0_229] : memref<32x128xf32, #tpu.memory_space<vmem>>, vector<32x128xf32>
    tpu.vector_store %arg10[%c0_228, %c0_229], %575 {strides = array<i32>} : memref<32x128xf32, #tpu.memory_space<vmem>>, vector<32x128xf32>,
    return
  }
}

</mosaic_0001>

<bundles_post_ra>
// kernel: tpu_custom_call.1
= control target key start
LH: loop header
LB: loop body
LE: loop exit
PB: predicated region body
PF: predicated region fallthrough
CT: control target
= control target key end

     0   :  { %15 = vsyncpa [#allocation5], 0  ;;  %s5939_s0 = inlined_call_operand.hbm [shape: f32[8], index: 0, kind: input, shape index: {}]   ;;  %s5940_s1 = inlined_call_operand.hbm [shape: f32[32,128], index: 1, kind: input, shape index: {}]   ;;  %s5941_s2 = inlined_call_operand.hbm [shape: bf16[128,128], index: 2, kind: input, shape index: {}]   ;;  %s5942_s3 = inlined_call_operand.hbm [shape: bf16[128,128], index: 3, kind: input, shape index: {}]   ;;  %s5943_s4 = inlined_call_operand.hbm [shape: bf16[384,128], index: 4, kind: input, shape index: {}]   ;;  %s5944_s5 = inlined_call_operand.hbm [shape: bf16[384,128], index: 5, kind: input, shape index: {}]   ;;  %s5945_s6 = inlined_call_operand.hbm [shape: bf16[640,128], index: 6, kind: input, shape index: {}]   ;;  %s5946_s7 = inlined_call_operand.hbm [shape: bf16[640,128], index: 7, kind: input, shape index: {}]   ;;  %s5947_s8 = inlined_call_operand.hbm [shape: bf16[384,128], index: 8, kind: input, shape index: {}]   ;;  %s5948_s9 = inlined_call_operand.hbm [shape: bf16[640,128], index: 9, kind: input, shape index: {}]   ;;  %s5949_s10 = inlined_call_operand.hbm [shape: f32[32,128], index: 10, kind: output, shape index: {}]  }
   0x1   :  { %16 = vsyncpa [#allocation3], 0 }
   0x2   :  { %17 = vsyncpa [#allocation8], 0 }
   0x3   :  { %18 = vsyncpa [#allocation11], 0 }
   0x4   :  { %19 = vsyncpa [#allocation14], 0 }
   0x5   :  { %20 = vsyncpa [#allocation17], 0  ;;  %s48_s15 = sshll.u32 %s5941_s2, 4  ;;  %s49_s15 = int_to_ptr.hbm [resolvable:$true] %s48_s15 }
   0x6   :  { %21 = vsyncpa [#allocation4], 0  ;;  %s4854_s16 = smov [#allocation7]   ;;  %s74_s20 = sshll.u32 %s5943_s4, 4  ;;  %s75_s20 = int_to_ptr.hbm [resolvable:$true] %s74_s20 }
   0x7   :  { %s50_s17 = sshll.u32 %s4854_s16, 4  ;;  %s4855_s21 = smov 64   ;;  %s51_s17 = int_to_ptr.vmem [resolvable:$true] %s50_s17 }
   0x8   :  { %s4856_s22 = smov 4   ;;  %s4857_s23 = smov [#allocation10]  }
   0x9   :  { %56 = dma.hbm_to_vmem [thread:$0]  %s49_s15, 1024, %s51_s17, [#allocation8], %s4855_s21, %s4855_s21, %s4856_s22  }
   0xa   :  { %s76_s24 = sshll.u32 %s4857_s23, 4  ;;  %s100_s26 = sshll.u32 %s5945_s6, 4  ;;  %s77_s24 = int_to_ptr.vmem [resolvable:$true] %s76_s24  ;;  %s101_s26 = int_to_ptr.hbm [resolvable:$true] %s100_s26 }
   0xb   :  { %82 = dma.hbm_to_vmem [thread:$0]  %s75_s20, 3072, %s77_s24, [#allocation11], %s4855_s21, %s4855_s21, %s4856_s22  }
   0xc   :  { %s126_s28 = sshll.u32 %s5947_s8, 4  ;;  %s4858_s29 = smov [#allocation13]   ;;  %s127_s28 = int_to_ptr.hbm [resolvable:$true] %s126_s28 }
   0xd   :  { %s102_s30 = sshll.u32 %s4858_s29, 4  ;;  %s4859_s11 = smov [#allocation16]   ;;  %s103_s30 = int_to_ptr.vmem [resolvable:$true] %s102_s30 }
   0xe   :  { %108 = dma.hbm_to_vmem [thread:$0]  %s101_s26, 5120, %s103_s30, [#allocation14], %s4855_s21, %s4855_s21, %s4856_s22  }
   0xf   :  { %s128_s6 = sshll.u32 %s4859_s11, 4  ;;  %s27_s14 = sshll.u32 %s5939_s0, 4  ;;  %s129_s6 = int_to_ptr.vmem [resolvable:$true] %s128_s6  ;;  %s28_s14 = int_to_ptr.hbm [resolvable:$true] %s27_s14 }
  0x10   :  { %134 = dma.hbm_to_vmem [thread:$0]  %s127_s28, 3072, %s129_s6, [#allocation17], %s4855_s21, %s4855_s21, %s4856_s22  }
  0x11   :  { %s35_s16 = sshll.u32 %s5940_s1, 4  ;;  %s4860_s17 = smov [#allocation2]   ;;  %s36_s16 = int_to_ptr.hbm [resolvable:$true] %s35_s16 }
  0x12   :  { %30 = dma.hbm_to_smem %s28_s14, 16, %s4860_s17, [#allocation5]  }
  0x13   :  { %s4861_s18 = smov [#allocation6]   ;;  %s4862_s20 = smov 128  }
  0x14   :  { %s37_s19 = sshll.u32 %s4861_s18, 4  ;;  %s4863_s23 = smov 8   ;;  %s38_s19 = int_to_ptr.vmem [resolvable:$true] %s37_s19 }
  0x15   :  { %43 = dma.hbm_to_vmem [thread:$0]  %s36_s16, 512, %s38_s19, [#allocation3], %s4862_s20, %s4862_s20, %s4863_s23  }
  0x16   :  { %s61_s25 = sshll.u32 %s5942_s3, 4  ;;  %s4864_s2 = smov [#allocation9]   ;;  %s62_s25 = int_to_ptr.hbm [resolvable:$true] %s61_s25 }
  0x17   :  { %s63_s26 = sshll.u32 %s4864_s2, 4  ;;  %s87_s27 = sshll.u32 %s5944_s5, 4  ;;  %s64_s26 = int_to_ptr.vmem [resolvable:$true] %s63_s26  ;;  %s88_s27 = int_to_ptr.hbm [resolvable:$true] %s87_s27 }
  0x18   :  { %69 = dma.hbm_to_vmem [thread:$0]  %s62_s25, 1024, %s64_s26, [#allocation8], %s4855_s21, %s4855_s21, %s4856_s22  }
  0x19   :  { %s4865_s28 = smov [#allocation12]   ;;  %s113_s6 = sshll.u32 %s5946_s7, 4  ;;  %s114_s6 = int_to_ptr.hbm [resolvable:$true] %s113_s6 }
  0x1a   :  { %s89_s29 = sshll.u32 %s4865_s28, 4  ;;  %s139_s5 = sshll.u32 %s5948_s9, 4  ;;  %s90_s29 = int_to_ptr.vmem [resolvable:$true] %s89_s29  ;;  %s140_s5 = int_to_ptr.hbm [resolvable:$true] %s139_s5 }
  0x1b   :  { %95 = dma.hbm_to_vmem [thread:$0]  %s88_s27, 3072, %s90_s29, [#allocation11], %s4855_s21, %s4855_s21, %s4856_s22  }
  0x1c   :  { %s4866_s13 = smov [#allocation15]   ;;  %s4867_s8 = smov [#allocation18]  }
  0x1d   :  { %s115_s14 = sshll.u32 %s4866_s13, 4  ;;  %s141_s7 = sshll.u32 %s4867_s8, 4  ;;  %s116_s14 = int_to_ptr.vmem [resolvable:$true] %s115_s14  ;;  %s142_s7 = int_to_ptr.vmem [resolvable:$true] %s141_s7 }
  0x1e   :  { %121 = dma.hbm_to_vmem [thread:$0]  %s114_s6, 5120, %s116_s14, [#allocation14], %s4855_s21, %s4855_s21, %s4856_s22  }
  0x1f   :  { %147 = dma.hbm_to_vmem [thread:$0]  %s140_s5, 5120, %s142_s7, [#allocation17], %s4855_s21, %s4855_s21, %s4856_s22  }
  0x20   :  { %4840 = dma.done.wait [#allocation5], 16  }
  0x21   :  { %4841 = vsyncadd [#allocation5], 4294967280 }
  0x22   :  { %4842 = dma.done.wait [#allocation3], 512  }
  0x23   :  { %4843 = vsyncadd [#allocation3], 4294966784 }
  0x24   :  { %4844 = dma.done.wait [#allocation8], 2048  }
  0x25   :  { %4845 = vsyncadd [#allocation8], 4294965248 }
  0x26   :  { %4846 = dma.done.wait [#allocation11], 6144  }
  0x27   :  { %4847 = vsyncadd [#allocation11], 4294961152 }
  0x28   :  { %4848 = dma.done.wait [#allocation14], 10240  }
  0x29   :  { %4849 = vsyncadd [#allocation14], 4294957056 }
  0x2a   :  { %4850 = dma.done.wait [#allocation17], 8192  }
  0x2b   :  { %4851 = vsyncadd [#allocation17], 4294959104 }
  0x2c   :  { %188 = sfence }
  0x2d   :  { %v4984_v0 = vld [vmem:[#allocation6] sm:$0xff]  ;;  %v4345_v1 = vld [vmem:[#allocation7 + $0x38] sm:$0xff]  ;;  %v189_v2 = vlaneseq  ;;  %v4986_v3 = vld [vmem:[#allocation6 + $0x8] sm:$0xff]  ;;  %s4868_s9 = smov 120   ;;  %v4869_v42 = vmov 0.33333334  }
  0x2e   :  { %281 = vrot.lane.b32.xlu1 %v4984_v0, %s4863_s23  ;;  %v214_v4 = vrot.slane %v4984_v0, 7  ;;  %v215_v5 = vrot.slane %v4986_v3, 7  ;;  %v4992_v6 = vld [vmem:[#allocation6 + $0x18] sm:$0xff]  ;;  %620 = vmatpush.bf16.msra.mxu1 %v4345_v1  ;;  %v4344_v8 = vld [vmem:[#allocation7 + $0x30] sm:$0xff]  ;;  %v4343_v14 = vld [vmem:[#allocation7 + $0x28] sm:$0xff]  ;;  %v318_v24 = vrot.slane %v4986_v3, 1 }
  0x2f   :  { %v4995_v7 = vshrl.u32 %v189_v2, 7  ;;  %v217_v9 = vrot.slane %v4992_v6, 7  ;;  %v5007_v13 = vld [vmem:[#allocation6 + $0x10] sm:$0xff]  ;;  %v4342_v23 = vld [vmem:[#allocation7 + $0x20] sm:$0xff]  ;;  %v4341_v29 = vld [vmem:[#allocation7 + $0x18] sm:$0xff]  ;;  %v317_v32 = vrot.slane %v4984_v0, 1 }
  0x30   :  { %v216_v19 = vrot.slane %v5007_v13, 7  ;;  %v319_v25 = vrot.slane %v5007_v13, 1  ;;  %v4340_v35 = vld [vmem:[#allocation7 + $0x10] sm:$0xff]  ;;  %v4339_v41 = vld [vmem:[#allocation7 + $0x8] sm:$0xff]  ;;  %v4338_v48 = vld [vmem:[#allocation7] sm:$0xff]  ;;  %v320_v49 = vrot.slane %v4992_v6, 1 }
  0x31   :  { %vm218_vm0 = vcmp.lt.s32.totalorder %v4995_v7, 1  ;;  %v5000_v10 = vand.u32 15, %v4995_v7  ;;  %v192_v11 = vadd.s32 16, %v4995_v7  ;;  %v191_v18 = vadd.s32 8, %v4995_v7  ;;  %s3384_s21 = sld [smem:[#allocation2 + $0x1]]  ;;  %s4871_s0 = smov [#allocation19]  }
  0x32   :  { %v5005_v12 = vsel %vm218_vm0, %v214_v4, %v215_v5  ;;  %621 = vmatpush.bf16.msra.mxu1 %v4344_v8  ;;  %v222_v15 = vsel %vm218_vm0, %v217_v9, %v214_v4  ;;  %v220_v27 = vsel %vm218_vm0, %v215_v5, %v216_v19  ;;  %vm321_vm3 = vcmp.lt.s32.totalorder %v4995_v7, 7  ;;  %s3383_s22 = sld [smem:[#allocation2 + $0x3]]  ;;  %s3363_s24 = sshll.u32 %s4871_s0, 4  ;;  %s3364_s24 = int_to_ptr.vmem [resolvable:$true] %s3363_s24 }
  0x33   :  { %5959 = vst [vmem:[#allocation27_spill] sm:$0xff] %v5000_v10  ;;  %245 = vrot.lane.b32.xlu0 %v5005_v12, %s4863_s23  ;;  %v5016_v16 = vadd.s32 4294967295, %v5000_v10  ;;  %v5018_v17 = vand.u32 15, %v192_v11  ;;  %v5026_v21 = vand.u32 15, %v191_v18  ;;  %v323_v31 = vsel %vm321_vm3, %v318_v24, %v319_v25  ;;  %s5446_s15 = sld [smem:[#allocation2 + $0x2]]  ;;  %s3365_s26 = sshll.u32 %s5949_s10, 4  ;;  %s3366_s26 = int_to_ptr.hbm [resolvable:$true] %s3365_s26 }
  0x34   :  { %v523_v34 = vadd.f32 %v5005_v12, %v4986_v3  ;;  %vm534_vm5 = vcmp.eq.s32.totalorder %v5000_v10, 0  ;;  %v193_v37 = vadd.s32 24, %v4995_v7  ;;  %v5071_v38 = vsel %vm321_vm3, %v317_v32, %v318_v24  ;;  %s3450_s16 = sld [smem:[#allocation2 + $0x4]] }
  0x35   :  { %5960 = vst [vmem:[#allocation28_spill] sm:$0xff] %v5018_v17  ;;  %vm227_vm1 = vcmp.ge.s32.totalorder %v5016_v16, 0  ;;  %v5024_v20 = vadd.s32 4294967295, %v5018_v17  ;;  %v5039_v26 = vadd.s32 1, %v5026_v21  ;;  %vm539_vm6 = vcmp.eq.s32.totalorder %v5026_v21, 15  ;;  %s3667_s17 = sld [smem:[#allocation2 + $0x5]] }
  0x36   :  { %5961 = vst [vmem:[#allocation29_spill] sm:$0xff] %v5026_v21  ;;  %283 = vrot.lane.b32.xlu1 %v4986_v3, %s4863_s23  ;;  %v5032_v22 = vsel %vm227_vm1, %v222_v15, -inf  ;;  %622 = vmatpush.bf16.msra.mxu1 %v4343_v14  ;;  %v518_v28 = vsel %vm227_vm1, %v222_v15, 0.0  ;;  %v546_v43 = vsel %vm534_vm5, 0.5, %v4869_v42  ;;  %v547_v44 = vsel %vm539_vm6, 0.5, %v4869_v42  ;;  %s4036_s18 = sld [smem:[#allocation2 + $0x6]] }
  0x37   :  { %262 = vrot.lane.b32.xlu2 %v5032_v22, %s4868_s9  ;;  %vm229_vm2 = vcmp.ge.s32.totalorder %v5024_v20, 0  ;;  %vm335_vm4 = vcmp.lt.s32.totalorder %v5039_v26, 16  ;;  %v522_v33 = vadd.f32 %v518_v28, %v4984_v0  ;;  %v5076_v45 = vand.u32 15, %v193_v37  ;;  %v5163_v28 = vld [vmem:[#allocation9 + $0x28] sm:$0xff]  ;;  %v4352_v37 = vld [vmem:[#allocation10 + $0x30] sm:$0xff]  ;;  %s4145_s19 = sld [smem:[#allocation2 + $0x7]] }
  0x38   :  { %v5051_v30 = vsel %vm229_vm2, %v220_v27, -inf  ;;  %v527_v36 = vsel %vm335_vm4, %v323_v31, 0.0  ;;  %v520_v52 = vsel %vm229_vm2, %v220_v27, 0.0  ;;  %v5092_v53 = vsel %vm335_vm4, %v323_v31, -inf }
  0x39   :  { %v530_v39 = vadd.f32 %v522_v33, %v5071_v38  ;;  %v531_v40 = vadd.f32 %v527_v36, %v523_v34  ;;  %5962 = vst [vmem:[#allocation30_spill] sm:$0xff] %v5076_v45  ;;  %v5084_v50 = vadd.s32 1, %v5076_v45  ;;  %v325_v54 = vsel %vm321_vm3, %v320_v49, %v317_v32  ;;  %v5171_v32 = vld [vmem:[#allocation9 + $0x20] sm:$0xff]  ;;  %v4353_v34 = vld [vmem:[#allocation10 + $0x38] sm:$0xff] }
  0x3a   :  { %623 = vmatpush.bf16.msra.mxu1 %v4342_v23  ;;  %v5101_v55 = vsel %vm218_vm0, %v216_v19, %v217_v9  ;;  %v524_v56 = vadd.f32 %v520_v52, %v5007_v13  ;;  %vm536_vm8 = vcmp.eq.s32.totalorder %v5018_v17, 0  ;;  %vm541_vm9 = vcmp.eq.s32.totalorder %v5076_v45, 15  ;;  %v5151_v19 = vld [vmem:[#allocation9 + $0x38] sm:$0xff]  ;;  %933 = vmatpush.bf16.msra.mxu3 %v4353_v34 }
  0x3b   :  { %243 = vrot.lane.b32.xlu0 %v5032_v22, %s4863_s23  ;;  %v550_v46 = vmul.f32 %v546_v43, %v530_v39  ;;  %v551_v47 = vmul.f32 %v547_v44, %v531_v40  ;;  %vm337_vm7 = vcmp.lt.s32.totalorder %v5084_v50, 16  ;;  %v525_v57 = vadd.f32 %v5101_v55, %v4992_v6  ;;  %472 = vmatpush.bf16.msra.mxu0 %v5151_v19  ;;  %v5179_v39 = vld [vmem:[#allocation9 + $0x10] sm:$0xff]  ;;  %v4351_v43 = vld [vmem:[#allocation10 + $0x28] sm:$0xff]  ;;  %v4369_v44 = vld [vmem:[#allocation10 + $0xb8] sm:$0xff] }
  0x3c   :  { %v529_v58 = vsel %vm337_vm7, %v325_v54, 0.0  ;;  %v5116_v59 = vsel %vm321_vm3, %v319_v25, %v320_v49  ;;  %v548_v62 = vsel %vm536_vm8, 0.5, %v4869_v42  ;;  %v549_v63 = vsel %vm541_vm9, 0.5, %v4869_v42  ;;  %664 = vmatpush.bf16.msra.mxu2 %v5151_v19  ;;  %v5157_v25 = vld [vmem:[#allocation9 + $0x30] sm:$0xff] }
  0x3d   :  { %v570_v51 = vpack.c.bf16 %v551_v47, %v550_v46  ;;  %v532_v60 = vadd.f32 %v524_v56, %v5116_v59  ;;  %v533_v61 = vadd.f32 %v529_v58, %v525_v57  ;;  %v5139_v8 = vsel %vm337_vm7, %v325_v54, -inf  ;;  %v5190_v46 = vld [vmem:[#allocation9 + $0x8] sm:$0xff]  ;;  %v4368_v49 = vld [vmem:[#allocation10 + $0xb0] sm:$0xff]  ;;  %v4349_v57 = vld [vmem:[#allocation10 + $0x18] sm:$0xff] }
  0x3e   :  { %285 = vrot.lane.b32.xlu1 %v5007_v13, %s4863_s23  ;;  %624 = vmatpush.bf16.msra.mxu1 %v4341_v29  ;;  %v5188_v42 = vand.u32 127, %v189_v2  ;;  %v4361_v2 = vld [vmem:[#allocation10 + $0x78] sm:$0xff]  ;;  %v4367_v58 = vld [vmem:[#allocation10 + $0xa8] sm:$0xff]  ;;  %vm5951_vm12 = vmmov 1  }
  0x3f   :  { %247 = vrot.lane.b32.xlu2 %v5051_v30, %s4863_s23  ;;  %v552_v1 = vmul.f32 %v548_v62, %v532_v60  ;;  %v553_v4 = vmul.f32 %v549_v63, %v533_v61  ;;  %473 = vmatpush.bf16.msra.mxu0 %v5157_v25  ;;  %v4360_v61 = vld [vmem:[#allocation10 + $0x70] sm:$0xff]  ;;  %vm5312_vm13 = vmpackc.low %vm5951_vm12, %vm227_vm1 }
  0x40   :  { %665 = vmatpush.bf16.msra.mxu2 %v5157_v25  ;;  %934 = vmatpush.bf16.msra.mxu3 %v4352_v37  ;;  %vm251_vm10 = vcmp.ge.s32.totalorder %v5188_v42, 8  ;;  %vm271_vm11 = vcmp.lt.s32.totalorder %v5188_v42, 120  ;;  %vm5361_vm14 = vmpackc.low %vm335_vm4, %vm5951_vm12 }
  0x41   :  { %v571_v5 = vpack.c.bf16 %v553_v4, %v552_v1  ;;  %v4348_v4 = vld [vmem:[#allocation10 + $0x10] sm:$0xff]  ;;  %vm5396_vm15 = vmpackc.low %vm5951_vm12, %vm229_vm2  ;;  %vm405_vm2 = vcmask 1040384  }
  0x42   :  { %625 = vmatpush.bf16.msra.mxu1 %v4340_v35  ;;  %v5175_v35 = vld [vmem:[#allocation9 + $0x18] sm:$0xff]  ;;  %vm5419_vm1 = vmpackc.low %vm337_vm7, %vm5951_vm12 }
  0x43   :  { %264 = vrot.lane.b32.xlu0 %v5005_v12, %s4868_s9  ;;  %474 = vmatpush.bf16.msra.mxu0 %v5163_v28 }
  0x44   :  { %666 = vmatpush.bf16.msra.mxu2 %v5163_v28  ;;  %935 = vmatpush.bf16.msra.mxu3 %v4351_v43 }
  0x46   :  { %346 = vrot.lane.b32.xlu1 %v5071_v38, %s4863_s23  ;;  %626 = vmatpush.bf16.msra.mxu1 %v4339_v41 }
  0x47   :  { %297 = vrot.lane.b32.xlu2 %v4984_v0, %s4868_s9  ;;  %475 = vmatpush.bf16.msra.mxu0 %v5171_v32 }
  0x48   :  { %667 = vmatpush.bf16.msra.mxu2 %v5171_v32 }
  0x4a   :  { %627 = vmatpush.bf16.msra.mxu1 %v4338_v48  ;;  %v4350_v48 = vld [vmem:[#allocation10 + $0x20] sm:$0xff] }
  0x4b   :  { %299 = vrot.lane.b32.xlu0 %v4986_v3, %s4868_s9  ;;  %476 = vmatpush.bf16.msra.mxu0 %v5175_v35 }
  0x4c   :  { %668 = vmatpush.bf16.msra.mxu2 %v5175_v35  ;;  %936 = vmatpush.bf16.msra.mxu3 %v4350_v48  ;;  %v4359_v48 = vld [vmem:[#allocation10 + $0x68] sm:$0xff] }
  0x4d   :  { %628 = vmatmul.bf16.vlgmr.msra.gmra.mxu1 %v570_v51  ;;  %v5195_v51 = vld [vmem:[#allocation9] sm:$0xff] }
  0x4e   :  { %266 = vrot.lane.b32.xlu1 %v5051_v30, %s4868_s9  ;;  %971 = vmatpush.bf16.msrb.mxu1 %v4369_v44 }
  0x4f   :  { %348 = vrot.lane.b32.xlu2 %v5092_v53, %s4863_s23  ;;  %477 = vmatpush.bf16.msra.mxu0 %v5179_v39 }
  0x50   :  { %669 = vmatpush.bf16.msra.mxu2 %v5179_v39  ;;  %937 = vmatpush.bf16.msra.mxu3 %v4349_v57 }
  0x52   :  { %972 = vmatpush.bf16.msrb.mxu1 %v4368_v49 }
  0x53   :  { %249 = vrot.lane.b32.xlu0 %v5101_v55, %s4863_s23  ;;  %478 = vmatpush.bf16.msra.mxu0 %v5190_v46 }
  0x54   :  { %670 = vmatpush.bf16.msra.mxu2 %v5190_v46  ;;  %938 = vmatpush.bf16.msra.mxu3 %v4348_v4 }
  0x56   :  { %350 = vrot.lane.b32.xlu1 %v5116_v59, %s4863_s23  ;;  %973 = vmatpush.bf16.msrb.mxu1 %v4367_v58 }
  0x57   :  { %287 = vrot.lane.b32.xlu2 %v4992_v6, %s4863_s23  ;;  %479 = vmatpush.bf16.msra.mxu0 %v5195_v51 }
  0x58   :  { %671 = vmatpush.bf16.msra.mxu2 %v5195_v51 }
  0x5b   :  { %301 = vrot.lane.b32.xlu0 %v5007_v13, %s4868_s9  ;;  %952 = vmatpush.bf16.msrb.mxu0 %v4361_v2  ;;  %v4347_v2 = vld [vmem:[#allocation10 + $0x8] sm:$0xff] }
  0x5c   :  { %1014 = vmatpush.bf16.msrb.mxu2 %v5151_v19  ;;  %939 = vmatpush.bf16.msra.mxu3 %v4347_v2 }
  0x5d   :  { %633 = vmatmul.bf16.gmra.mxu1 %v571_v5  ;;  %v4366_v5 = vld [vmem:[#allocation10 + $0xa0] sm:$0xff] }
  0x5e   :  { %268 = vrot.lane.b32.xlu1 %v5101_v55, %s4868_s9  ;;  %974 = vmatpush.bf16.msrb.mxu1 %v4366_v5  ;;  %v4346_v5 = vld [vmem:[#allocation10] sm:$0xff] }
  0x5f   :  { %362 = vrot.lane.b32.xlu2 %v5071_v38, %s4868_s9  ;;  %953 = vmatpush.bf16.msrb.mxu0 %v4360_v61 }
  0x60   :  { %1015 = vmatpush.bf16.msrb.mxu2 %v5157_v25  ;;  %940 = vmatpush.bf16.msra.mxu3 %v4346_v5 }
  0x63   :  { %364 = vrot.lane.b32.xlu0 %v5092_v53, %s4868_s9  ;;  %954 = vmatpush.bf16.msrb.mxu0 %v4359_v48 }
  0x64   :  { %1016 = vmatpush.bf16.msrb.mxu2 %v5163_v28 }
  0x66   :  { %366 = vrot.lane.b32.xlu1 %v5116_v59, %s4868_s9 }
  0x67   :  { %303 = vrot.lane.b32.xlu2 %v4992_v6, %s4868_s9 }
  0x68   :  { %1017 = vmatpush.bf16.msrb.mxu2 %v5171_v32 }
  0x6b   :  { %352 = vrot.lane.b32.xlu0 %v5139_v8, %s4863_s23 }
  0x6c   :  { %1018 = vmatpush.bf16.msrb.mxu2 %v5175_v35 }
  0x6f   :  { %368 = vrot.lane.b32.xlu2 %v5139_v8, %s4868_s9 }
  0x70   :  { %1019 = vmatpush.bf16.msrb.mxu2 %v5179_v39 }
  0x74   :  { %1020 = vmatpush.bf16.msrb.mxu2 %v5190_v46 }
  0x78   :  { %1021 = vmatpush.bf16.msrb.mxu2 %v5195_v51 }
  0x91   :  { %v5145_v9 = vpop.permute.xlu2 %262 }
  0x99   :  { %v5147_v14 = vpop.permute.xlu2 %247 }
  0xa0   :  { %v282_v11 = vpop.permute.xlu1 %281 }
  0xa1   :  { %v5153_v23 = vpop.permute.xlu2 %297  ;;  %v289_v52 = vsel %vm251_vm10, %v282_v11, -inf  ;;  %v256_v11 = vsel %vm251_vm10, %v5147_v14, -inf }
  0xa2   :  { %v293_v62 = vmax.f32 %v4984_v0, %v289_v52 }
  0xa5   :  { %v5149_v15 = vpop.permute.xlu0 %245 }
  0xa8   :  { %v284_v18 = vpop.permute.xlu1 %283 }
  0xa9   :  { %v5169_v31 = vpop.permute.xlu2 %348  ;;  %v290_v63 = vsel %vm251_vm10, %v284_v18, -inf  ;;  %v255_v18 = vsel %vm251_vm10, %v5149_v15, -inf }
  0xaa   :  { %v294_v14 = vmax.f32 %v4986_v3, %v290_v63  ;;  %v259_v52 = vmax.f32 %v5005_v12, %v255_v18  ;;  %v4358_v12 = vld [vmem:[#allocation10 + $0x60] sm:$0xff] }
  0xab   :  { %955 = vmatpush.bf16.msrb.mxu0 %v4358_v12  ;;  %v4475_v12 = vld [vmem:[#allocation16 + $0x8] sm:$0xff] }
  0xad   :  { %v244_v24 = vpop.permute.xlu0 %243 }
  0xae   :  { %v254_v56 = vsel %vm251_vm10, %v244_v24, -inf  ;;  %v305_v24 = vsel %vm271_vm11, %v5153_v23, -inf  ;;  %v273_v23 = vsel %vm271_vm11, %v5145_v9, -inf }
  0xaf   :  { %v258_v34 = vmax.f32 %v5032_v22, %v254_v56  ;;  %v355_v22 = vsel %vm251_vm10, %v5169_v31, -inf  ;;  %v4365_v31 = vld [vmem:[#allocation10 + $0x98] sm:$0xff] }
  0xb0   :  { %v5159_v27 = vpop.permute.xlu1 %285  ;;  %975 = vmatpush.bf16.msrb.mxu1 %v4365_v31  ;;  %v4357_v31 = vld [vmem:[#allocation10 + $0x58] sm:$0xff] }
  0xb1   :  { %v5181_v40 = vpop.permute.xlu2 %287  ;;  %v291_v15 = vsel %vm251_vm10, %v5159_v27, -inf  ;;  %v5242_v56 = vmax.f32 %v258_v34, %v273_v23  ;;  %956 = vmatpush.bf16.msrb.mxu0 %v4357_v31 }
  0xb2   :  { %v295_v58 = vmax.f32 %v5007_v13, %v291_v15 }
  0xb5   :  { %v5167_v29 = vpop.permute.xlu0 %264 }
  0xb6   :  { %v274_v49 = vsel %vm271_vm11, %v5167_v29, -inf  ;;  %v5250_v29 = vsel %vm251_vm10, %v5181_v40, -inf }
  0xb8   :  { %v347_v33 = vpop.permute.xlu1 %346 }
  0xb9   :  { %v363_v60 = vpop.permute.xlu2 %362  ;;  %v354_v37 = vsel %vm251_vm10, %v347_v33, -inf  ;;  %v260_v33 = vmax.f32 %v5051_v30, %v256_v11  ;;  %v359_v30 = vmax.f32 %v5092_v53, %v355_v22  ;;  %v4364_v11 = vld [vmem:[#allocation10 + $0x90] sm:$0xff] }
  0xba   :  { %v358_v27 = vmax.f32 %v5071_v38, %v354_v37  ;;  %v370_v61 = vsel %vm271_vm11, %v363_v60, -inf  ;;  %976 = vmatpush.bf16.msrb.mxu1 %v4364_v11 }
  0xbc   :  { %v374_v18 = vmax.f32 %v358_v27, %v370_v61  ;;  %v4363_v27 = vld [vmem:[#allocation10 + $0x88] sm:$0xff] }
  0xbd   :  { %v300_v36 = vpop.permute.xlu0 %299 }
  0xbe   :  { %v306_v43 = vsel %vm271_vm11, %v300_v36, -inf  ;;  %v5236_v36 = vmax.f32 %v293_v62, %v305_v24  ;;  %v278_v62 = vmax.f32 %v259_v52, %v274_v49  ;;  %v5267_v24 = vmax.f32 %v4984_v0, 0.0  ;;  %977 = vmatpush.bf16.msrb.mxu1 %v4363_v27 }
  0xbf   :  { %v310_v57 = vmax.f32 %v294_v14, %v306_v43 }
  0xc0   :  { %v5183_v41 = vpop.permute.xlu1 %266  ;;  %v313_v34 = vmax.f32 %v5242_v56, %v5236_v36  ;;  %v711_v48 = vrot.slane %v5267_v24, 7 }
  0xc1   :  { %v275_v38 = vsel %vm271_vm11, %v5183_v41, -inf  ;;  %v304_v40 = vpop.permute.xlu2 %303  ;;  %v5270_v41 = vmax.f32 %v4986_v3, 0.0  ;;  %v314_v37 = vmax.f32 %v278_v62, %v310_v57  ;;  %v5300_v57 = vmax.f32 %v5007_v13, 0.0  ;;  %v4356_v62 = vld [vmem:[#allocation10 + $0x50] sm:$0xff] }
  0xc2   :  { %v279_v43 = vmax.f32 %v260_v33, %v275_v38  ;;  %v308_v33 = vsel %vm271_vm11, %v304_v40, -inf  ;;  %957 = vmatpush.bf16.msrb.mxu0 %v4356_v62 }
  0xc3   :  { %5963 = vst [vmem:[#allocation31_spill] sm:$0xff] %v5270_v41  ;;  %v712_v14 = vrot.slane %v5270_v41, 7  ;;  %v724_v38 = vrot.slane %v5270_v41, 1  ;;  %v725_v16 = vrot.slane %v5300_v57, 1 }
  0xc4   :  { %5965 = vst [vmem:[#allocation33_spill] sm:$0xff] %v5300_v57 }
  0xc5   :  { %v250_v47 = vpop.permute.xlu0 %249  ;;  %v717_v52 = vsel %vm218_vm0, %v711_v48, %v712_v14 }
  0xc6   :  { %v257_v53 = vsel %vm251_vm10, %v250_v47, -inf  ;;  %v5273_v47 = vmax.f32 %v4992_v6, 0.0 }
  0xc7   :  { %v261_v15 = vmax.f32 %v5101_v55, %v257_v53 }
  0xc8   :  { %v351_v54 = vpop.permute.xlu1 %350  ;;  %5964 = vst [vmem:[#allocation32_spill] sm:$0xff] %v5273_v47  ;;  %v714_v22 = vrot.slane %v5273_v47, 7 }
  0xc9   :  { %v356_v63 = vsel %vm251_vm10, %v351_v54, -inf  ;;  %v296_v54 = vmax.f32 %v4992_v6, %v5250_v29  ;;  %v369_v40 = vpop.permute.xlu2 %368 }
  0xca   :  { %v5208_v1 = vpop.f32.mrf.mxu1  ;;  %v360_v23 = vmax.f32 %v5116_v59, %v356_v63  ;;  %v718_v55 = vsel %vm218_vm0, %v714_v22, %v711_v48 }
  0xcb   :  { %v5297_v56 = vpack.c.bf16 %v717_v52, %v718_v55 }
  0xcd   :  { %v302_v44 = vpop.permute.xlu0 %301  ;;  %3549 = vmatmul.msk.bf16.vlgmr.msra.gmra.mxu3 %vm5312_vm13, %v5297_v56 }
  0xce   :  { %v307_v4 = vsel %vm271_vm11, %v302_v44, -inf }
  0xcf   :  { %v311_v49 = vmax.f32 %v295_v58, %v307_v4  ;;  %v5326_v4 = vmax.f32 %v313_v34, %v374_v18  ;;  %v728_v34 = vsel %vm321_vm3, %v724_v38, %v725_v16  ;;  %v312_v18 = vmax.f32 %v296_v54, %v308_v33 }
  0xd0   :  { %v269_v9 = vpop.permute.xlu1 %268 }
  0xd1   :  { %v276_v58 = vsel %vm271_vm11, %v269_v9, -inf  ;;  %v649_v9 = vmul.f32 %v5208_v1, %v5208_v1  ;;  %v315_v5 = vmax.f32 %v279_v43, %v311_v49  ;;  %v392_v55 = vmul.f32 %v5326_v4, %v5326_v4 }
  0xd2   :  { %v5264_v60 = vpop.f32.mrf.mxu1  ;;  %v280_v48 = vmax.f32 %v261_v15, %v276_v58  ;;  %v4355_v15 = vld [vmem:[#allocation10 + $0x48] sm:$0xff] }
  0xd3   :  { %v650_v53 = vmul.f32 %v5264_v60, %v5264_v60  ;;  %958 = vmatpush.bf16.msrb.mxu0 %v4355_v15 }
  0xd4   :  { %v316_v42 = vmax.f32 %v280_v48, %v312_v18 }
  0xd5   :  { %v365_v44 = vpop.permute.xlu0 %364  ;;  %v653_v52 = vadd.f32 %v650_v53, %v649_v9  ;;  %v4354_v53 = vld [vmem:[#allocation10 + $0x40] sm:$0xff] }
  0xd6   :  { %v371_v36 = vsel %vm271_vm11, %v365_v44, -inf }
  0xd7   :  { %v375_v2 = vmax.f32 %v359_v30, %v371_v36  ;;  %v723_v30 = vrot.slane %v5267_v24, 1  ;;  %959 = vmatpush.bf16.msrb.mxu0 %v4354_v53 }
  0xd8   :  { %v367_v59 = vpop.permute.xlu1 %366 }
  0xd9   :  { %v5305_v29 = vmax.f32 %v314_v37, %v375_v2  ;;  %v372_v61 = vsel %vm271_vm11, %v367_v59, -inf  ;;  %v4362_v37 = vld [vmem:[#allocation10 + $0x80] sm:$0xff]  ;;  %v729_v44 = vsel %vm321_vm3, %v723_v30, %v724_v38  ;;  %v373_v2 = vsel %vm271_vm11, %v369_v40, -inf }
  0xda   :  { %v376_v63 = vmax.f32 %v360_v23, %v372_v61  ;;  %v5328_v11 = vpop.f32.mrf.mxu1  ;;  %v640_v23 = vadd.f32 %v5264_v60, %v5208_v1  ;;  %v5351_v33 = vpack.c.bf16 %v728_v34, %v729_v44  ;;  %978 = vmatpush.bf16.msrb.mxu1 %v4362_v37  ;;  %v713_v34 = vrot.slane %v5300_v57, 7 }
  0xdb   :  { %v393_v43 = vmul.f32 %v5305_v29, %v5305_v29  ;;  %v651_v31 = vmul.f32 %v5328_v11, %v5328_v11  ;;  %v383_v59 = vadd.f32 %v5305_v29, %v5326_v4 }
  0xdc   :  { %v5342_v49 = vmax.f32 %v315_v5, %v376_v63  ;;  %v641_v61 = vadd.f32 %v640_v23, %v5328_v11  ;;  %v715_v15 = vsel %vm218_vm0, %v713_v34, %v714_v22 }
  0xdd   :  { %v353_v36 = vpop.permute.xlu0 %352  ;;  %v396_v62 = vadd.f32 %v393_v43, %v392_v55  ;;  %3555 = vmatmul.msk.bf16.vlgmr.msrb.gmra.mxu1 %vm5361_vm14, %v5351_v33  ;;  %v4491_v55 = vld [vmem:[#allocation16 + $0x88] sm:$0xff] }
  0xde   :  { %v357_v54 = vsel %vm251_vm10, %v353_v36, -inf  ;;  %v394_v38 = vmul.f32 %v5342_v49, %v5342_v49  ;;  %v384_v26 = vadd.f32 %v383_v59, %v5342_v49 }
  0xdf   :  { %v361_v27 = vmax.f32 %v5139_v8, %v357_v54  ;;  %v654_v8 = vadd.f32 %v653_v52, %v651_v31  ;;  %v716_v31 = vsel %vm218_vm0, %v712_v14, %v713_v34 }
  0xe0   :  { %v397_v44 = vadd.f32 %v396_v62, %v394_v38  ;;  %v5400_v59 = vpack.c.bf16 %v715_v15, %v716_v31 }
  0xe1   :  { %v377_v9 = vmax.f32 %v361_v27, %v373_v2  ;;  %v726_v27 = vrot.slane %v5273_v47, 1 }
  0xe2   :  { %v5375_v40 = vpop.f32.mrf.mxu1  ;;  %3552 = vmatmul.msk.bf16.gmra.mxu3 %vm5396_vm15, %v5400_v59 }
  0xe3   :  { %v5373_v63 = vmax.f32 %v316_v42, %v377_v9  ;;  %v642_v5 = vadd.f32 %v641_v61, %v5375_v40  ;;  %v652_v37 = vmul.f32 %v5375_v40, %v5375_v40  ;;  %v727_v20 = vsel %vm321_vm3, %v725_v16, %v726_v27 }
  0xe4   :  { %v730_v9 = vsel %vm321_vm3, %v726_v27, %v723_v30  ;;  %v5433_v27 = vpack.c.bf16 %v5270_v41, %v5267_v24 }
  0xe5   :  { %v385_v48 = vadd.f32 %v384_v26, %v5373_v63  ;;  %v395_v23 = vmul.f32 %v5373_v63, %v5373_v63  ;;  %v643_v18 = vrot.slane %v642_v5, 4  ;;  %v655_v43 = vadd.f32 %v654_v8, %v652_v37 }
  0xe7   :  { %v386_v36 = vrot.slane %v385_v48, 4  ;;  %v398_v2 = vadd.f32 %v397_v44, %v395_v23  ;;  %v644_v52 = vadd.f32 %v643_v18, %v642_v5  ;;  %v656_v54 = vrot.slane %v655_v43, 4 }
  0xe9   :  { %v387_v42 = vadd.f32 %v386_v36, %v385_v48  ;;  %v399_v22 = vrot.slane %v398_v2, 4  ;;  %v645_v61 = vrot.slane %v644_v52, 2  ;;  %v657_v62 = vadd.f32 %v656_v54, %v655_v43 }
  0xea   :  { %v5414_v48 = vpack.c.bf16 %v730_v9, %v727_v20 }
  0xeb   :  { %v388_v14 = vrot.slane %v387_v42, 2  ;;  %v400_v38 = vadd.f32 %v399_v22, %v398_v2  ;;  %v646_v53 = vadd.f32 %v645_v61, %v644_v52  ;;  %v658_v8 = vrot.slane %v657_v62, 2 }
  0xed   :  { %v389_v26 = vadd.f32 %v388_v14, %v387_v42  ;;  %v401_v5 = vrot.slane %v400_v38, 2  ;;  %v647_v37 = vrot.slane %v646_v53, 1  ;;  %v659_v44 = vadd.f32 %v658_v8, %v657_v62  ;;  %3558 = vmatmul.msk.bf16.gmra.mxu1 %vm5419_vm1, %v5414_v48 }
  0xef   :  { %v390_v23 = vrot.slane %v389_v26, 1  ;;  %v402_v34 = vadd.f32 %v401_v5, %v400_v38  ;;  %v648_v18 = vadd.f32 %v647_v37, %v646_v53  ;;  %v660_v43 = vrot.slane %v659_v44, 1 }
  0xf1   :  { %v403_v30 = vrot.slane %v402_v34, 1  ;;  %v661_v36 = vadd.f32 %v660_v43, %v659_v44  ;;  %v391_v2 = vadd.f32 %v390_v23, %v389_v26 }
  0xf3   :  { %v404_v15 = vadd.f32 %v403_v30, %v402_v34  ;;  %v662_v31 = vsel %vm405_vm2, %v648_v18, %v661_v36 }
  0xf4   :  { %v663_v50 = vpack.c.bf16 %v662_v31, %v662_v31  ;;  %v507_v31 = vstv %s3384_s21 }
  0xf5   :  { %v406_v52 = vsel %vm405_vm2, %v391_v2, %v404_v15 }
  0xf6   :  { %v423_v54 = vpack.c.bf16 %v406_v52, %v406_v52  ;;  %672 = vmatmul.bf16.vlgmr.msra.gmra.mxu2 %v663_v50  ;;  %v209_v52 = vstv %s3383_s22 }
  0xf7   :  { %1361 = vmatpush.bf16.msra.mxu2 %v5151_v19  ;;  %v5442_v19 = vpack.c.bf16 %v5273_v47, %v5300_v57 }
  0xf8   :  { %480 = vmatmul.bf16.vlgmr.msra.gmra.mxu0 %v423_v54 }
  0xfb   :  { %1362 = vmatpush.bf16.msra.mxu2 %v5157_v25 }
  0xff   :  { %1363 = vmatpush.bf16.msra.mxu2 %v5163_v28 }
 0x103   :  { %1364 = vmatpush.bf16.msra.mxu2 %v5171_v32 }
 0x107   :  { %1365 = vmatpush.bf16.msra.mxu2 %v5175_v35 }
 0x108   :  { %960 = vmatmul.bf16.vlgmr.msrb.gmra.mxu0 %v5433_v27 }
 0x10b   :  { %1366 = vmatpush.bf16.msra.mxu2 %v5179_v39 }
 0x10f   :  { %1367 = vmatpush.bf16.msra.mxu2 %v5190_v46 }
 0x113   :  { %1368 = vmatpush.bf16.msra.mxu2 %v5195_v51 }
 0x118   :  { %965 = vmatmul.bf16.gmra.mxu0 %v5442_v19 }
 0x150   :  { %v942_v46 = vpop.f32.mrf.mxu3 }
 0x158   :  { %v944_v44 = vpop.f32.mrf.mxu3 }
 0x15a   :  { %v980_v9 = vpop.f32.mrf.mxu1 }
 0x162   :  { %v982_v18 = vpop.f32.mrf.mxu1 }
 0x175   :  { %v481_v25 = vpop.f32.mrf.mxu0 }
 0x176   :  { %v485_v28 = vmul.f32 %v481_v25, %v481_v25  ;;  %v491_v54 = vperm.slane %v481_v25, 0 }
 0x178   :  { %v487_v42 = vrot.slane %v485_v28, 7 }
 0x179   :  { %v673_v22 = vpop.f32.mrf.mxu2 }
 0x17a   :  { %v489_v32 = vsub.f32 %v481_v25, %v487_v42  ;;  %v677_v61 = vmul.f32 %v673_v22, %v673_v22  ;;  %v212_v25 = vmul.f32 %v209_v52, %v5007_v13 }
 0x17c   :  { %v490_v62 = vmax.f32 %v489_v32, 0.0  ;;  %v679_v35 = vrot.slane %v677_v61, 7  ;;  %v947_v61 = vpop.f32.mrf.mxu3 }
 0x17d   :  { %v483_v14 = vpop.f32.mrf.mxu0 }
 0x17e   :  { %v496_v39 = vadd.f32 1e-05, %v490_v62  ;;  %v681_v38 = vsub.f32 %v673_v22, %v679_v35  ;;  %v210_v35 = vmul.f32 %v209_v52, %v4984_v0  ;;  %v211_v14 = vmul.f32 %v209_v52, %v4986_v3 }
 0x17f   :  { %v495_v0 = vsub.f32 %v5373_v63, %v491_v54  ;;  %v683_v3 = vperm.slane %v673_v22, 0 }
 0x180   :  { %4556 = vrsqrt.f32 %v496_v39  ;;  %v682_v20 = vmax.f32 %v681_v38, 0.0  ;;  %vm503_vm5 = vweird.f32 %v496_v39 }
 0x181   :  { %v675_v53 = vpop.f32.mrf.mxu2 }
 0x182   :  { %v688_v8 = vadd.f32 1e-05, %v682_v20  ;;  %v492_v53 = vsub.f32 %v5326_v4, %v491_v54 }
 0x184   :  { %4558 = vrsqrt.f32 %v688_v8  ;;  %vm695_vm7 = vweird.f32 %v688_v8 }
 0x185   :  { %v961_v51 = vpop.f32.mrf.mxu0 }
 0x186   :  { %v4557_v26 = vpop.eup %4556 }
 0x187   :  { %v498_v5 = vmul.f32 %v4557_v26, %v496_v39  ;;  %vm504_vm4 = vweird.f32 %v4557_v26 }
 0x188   :  { %vm505_vm6 = vmor %vm503_vm5, %vm504_vm4  ;;  %vm1412_vm5 = vcmp.lt.s32.totalorder %v4995_v7, 2 }
 0x189   :  { %v499_v37 = vmul.f32 %v4557_v26, %v498_v5  ;;  %v985_v5 = vpop.f32.mrf.mxu1 }
 0x18a   :  { %v4559_v23 = vpop.eup %4558 }
 0x18b   :  { %v500_v34 = vmul.f32 0.5, %v499_v37  ;;  %v690_v43 = vmul.f32 %v4559_v23, %v688_v8  ;;  %vm696_vm8 = vweird.f32 %v4559_v23  ;;  %v493_v8 = vsub.f32 %v5305_v29, %v491_v54 }
 0x18c   :  { %vm5450_vm9 = vmor %vm695_vm7, %vm696_vm8 }
 0x18d   :  { %v501_v30 = vsub.f32 1.5, %v500_v34  ;;  %v963_v36 = vpop.f32.mrf.mxu0  ;;  %v691_v2 = vmul.f32 %v4559_v23, %v690_v43  ;;  %v962_v34 = vadd.f32 %v961_v51, %v942_v46  ;;  %v213_v43 = vmul.f32 %v209_v52, %v4992_v6 }
 0x18e   :  { %v964_v62 = vadd.f32 %v963_v36, %v944_v44  ;;  %v494_v44 = vsub.f32 %v5342_v49, %v491_v54  ;;  %v685_v49 = vsub.f32 %v5264_v60, %v683_v3  ;;  %v686_v6 = vsub.f32 %v5328_v11, %v683_v3 }
 0x18f   :  { %v502_v15 = vmul.f32 %v4557_v26, %v501_v30  ;;  %v692_v50 = vmul.f32 0.5, %v691_v2  ;;  %v5467_v63 = vadd.f32 %v980_v9, %v962_v34  ;;  %v687_v46 = vsub.f32 %v5375_v40, %v683_v3  ;;  %v949_v9 = vpop.f32.mrf.mxu3 }
 0x190   :  { %v5463_v36 = vadd.f32 %v982_v18, %v964_v62 }
 0x191   :  { %v506_v28 = vsel %vm505_vm6, %v4557_v26, %v502_v15  ;;  %v693_v32 = vsub.f32 1.5, %v692_v50  ;;  %v699_v26 = vstv %s5446_s15  ;;  %v684_v50 = vsub.f32 %v5208_v1, %v683_v3 }
 0x192   :  { %v508_v42 = vmul.f32 %v507_v31, %v506_v28  ;;  %v999_v62 = vmul.f32 %v5467_v63, %v5467_v63  ;;  %v990_v11 = vadd.f32 %v5463_v36, %v5467_v63 }
 0x193   :  { %v694_v20 = vmul.f32 %v4559_v23, %v693_v32 }
 0x194   :  { %v509_v38 = vperm.slane %v508_v42, 1 }
 0x195   :  { %v966_v37 = vpop.f32.mrf.mxu0  ;;  %v698_v30 = vsel %vm5450_vm9, %v4559_v23, %v694_v20  ;;  %v1000_v23 = vmul.f32 %v5463_v36, %v5463_v36 }
 0x196   :  { %v967_v13 = vadd.f32 %v966_v37, %v947_v61  ;;  %v510_v4 = vmul.f32 %v509_v38, %v492_v53  ;;  %v511_v2 = vmul.f32 %v509_v38, %v493_v8  ;;  %v512_v29 = vmul.f32 %v509_v38, %v494_v44 }
 0x197   :  { %v513_v15 = vmul.f32 %v509_v38, %v495_v0  ;;  %v700_v31 = vmul.f32 %v699_v26, %v698_v30  ;;  %v1003_v53 = vadd.f32 %v1000_v23, %v999_v62  ;;  %v4377_v23 = vld [vmem:[#allocation12 + $0x38] sm:$0xff] }
 0x198   :  { %v5469_v22 = vadd.f32 %v985_v5, %v967_v13  ;;  %v514_v18 = vadd.f32 %v510_v4, %v210_v35  ;;  %v515_v52 = vadd.f32 %v511_v2, %v211_v14  ;;  %v516_v54 = vadd.f32 %v512_v29, %v212_v25  ;;  %v987_v25 = vpop.f32.mrf.mxu1  ;;  %1280 = vmatpush.bf16.msrb.mxu3 %v4377_v23  ;;  %v4381_v62 = vld [vmem:[#allocation12 + $0x58] sm:$0xff] }
 0x199   :  { %v701_v51 = vperm.slane %v700_v31, 1  ;;  %v517_v28 = vadd.f32 %v513_v15, %v213_v43 }
 0x19a   :  { %v1001_v40 = vmul.f32 %v5469_v22, %v5469_v22  ;;  %v991_v8 = vadd.f32 %v990_v11, %v5469_v22  ;;  %v4373_v11 = vld [vmem:[#allocation12 + $0x18] sm:$0xff] }
 0x19b   :  { %v702_v42 = vmul.f32 %v701_v51, %v684_v50  ;;  %v703_v1 = vmul.f32 %v701_v51, %v685_v49  ;;  %v704_v32 = vmul.f32 %v701_v51, %v686_v6  ;;  %v705_v60 = vmul.f32 %v701_v51, %v687_v46  ;;  %v4385_v51 = vld [vmem:[#allocation12 + $0x78] sm:$0xff] }
 0x19c   :  { %v1004_v5 = vadd.f32 %v1003_v53, %v1001_v40  ;;  %1299 = vmatpush.bf16.msra.mxu0 %v4385_v51  ;;  %v4389_v40 = vld [vmem:[#allocation12 + $0x98] sm:$0xff]  ;;  %v4388_v53 = vld [vmem:[#allocation12 + $0x90] sm:$0xff] }
 0x19d   :  { %v968_v61 = vpop.f32.mrf.mxu0  ;;  %v5481_v35 = vadd.f32 %v702_v42, %v514_v18  ;;  %v5483_v14 = vadd.f32 %v703_v1, %v515_v52  ;;  %v5485_v20 = vadd.f32 %v704_v32, %v516_v54  ;;  %v5487_v39 = vadd.f32 %v705_v60, %v517_v28  ;;  %v4393_v18 = vld [vmem:[#allocation12 + $0xb8] sm:$0xff]  ;;  %v4384_v52 = vld [vmem:[#allocation12 + $0x70] sm:$0xff]  ;;  %v4383_v42 = vld [vmem:[#allocation12 + $0x68] sm:$0xff] }
 0x19e   :  { %v969_v38 = vadd.f32 %v968_v61, %v949_v9  ;;  %1318 = vmatpush.bf16.msra.mxu1 %v4393_v18  ;;  %v4376_v54 = vld [vmem:[#allocation12 + $0x30] sm:$0xff]  ;;  %v4375_v1 = vld [vmem:[#allocation12 + $0x28] sm:$0xff]  ;;  %v4382_v60 = vld [vmem:[#allocation12 + $0x60] sm:$0xff] }
 0x19f   :  { %v4392_v28 = vld [vmem:[#allocation12 + $0xb0] sm:$0xff]  ;;  %1281 = vmatpush.bf16.msrb.mxu3 %v4376_v54  ;;  %v4391_v32 = vld [vmem:[#allocation12 + $0xa8] sm:$0xff]  ;;  %v4374_v9 = vld [vmem:[#allocation12 + $0x20] sm:$0xff] }
 0x1a0   :  { %v5490_v26 = vadd.f32 %v987_v25, %v969_v38  ;;  %1300 = vmatpush.bf16.msra.mxu0 %v4384_v52  ;;  %v4390_v61 = vld [vmem:[#allocation12 + $0xa0] sm:$0xff]  ;;  %v4380_v38 = vld [vmem:[#allocation12 + $0x50] sm:$0xff] }
 0x1a1   :  { %v4372_v25 = vld [vmem:[#allocation12 + $0x10] sm:$0xff] }
 0x1a2   :  { %v992_v37 = vadd.f32 %v991_v8, %v5490_v26  ;;  %v1002_v44 = vmul.f32 %v5490_v26, %v5490_v26  ;;  %1319 = vmatpush.bf16.msra.mxu1 %v4392_v28  ;;  %v4379_v8 = vld [vmem:[#allocation12 + $0x48] sm:$0xff] }
 0x1a3   :  { %1282 = vmatpush.bf16.msrb.mxu3 %v4375_v1 }
 0x1a4   :  { %v993_v0 = vrot.slane %v992_v37, 4  ;;  %v1005_v3 = vadd.f32 %v1004_v5, %v1002_v44  ;;  %1301 = vmatpush.bf16.msra.mxu0 %v4383_v42  ;;  %v4371_v44 = vld [vmem:[#allocation12 + $0x8] sm:$0xff] }
 0x1a6   :  { %v994_v34 = vadd.f32 %v993_v0, %v992_v37  ;;  %v1006_v43 = vrot.slane %v1005_v3, 4  ;;  %1320 = vmatpush.bf16.msra.mxu1 %v4391_v32  ;;  %v4387_v0 = vld [vmem:[#allocation12 + $0x88] sm:$0xff] }
 0x1a7   :  { %1283 = vmatpush.bf16.msrb.mxu3 %v4374_v9 }
 0x1a8   :  { %v995_v30 = vrot.slane %v994_v34, 2  ;;  %v1007_v13 = vadd.f32 %v1006_v43, %v1005_v3  ;;  %1302 = vmatpush.bf16.msra.mxu0 %v4382_v60  ;;  %v4378_v3 = vld [vmem:[#allocation12 + $0x40] sm:$0xff] }
 0x1a9   :  { %v4370_v43 = vld [vmem:[#allocation12] sm:$0xff] }
 0x1aa   :  { %v996_v4 = vadd.f32 %v995_v30, %v994_v34  ;;  %v1008_v2 = vrot.slane %v1007_v13, 2  ;;  %1321 = vmatpush.bf16.msra.mxu1 %v4390_v61 }
 0x1ab   :  { %1284 = vmatpush.bf16.msrb.mxu3 %v4373_v11 }
 0x1ac   :  { %v997_v29 = vrot.slane %v996_v4, 1  ;;  %v1009_v15 = vadd.f32 %v1008_v2, %v1007_v13  ;;  %1303 = vmatpush.bf16.msra.mxu0 %v4381_v62  ;;  %v4386_v13 = vld [vmem:[#allocation12 + $0x80] sm:$0xff] }
 0x1ae   :  { %v1010_v31 = vrot.slane %v1009_v15, 1  ;;  %v998_v50 = vadd.f32 %v997_v29, %v996_v4  ;;  %1322 = vmatpush.bf16.msra.mxu1 %v4389_v40 }
 0x1af   :  { %1285 = vmatpush.bf16.msrb.mxu3 %v4372_v25 }
 0x1b0   :  { %v1011_v49 = vadd.f32 %v1010_v31, %v1009_v15  ;;  %1304 = vmatpush.bf16.msra.mxu0 %v4380_v38 }
 0x1b2   :  { %v1012_v6 = vsel %vm405_vm2, %v998_v50, %v1011_v49  ;;  %1323 = vmatpush.bf16.msra.mxu1 %v4388_v53 }
 0x1b3   :  { %v1013_v46 = vpack.c.bf16 %v1012_v6, %v1012_v6  ;;  %1286 = vmatpush.bf16.msrb.mxu3 %v4371_v44 }
 0x1b4   :  { %1305 = vmatpush.bf16.msra.mxu0 %v4379_v8 }
 0x1b5   :  { %1022 = vmatmul.bf16.vlgmr.msrb.gmra.mxu2 %v1013_v46 }
 0x1b6   :  { %1324 = vmatpush.bf16.msra.mxu1 %v4387_v0 }
 0x1b7   :  { %1287 = vmatpush.bf16.msrb.mxu3 %v4370_v43 }
 0x1b8   :  { %1306 = vmatpush.bf16.msra.mxu0 %v4378_v3 }
 0x1ba   :  { %1325 = vmatpush.bf16.msra.mxu1 %v4386_v13 }
 0x238   :  { %v1023_v5 = vpop.f32.mrf.mxu2 }
 0x239   :  { %v1027_v37 = vmul.f32 %v1023_v5, %v1023_v5  ;;  %v1033_v6 = vperm.slane %v1023_v5, 0 }
 0x23b   :  { %v1029_v34 = vrot.slane %v1027_v37, 7  ;;  %v1034_v23 = vsub.f32 %v5467_v63, %v1033_v6  ;;  %v1035_v52 = vsub.f32 %v5463_v36, %v1033_v6  ;;  %v1036_v54 = vsub.f32 %v5469_v22, %v1033_v6 }
 0x23c   :  { %v1037_v28 = vsub.f32 %v5490_v26, %v1033_v6  ;;  %v4409_v6 = vld [vmem:[#allocation13 + $0x78] sm:$0xff] }
 0x23d   :  { %v1031_v30 = vsub.f32 %v1023_v5, %v1029_v34  ;;  %1809 = vmatpush.bf16.msrb.mxu0 %v4409_v6  ;;  %v4430_v6 = vld [vmem:[#allocation13 + $0x120] sm:$0xff] }
 0x23f   :  { %v1032_v4 = vmax.f32 %v1031_v30, 0.0 }
 0x240   :  { %v1025_v2 = vpop.f32.mrf.mxu2 }
 0x241   :  { %v1038_v29 = vadd.f32 1e-05, %v1032_v4 }
 0x243   :  { %4560 = vrsqrt.f32 %v1038_v29  ;;  %vm1045_vm11 = vweird.f32 %v1038_v29 }
 0x249   :  { %v4561_v15 = vpop.eup %4560 }
 0x24a   :  { %v1040_v31 = vmul.f32 %v4561_v15, %v1038_v29  ;;  %vm1046_vm10 = vweird.f32 %v4561_v15 }
 0x24b   :  { %vm1047_vm4 = vmor %vm1045_vm11, %vm1046_vm10  ;;  %vm1441_vm10 = vcmp.lt.s32.totalorder %v4995_v7, 6 }
 0x24c   :  { %v1041_v50 = vmul.f32 %v4561_v15, %v1040_v31 }
 0x24e   :  { %v1042_v49 = vmul.f32 0.5, %v1041_v50  ;;  %v4401_v50 = vld [vmem:[#allocation13 + $0x38] sm:$0xff] }
 0x24f   :  { %1790 = vmatpush.bf16.msra.mxu3 %v4401_v50  ;;  %v5552_v50 = vld [vmem:[#allocation9 + $0x30] sm:$0xff] }
 0x250   :  { %v1043_v46 = vsub.f32 1.5, %v1042_v49  ;;  %v4400_v49 = vld [vmem:[#allocation13 + $0x30] sm:$0xff] }
 0x252   :  { %v1044_v51 = vmul.f32 %v4561_v15, %v1043_v46  ;;  %v4399_v46 = vld [vmem:[#allocation13 + $0x28] sm:$0xff] }
 0x253   :  { %1791 = vmatpush.bf16.msra.mxu3 %v4400_v49  ;;  %v4424_v49 = vld [vmem:[#allocation13 + $0xf0] sm:$0xff] }
 0x254   :  { %v1048_v18 = vsel %vm1047_vm4, %v4561_v15, %v1044_v51  ;;  %v4417_v51 = vld [vmem:[#allocation13 + $0xb8] sm:$0xff] }
 0x255   :  { %v1049_v42 = vperm.slane %v1048_v18, 1  ;;  %1828 = vmatpush.bf16.msrb.mxu1 %v4417_v51  ;;  %v4398_v18 = vld [vmem:[#allocation13 + $0x20] sm:$0xff]  ;;  %v1419_v51 = vadd.s32 4294967294, %v5018_v17 }
 0x257   :  { %v1052_v1 = vmul.f32 %v1049_v42, %v1036_v54  ;;  %v1053_v32 = vmul.f32 %v1049_v42, %v1037_v28  ;;  %v1050_v60 = vmul.f32 %v1049_v42, %v1034_v23  ;;  %v1051_v9 = vmul.f32 %v1049_v42, %v1035_v52  ;;  %1792 = vmatpush.bf16.msra.mxu3 %v4399_v46  ;;  %v4408_v23 = vld [vmem:[#allocation13 + $0x70] sm:$0xff]  ;;  %v4407_v54 = vld [vmem:[#allocation13 + $0x68] sm:$0xff]  ;;  %v4397_v28 = vld [vmem:[#allocation13 + $0x18] sm:$0xff] }
 0x258   :  { %v4416_v52 = vld [vmem:[#allocation13 + $0xb0] sm:$0xff]  ;;  %1810 = vmatpush.bf16.msrb.mxu0 %v4408_v23  ;;  %v4415_v42 = vld [vmem:[#allocation13 + $0xa8] sm:$0xff]  ;;  %v1410_v46 = vrot.slane %v5300_v57, 6  ;;  %vm1423_vm8 = vcmp.ge.s32.totalorder %v1419_v51, 0 }
 0x259   :  { %v1056_v61 = vmax.f32 %v1052_v1, 0.0  ;;  %v1057_v62 = vmax.f32 %v1053_v32, 0.0  ;;  %v1054_v11 = vmax.f32 %v1050_v60, 0.0  ;;  %v1055_v40 = vmax.f32 %v1051_v9, 0.0  ;;  %1829 = vmatpush.bf16.msrb.mxu1 %v4416_v52  ;;  %v4406_v1 = vld [vmem:[#allocation13 + $0x60] sm:$0xff]  ;;  %v4396_v32 = vld [vmem:[#allocation13 + $0x10] sm:$0xff]  ;;  %vm5567_vm9 = vmpackc.low %vm5951_vm12, %vm1423_vm8 }
 0x25a   :  { %v4414_v60 = vld [vmem:[#allocation13 + $0xa0] sm:$0xff]  ;;  %v4405_v9 = vld [vmem:[#allocation13 + $0x58] sm:$0xff]  ;;  %v5607_v51 = vld [vmem:[#allocation9 + $0x8] sm:$0xff] }
 0x25b   :  { %v1070_v38 = vrot.slane %v1054_v11, 1  ;;  %v1071_v25 = vrot.slane %v1055_v40, 1  ;;  %v1131_v53 = vpack.c.bf16 %v1055_v40, %v1054_v11  ;;  %v1058_v63 = vrot.slane %v1054_v11, 7  ;;  %1793 = vmatpush.bf16.msra.mxu3 %v4398_v18  ;;  %v4404_v11 = vld [vmem:[#allocation13 + $0x50] sm:$0xff]  ;;  %v4423_v18 = vld [vmem:[#allocation13 + $0xe8] sm:$0xff] }
 0x25c   :  { %v1059_v8 = vrot.slane %v1055_v40, 7  ;;  %v1061_v5 = vrot.slane %v1057_v62, 7  ;;  %v1072_v36 = vrot.slane %v1056_v61, 1  ;;  %v1060_v34 = vrot.slane %v1056_v61, 7  ;;  %1811 = vmatpush.bf16.msrb.mxu0 %v4407_v54  ;;  %v4394_v40 = vld [vmem:[#allocation13] sm:$0xff] }
 0x25d   :  { %1307 = vmatmul.bf16.vlgmr.msra.gmra.mxu0 %v1131_v53  ;;  %v1076_v22 = vsel %vm321_vm3, %v1070_v38, %v1071_v25  ;;  %v1073_v43 = vrot.slane %v1057_v62, 1  ;;  %v1134_v30 = vpack.c.bf16 %v1057_v62, %v1056_v61  ;;  %1830 = vmatpush.bf16.msrb.mxu1 %v4415_v42  ;;  %v4395_v61 = vld [vmem:[#allocation13 + $0x8] sm:$0xff]  ;;  %v4413_v62 = vld [vmem:[#allocation13 + $0x98] sm:$0xff]  ;;  %v1409_v53 = vrot.slane %v5270_v41, 6 }
 0x25e   :  { %v1064_v26 = vsel %vm218_vm0, %v1058_v63, %v1059_v8  ;;  %v1065_v37 = vsel %vm218_vm0, %v1061_v5, %v1058_v63  ;;  %v1075_v44 = vsel %vm321_vm3, %v1071_v25, %v1072_v36  ;;  %v1062_v13 = vsel %vm218_vm0, %v1060_v34, %v1061_v5  ;;  %v4403_v5 = vld [vmem:[#allocation13 + $0x48] sm:$0xff] }
 0x25f   :  { %v3656_v0 = vpack.c.bf16 %v1064_v26, %v1065_v37  ;;  %v3662_v3 = vpack.c.bf16 %v1075_v44, %v1076_v22  ;;  %v1063_v4 = vsel %vm218_vm0, %v1059_v8, %v1060_v34  ;;  %v1074_v2 = vsel %vm321_vm3, %v1072_v36, %v1073_v43  ;;  %1794 = vmatpush.bf16.msra.mxu3 %v4397_v28  ;;  %v5563_v42 = vld [vmem:[#allocation9 + $0x28] sm:$0xff]  ;;  %v4581_v44 = vld [vmem:[#allocation9 + $0x30] sm:$0xff] }
 0x260   :  { %v1077_v29 = vsel %vm321_vm3, %v1073_v43, %v1070_v38  ;;  %v3659_v15 = vpack.c.bf16 %v1062_v13, %v1063_v4  ;;  %1812 = vmatpush.bf16.msrb.mxu0 %v4406_v1  ;;  %v4412_v38 = vld [vmem:[#allocation13 + $0x90] sm:$0xff]  ;;  %v1408_v25 = vrot.slane %v5267_v24, 6  ;;  %v1411_v63 = vrot.slane %v5273_v47, 6  ;;  %v4402_v43 = vld [vmem:[#allocation13 + $0x40] sm:$0xff]  ;;  %v4525_v1 = vld [vmem:[#allocation18 + $0xd8] sm:$0xff] }
 0x261   :  { %3657 = vmatmul.msk.bf16.vlgmr.msrb.gmra.mxu3 %vm5312_vm13, %v3656_v0  ;;  %3663 = vmatmul.msk.bf16.vlgmr.msra.gmra.mxu1 %vm5361_vm14, %v3662_v3  ;;  %v3665_v31 = vpack.c.bf16 %v1077_v29, %v1074_v2  ;;  %v1417_v8 = vadd.s32 4294967294, %v5000_v10  ;;  %v4411_v0 = vld [vmem:[#allocation13 + $0x88] sm:$0xff]  ;;  %v4433_v3 = vld [vmem:[#allocation13 + $0x138] sm:$0xff]  ;;  %v4432_v13 = vld [vmem:[#allocation13 + $0x130] sm:$0xff]  ;;  %v1414_v52 = vsel %vm1412_vm5, %v1409_v53, %v1410_v46 }
 0x262   :  { %1831 = vmatpush.bf16.msrb.mxu1 %v4414_v60  ;;  %v1415_v36 = vsel %vm1412_vm5, %v1408_v25, %v1409_v53  ;;  %v1416_v22 = vsel %vm1412_vm5, %v1411_v63, %v1408_v25  ;;  %v5545_v2 = vld [vmem:[#allocation9 + $0x38] sm:$0xff]  ;;  %v4422_v60 = vld [vmem:[#allocation13 + $0xe0] sm:$0xff] }
 0x263   :  { %1795 = vmatpush.bf16.msra.mxu3 %v4396_v32  ;;  %vm1421_vm6 = vcmp.ge.s32.totalorder %v1417_v8, 0  ;;  %v5533_v37 = vpack.c.bf16 %v1415_v36, %v1416_v22  ;;  %v4425_v29 = vld [vmem:[#allocation13 + $0xf8] sm:$0xff]  ;;  %v1437_v36 = vrot.slane %v5267_v24, 2  ;;  %v1438_v22 = vrot.slane %v5270_v41, 2 }
 0x264   :  { %1813 = vmatpush.bf16.msrb.mxu0 %v4405_v9  ;;  %vm5536_vm7 = vmpackc.low %vm5951_vm12, %vm1421_vm6  ;;  %1847 = vmatpush.bf16.msrb.mxu2 %v4425_v29  ;;  %v4429_v32 = vld [vmem:[#allocation13 + $0x118] sm:$0xff]  ;;  %v5574_v9 = vld [vmem:[#allocation9 + $0x20] sm:$0xff] }
 0x265   :  { %v4421_v53 = vld [vmem:[#allocation13 + $0xd8] sm:$0xff] }
 0x266   :  { %1832 = vmatpush.bf16.msrb.mxu1 %v4413_v62 }
 0x267   :  { %1796 = vmatpush.bf16.msra.mxu3 %v4395_v61  ;;  %v4428_v61 = vld [vmem:[#allocation13 + $0x110] sm:$0xff] }
 0x268   :  { %1814 = vmatpush.bf16.msrb.mxu0 %v4404_v11  ;;  %1848 = vmatpush.bf16.msrb.mxu2 %v4424_v49  ;;  %v4419_v49 = vld [vmem:[#allocation13 + $0xc8] sm:$0xff] }
 0x26a   :  { %1833 = vmatpush.bf16.msrb.mxu1 %v4412_v38 }
 0x26b   :  { %1797 = vmatpush.bf16.msra.mxu3 %v4394_v40 }
 0x26c   :  { %1815 = vmatpush.bf16.msrb.mxu0 %v4403_v5  ;;  %1849 = vmatpush.bf16.msrb.mxu2 %v4423_v18  ;;  %v4427_v5 = vld [vmem:[#allocation13 + $0x108] sm:$0xff] }
 0x26d   :  { %1312 = vmatmul.bf16.gmra.mxu0 %v1134_v30  ;;  %v4410_v30 = vld [vmem:[#allocation13 + $0x80] sm:$0xff] }
 0x26e   :  { %1834 = vmatpush.bf16.msrb.mxu1 %v4411_v0  ;;  %v1439_v0 = vrot.slane %v5300_v57, 2 }
 0x26f   :  { %1866 = vmatpush.bf16.msrb.mxu3 %v4433_v3 }
 0x270   :  { %1816 = vmatpush.bf16.msrb.mxu0 %v4402_v43  ;;  %1850 = vmatpush.bf16.msrb.mxu2 %v4422_v60  ;;  %v4420_v43 = vld [vmem:[#allocation13 + $0xd0] sm:$0xff]  ;;  %v1443_v29 = vsel %vm1441_vm10, %v1438_v22, %v1439_v0 }
 0x271   :  { %3660 = vmatmul.msk.bf16.gmra.mxu3 %vm5396_vm15, %v3659_v15  ;;  %3666 = vmatmul.msk.bf16.gmra.mxu1 %vm5419_vm1, %v3665_v31  ;;  %v4431_v15 = vld [vmem:[#allocation13 + $0x128] sm:$0xff] }
 0x272   :  { %1835 = vmatpush.bf16.msrb.mxu1 %v4410_v30  ;;  %v5591_v30 = vld [vmem:[#allocation9 + $0x10] sm:$0xff] }
 0x273   :  { %1867 = vmatpush.bf16.msrb.mxu3 %v4432_v13 }
 0x274   :  { %1909 = vmatpush.bf16.msra.mxu0 %v5545_v2  ;;  %1851 = vmatpush.bf16.msrb.mxu2 %v4421_v53 }
 0x277   :  { %1868 = vmatpush.bf16.msrb.mxu3 %v4431_v15  ;;  %v1444_v15 = vsel %vm1441_vm10, %v1437_v36, %v1438_v22 }
 0x278   :  { %1910 = vmatpush.bf16.msra.mxu0 %v5552_v50  ;;  %1852 = vmatpush.bf16.msrb.mxu2 %v4420_v43  ;;  %v1440_v43 = vrot.slane %v5273_v47, 2 }
 0x27b   :  { %1869 = vmatpush.bf16.msrb.mxu3 %v4430_v6 }
 0x27c   :  { %1911 = vmatpush.bf16.msra.mxu0 %v5563_v42  ;;  %1853 = vmatpush.bf16.msrb.mxu2 %v4419_v49 }
 0x27d   :  { %3836 = vmatmul.msk.bf16.vlgmr.msrb.gmra.mxu0 %vm5312_vm13, %v5297_v56  ;;  %v1413_v56 = vsel %vm1412_vm5, %v1410_v46, %v1411_v63  ;;  %v5577_v63 = vld [vmem:[#allocation9 + $0x18] sm:$0xff] }
 0x27e   :  { %v5561_v28 = vpack.c.bf16 %v1413_v56, %v1414_v52 }
 0x27f   :  { %1870 = vmatpush.bf16.msrb.mxu3 %v4429_v32 }
 0x280   :  { %1912 = vmatpush.bf16.msra.mxu0 %v5574_v9 }
 0x281   :  { %3830 = vmatmul.msk.bf16.vlgmr.msra.gmra.mxu3 %vm5536_vm7, %v5533_v37  ;;  %1836 = vmatmul.bf16.vlgmr.msrb.gmra.mxu1 %v5433_v27 }
 0x283   :  { %1871 = vmatpush.bf16.msrb.mxu3 %v4428_v61 }
 0x284   :  { %1913 = vmatpush.bf16.msra.mxu0 %v5577_v63 }
 0x287   :  { %1872 = vmatpush.bf16.msrb.mxu3 %v4427_v5 }
 0x288   :  { %1914 = vmatpush.bf16.msra.mxu0 %v5591_v30 }
 0x28c   :  { %1915 = vmatpush.bf16.msra.mxu0 %v5607_v51 }
 0x28d   :  { %3839 = vmatmul.msk.bf16.gmra.mxu0 %vm5396_vm15, %v5400_v59  ;;  %v4426_v59 = vld [vmem:[#allocation13 + $0x100] sm:$0xff] }
 0x28e   :  { %1873 = vmatpush.bf16.msrb.mxu3 %v4426_v59  ;;  %v1449_v59 = vadd.s32 2, %v5076_v45  ;;  %v1396_v45 = vstv %s3450_s16 }
 0x290   :  { %vm1457_vm6 = vcmp.lt.s32.totalorder %v1449_v59, 16 }
 0x291   :  { %3833 = vmatmul.msk.bf16.gmra.mxu3 %vm5567_vm9, %v5561_v28  ;;  %1841 = vmatmul.bf16.gmra.mxu1 %v5442_v19  ;;  %vm5642_vm8 = vmpackc.low %vm1457_vm6, %vm5951_vm12 }
 0x2da   :  { %v1308_v26 = vpop.f32.mrf.mxu0 }
 0x2de   :  { %v5540_v34 = vpop.f32.mrf.mxu1 }
 0x2e2   :  { %v1310_v31 = vpop.f32.mrf.mxu0 }
 0x2e4   :  { %v1289_v4 = vpop.f32.mrf.mxu3 }
 0x2e5   :  { %v1309_v40 = vadd.f32 %v1308_v26, %v1289_v4  ;;  %v1447_v26 = vadd.s32 2, %v5026_v21 }
 0x2e6   :  { %v1329_v23 = vpop.f32.mrf.mxu1 }
 0x2e7   :  { %v5595_v13 = vadd.f32 %v5540_v34, %v1309_v40  ;;  %vm1455_vm11 = vcmp.lt.s32.totalorder %v1447_v26, 16  ;;  %v5605_v34 = vpack.c.bf16 %v1443_v29, %v1444_v15  ;;  %v5627_v40 = vld [vmem:[#allocation9] sm:$0xff] }
 0x2e8   :  { %vm5617_vm4 = vmpackc.low %vm1455_vm11, %vm5951_vm12  ;;  %1916 = vmatpush.bf16.msra.mxu0 %v5627_v40 }
 0x2e9   :  { %3848 = vmatmul.msk.bf16.vlgmr.msrb.gmra.mxu3 %vm5617_vm4, %v5605_v34 }
 0x2ea   :  { %v1313_v62 = vpop.f32.mrf.mxu0 }
 0x2ec   :  { %v1291_v54 = vpop.f32.mrf.mxu3 }
 0x2ed   :  { %v1311_v11 = vadd.f32 %v1310_v31, %v1291_v54 }
 0x2ee   :  { %v1332_v38 = vpop.f32.mrf.mxu1 }
 0x2ef   :  { %v5588_v3 = vadd.f32 %v1329_v23, %v1311_v11  ;;  %v1346_v23 = vmul.f32 %v5595_v13, %v5595_v13  ;;  %v4418_v11 = vld [vmem:[#allocation13 + $0xc0] sm:$0xff] }
 0x2f0   :  { %1854 = vmatpush.bf16.msrb.mxu2 %v4418_v11 }
 0x2f1   :  { %v1347_v31 = vmul.f32 %v5588_v3, %v5588_v3  ;;  %v1337_v18 = vadd.f32 %v5588_v3, %v5595_v13 }
 0x2f2   :  { %v1315_v6 = vpop.f32.mrf.mxu0 }
 0x2f3   :  { %v1350_v60 = vadd.f32 %v1347_v31, %v1346_v23 }
 0x2f4   :  { %v1294_v25 = vpop.f32.mrf.mxu3 }
 0x2f5   :  { %v1314_v8 = vadd.f32 %v1313_v62, %v1294_v25 }
 0x2f6   :  { %v1334_v32 = vpop.f32.mrf.mxu1 }
 0x2f7   :  { %v5597_v4 = vadd.f32 %v1332_v38, %v1314_v8 }
 0x2f9   :  { %v1348_v56 = vmul.f32 %v5597_v4, %v5597_v4  ;;  %v1338_v61 = vadd.f32 %v1337_v18, %v5597_v4 }
 0x2fb   :  { %v1351_v38 = vadd.f32 %v1350_v60, %v1348_v56 }
 0x2fc   :  { %v1296_v46 = vpop.f32.mrf.mxu3 }
 0x2fd   :  { %v1316_v52 = vadd.f32 %v1315_v6, %v1296_v46  ;;  %v1442_v6 = vsel %vm1441_vm10, %v1439_v0, %v1440_v43  ;;  %v1445_v46 = vsel %vm1441_vm10, %v1440_v43, %v1437_v36 }
 0x2fe   :  { %v5639_v56 = vpack.c.bf16 %v1445_v46, %v1442_v6  ;;  %v1837_v59 = vpop.f32.mrf.mxu1 }
 0x2ff   :  { %v5622_v62 = vadd.f32 %v1334_v32, %v1316_v52 }
 0x300   :  { %3851 = vmatmul.msk.bf16.gmra.mxu3 %vm5642_vm8, %v5639_v56 }
 0x301   :  { %v1339_v25 = vadd.f32 %v1338_v61, %v5622_v62  ;;  %v1349_v53 = vmul.f32 %v5622_v62, %v5622_v62 }
 0x303   :  { %v1340_v8 = vrot.slane %v1339_v25, 4  ;;  %v1352_v5 = vadd.f32 %v1351_v38, %v1349_v53 }
 0x304   :  { %v1799_v11 = vpop.f32.mrf.mxu3 }
 0x305   :  { %v1341_v22 = vadd.f32 %v1340_v8, %v1339_v25  ;;  %v1353_v26 = vrot.slane %v1352_v5, 4  ;;  %v1818_v8 = vpop.f32.mrf.mxu0 }
 0x306   :  { %v1839_v6 = vpop.f32.mrf.mxu1 }
 0x307   :  { %v1342_v29 = vrot.slane %v1341_v22, 2  ;;  %v1354_v15 = vadd.f32 %v1353_v26, %v1352_v5 }
 0x309   :  { %v1343_v31 = vadd.f32 %v1342_v29, %v1341_v22  ;;  %v1355_v49 = vrot.slane %v1354_v15, 2 }
 0x30b   :  { %v1344_v23 = vrot.slane %v1343_v31, 1  ;;  %v1356_v18 = vadd.f32 %v1355_v49, %v1354_v15 }
 0x30c   :  { %v1801_v38 = vpop.f32.mrf.mxu3 }
 0x30d   :  { %v1357_v52 = vrot.slane %v1356_v18, 1  ;;  %v1345_v60 = vadd.f32 %v1344_v23, %v1343_v31  ;;  %v1820_v49 = vpop.f32.mrf.mxu0 }
 0x30f   :  { %v1358_v61 = vadd.f32 %v1357_v52, %v1356_v18 }
 0x311   :  { %v1359_v0 = vsel %vm405_vm2, %v1345_v60, %v1358_v61 }
 0x312   :  { %v1360_v36 = vpack.c.bf16 %v1359_v0, %v1359_v0  ;;  %v1821_v0 = vadd.f32 %v1820_v49, %v1801_v38 }
 0x314   :  { %1369 = vmatmul.bf16.vlgmr.msra.gmra.mxu2 %v1360_v36  ;;  %v1804_v25 = vpop.f32.mrf.mxu3  ;;  %v1840_v21 = vadd.f32 %v1839_v6, %v1821_v0 }
 0x315   :  { %v1823_v52 = vpop.f32.mrf.mxu0 }
 0x316   :  { %v1824_v17 = vadd.f32 %v1823_v52, %v1804_v25 }
 0x31c   :  { %v1806_v22 = vpop.f32.mrf.mxu3 }
 0x324   :  { %3842 = vmatmul.msk.bf16.vlgmr.msrb.gmra.mxu2 %vm5361_vm14, %v5351_v33 }
 0x334   :  { %3845 = vmatmul.msk.bf16.gmra.mxu2 %vm5419_vm1, %v5414_v48 }
 0x36c   :  { %v1875_v33 = vpop.f32.mrf.mxu3 }
 0x374   :  { %v1877_v61 = vpop.f32.mrf.mxu3 }
 0x397   :  { %v1370_v53 = vpop.f32.mrf.mxu2 }
 0x398   :  { %v1374_v5 = vmul.f32 %v1370_v53, %v1370_v53 }
 0x39a   :  { %v1376_v26 = vrot.slane %v1374_v5, 7 }
 0x39c   :  { %v1378_v43 = vsub.f32 %v1370_v53, %v1376_v26  ;;  %v1819_v26 = vadd.f32 %v1818_v8, %v1799_v11 }
 0x39e   :  { %v1379_v29 = vmax.f32 %v1378_v43, 0.0  ;;  %v1842_v43 = vpop.f32.mrf.mxu1  ;;  %v1838_v47 = vadd.f32 %v1837_v59, %v1819_v26 }
 0x39f   :  { %v1372_v15 = vpop.f32.mrf.mxu2 }
 0x3a0   :  { %v1385_v31 = vadd.f32 1e-05, %v1379_v29  ;;  %v1380_v15 = vperm.slane %v1370_v53, 0  ;;  %v1825_v53 = vpop.f32.mrf.mxu0 }
 0x3a2   :  { %4562 = vrsqrt.f32 %v1385_v31  ;;  %vm1392_vm6 = vweird.f32 %v1385_v31  ;;  %v1382_v38 = vsub.f32 %v5588_v3, %v1380_v15  ;;  %v1383_v49 = vsub.f32 %v5597_v4, %v1380_v15 }
 0x3a3   :  { %v1384_v11 = vsub.f32 %v5622_v62, %v1380_v15 }
 0x3a7   :  { %v1856_v46 = vpop.f32.mrf.mxu2 }
 0x3a8   :  { %v4563_v23 = vpop.eup %4562 }
 0x3a9   :  { %v1387_v48 = vmul.f32 %v4563_v23, %v1385_v31  ;;  %vm1393_vm11 = vweird.f32 %v4563_v23  ;;  %v1857_v31 = vadd.f32 %v1856_v46, %v1838_v47  ;;  %v1844_v47 = vpop.f32.mrf.mxu1 }
 0x3aa   :  { %vm1394_vm12 = vmor %vm1392_vm6, %vm1393_vm11 }
 0x3ab   :  { %v1388_v18 = vmul.f32 %v4563_v23, %v1387_v48  ;;  %v1381_v48 = vsub.f32 %v5595_v13, %v1380_v15  ;;  %v5674_v4 = vadd.f32 %v1875_v33, %v1857_v31 }
 0x3ad   :  { %v1389_v60 = vmul.f32 0.5, %v1388_v18 }
 0x3af   :  { %v1390_v36 = vsub.f32 1.5, %v1389_v60  ;;  %v1858_v5 = vpop.f32.mrf.mxu2  ;;  %v1843_v60 = vadd.f32 %v1842_v43, %v1824_v17 }
 0x3b0   :  { %v1859_v18 = vadd.f32 %v1858_v5, %v1840_v21 }
 0x3b1   :  { %v1391_v29 = vmul.f32 %v4563_v23, %v1390_v36  ;;  %v1880_v36 = vpop.f32.mrf.mxu3 }
 0x3b2   :  { %v5660_v59 = vadd.f32 %v1877_v61, %v1859_v18 }
 0x3b3   :  { %v1395_v57 = vsel %vm1394_vm12, %v4563_v23, %v1391_v29 }
 0x3b4   :  { %v1397_v10 = vmul.f32 %v1396_v45, %v1395_v57  ;;  %v1826_v57 = vadd.f32 %v1825_v53, %v1806_v22 }
 0x3b6   :  { %v1398_v8 = vperm.slane %v1397_v10, 1  ;;  %v1845_v22 = vadd.f32 %v1844_v47, %v1826_v57  ;;  %v4441_v57 = vld [vmem:[#allocation15 + $0x38] sm:$0xff] }
 0x3b7   :  { %v1861_v41 = vpop.f32.mrf.mxu2  ;;  %v4465_v47 = vld [vmem:[#allocation15 + $0xf8] sm:$0xff]  ;;  %2331 = vmatpush.bf16.msra.mxu1 %v4441_v57  ;;  %v4442_v57 = vld [vmem:[#allocation15 + $0x40] sm:$0xff] }
 0x3b8   :  { %v1399_v6 = vmul.f32 %v1398_v8, %v1381_v48  ;;  %v1400_v25 = vmul.f32 %v1398_v8, %v1382_v38  ;;  %v1401_v23 = vmul.f32 %v1398_v8, %v1383_v49  ;;  %v1402_v45 = vmul.f32 %v1398_v8, %v1384_v11  ;;  %2388 = vmatpush.bf16.msrb.mxu0 %v4465_v47  ;;  %v4458_v47 = vld [vmem:[#allocation15 + $0xc0] sm:$0xff] }
 0x3b9   :  { %v1862_v21 = vadd.f32 %v1861_v41, %v1843_v60  ;;  %v1895_v41 = vmul.f32 %v5660_v59, %v5660_v59  ;;  %v1882_v52 = vpop.f32.mrf.mxu3 }
 0x3ba   :  { %v5663_v3 = vadd.f32 %v1399_v6, %v5481_v35  ;;  %v5666_v13 = vadd.f32 %v1400_v25, %v5483_v14  ;;  %v5669_v10 = vadd.f32 %v1401_v23, %v5485_v20  ;;  %v5672_v17 = vadd.f32 %v1402_v45, %v5487_v39  ;;  %v4457_v45 = vld [vmem:[#allocation15 + $0xb8] sm:$0xff] }
 0x3bb   :  { %v5676_v62 = vadd.f32 %v1880_v36, %v1862_v21  ;;  %v1894_v14 = vmul.f32 %v5674_v4, %v5674_v4  ;;  %v1885_v20 = vadd.f32 %v5660_v59, %v5674_v4  ;;  %2369 = vmatpush.bf16.msra.mxu3 %v4457_v45  ;;  %v4449_v21 = vld [vmem:[#allocation15 + $0x78] sm:$0xff]  ;;  %v4434_v45 = vld [vmem:[#allocation15] sm:$0xff] }
 0x3bc   :  { %2350 = vmatpush.bf16.msra.mxu2 %v4449_v21 }
 0x3bd   :  { %v1896_v39 = vmul.f32 %v5676_v62, %v5676_v62  ;;  %v1898_v33 = vadd.f32 %v1895_v41, %v1894_v14  ;;  %v1886_v61 = vadd.f32 %v1885_v20, %v5676_v62  ;;  %v4440_v41 = vld [vmem:[#allocation15 + $0x30] sm:$0xff]  ;;  %v4455_v20 = vld [vmem:[#allocation15 + $0xa8] sm:$0xff] }
 0x3be   :  { %v4464_v14 = vld [vmem:[#allocation15 + $0xf0] sm:$0xff]  ;;  %2332 = vmatpush.bf16.msra.mxu1 %v4440_v41 }
 0x3bf   :  { %v1863_v35 = vpop.f32.mrf.mxu2  ;;  %v1899_v5 = vadd.f32 %v1898_v33, %v1896_v39  ;;  %2389 = vmatpush.bf16.msrb.mxu0 %v4464_v14  ;;  %v4439_v39 = vld [vmem:[#allocation15 + $0x28] sm:$0xff]  ;;  %v4454_v33 = vld [vmem:[#allocation15 + $0xa0] sm:$0xff]  ;;  %v4473_v14 = vld [vmem:[#allocation15 + $0x138] sm:$0xff] }
 0x3c0   :  { %v1864_v46 = vadd.f32 %v1863_v35, %v1845_v22  ;;  %v4456_v22 = vld [vmem:[#allocation15 + $0xb0] sm:$0xff] }
 0x3c1   :  { %2370 = vmatpush.bf16.msra.mxu3 %v4456_v22  ;;  %v4448_v35 = vld [vmem:[#allocation15 + $0x70] sm:$0xff] }
 0x3c2   :  { %v5687_v0 = vadd.f32 %v1882_v52, %v1864_v46  ;;  %2351 = vmatpush.bf16.msra.mxu2 %v4448_v35  ;;  %v4447_v46 = vld [vmem:[#allocation15 + $0x68] sm:$0xff]  ;;  %2333 = vmatpush.bf16.msra.mxu1 %v4439_v39 }
 0x3c3   :  { %v4463_v52 = vld [vmem:[#allocation15 + $0xe8] sm:$0xff] }
 0x3c4   :  { %v1887_v26 = vadd.f32 %v1886_v61, %v5687_v0  ;;  %v1897_v43 = vmul.f32 %v5687_v0, %v5687_v0  ;;  %2390 = vmatpush.bf16.msrb.mxu0 %v4463_v52  ;;  %v4438_v61 = vld [vmem:[#allocation15 + $0x20] sm:$0xff]  ;;  %v4471_v39 = vld [vmem:[#allocation15 + $0x128] sm:$0xff] }
 0x3c5   :  { %2371 = vmatpush.bf16.msra.mxu3 %v4455_v20  ;;  %v4472_v20 = vld [vmem:[#allocation15 + $0x130] sm:$0xff] }
 0x3c6   :  { %v1888_v15 = vrot.slane %v1887_v26, 4  ;;  %v1900_v29 = vadd.f32 %v1899_v5, %v1897_v43  ;;  %2352 = vmatpush.bf16.msra.mxu2 %v4447_v46  ;;  %v4446_v5 = vld [vmem:[#allocation15 + $0x60] sm:$0xff]  ;;  %v4453_v43 = vld [vmem:[#allocation15 + $0x98] sm:$0xff]  ;;  %2334 = vmatpush.bf16.msra.mxu1 %v4438_v61 }
 0x3c8   :  { %v1889_v48 = vadd.f32 %v1888_v15, %v1887_v26  ;;  %v1901_v18 = vrot.slane %v1900_v29, 4  ;;  %v4462_v26 = vld [vmem:[#allocation15 + $0xe0] sm:$0xff]  ;;  %v4437_v15 = vld [vmem:[#allocation15 + $0x18] sm:$0xff] }
 0x3c9   :  { %2372 = vmatpush.bf16.msra.mxu3 %v4454_v33  ;;  %2391 = vmatpush.bf16.msrb.mxu0 %v4462_v26  ;;  %v4470_v33 = vld [vmem:[#allocation15 + $0x120] sm:$0xff] }
 0x3ca   :  { %v1890_v38 = vrot.slane %v1889_v48, 2  ;;  %v1902_v49 = vadd.f32 %v1901_v18, %v1900_v29  ;;  %2353 = vmatpush.bf16.msra.mxu2 %v4446_v5  ;;  %v4445_v29 = vld [vmem:[#allocation15 + $0x58] sm:$0xff]  ;;  %v4452_v18 = vld [vmem:[#allocation15 + $0x90] sm:$0xff]  ;;  %2335 = vmatpush.bf16.msra.mxu1 %v4437_v15 }
 0x3cc   :  { %v1891_v11 = vadd.f32 %v1890_v38, %v1889_v48  ;;  %v1903_v8 = vrot.slane %v1902_v49, 2  ;;  %v4461_v48 = vld [vmem:[#allocation15 + $0xd8] sm:$0xff]  ;;  %v4436_v38 = vld [vmem:[#allocation15 + $0x10] sm:$0xff] }
 0x3cd   :  { %2373 = vmatpush.bf16.msra.mxu3 %v4453_v43  ;;  %2392 = vmatpush.bf16.msrb.mxu0 %v4461_v48  ;;  %v4481_v48 = vld [vmem:[#allocation16 + $0x38] sm:$0xff] }
 0x3ce   :  { %v1892_v53 = vrot.slane %v1891_v11, 1  ;;  %v1904_v60 = vadd.f32 %v1903_v8, %v1902_v49  ;;  %2354 = vmatpush.bf16.msra.mxu2 %v4445_v29  ;;  %v4444_v49 = vld [vmem:[#allocation15 + $0x50] sm:$0xff]  ;;  %v4451_v8 = vld [vmem:[#allocation15 + $0x88] sm:$0xff]  ;;  %2336 = vmatpush.bf16.msra.mxu1 %v4436_v38  ;;  %v4469_v29 = vld [vmem:[#allocation15 + $0x118] sm:$0xff] }
 0x3d0   :  { %v1905_v31 = vrot.slane %v1904_v60, 1  ;;  %v1893_v36 = vadd.f32 %v1892_v53, %v1891_v11  ;;  %v4460_v11 = vld [vmem:[#allocation15 + $0xd0] sm:$0xff] }
 0x3d1   :  { %2374 = vmatpush.bf16.msra.mxu3 %v4452_v18  ;;  %2393 = vmatpush.bf16.msrb.mxu0 %v4460_v11  ;;  %v4489_v18 = vld [vmem:[#allocation16 + $0x78] sm:$0xff]  ;;  %v4468_v11 = vld [vmem:[#allocation15 + $0x110] sm:$0xff] }
 0x3d2   :  { %v1906_v6 = vadd.f32 %v1905_v31, %v1904_v60  ;;  %2355 = vmatpush.bf16.msra.mxu2 %v4444_v49  ;;  %v4435_v31 = vld [vmem:[#allocation15 + $0x8] sm:$0xff] }
 0x3d3   :  { %2337 = vmatpush.bf16.msra.mxu1 %v4435_v31 }
 0x3d4   :  { %v1907_v25 = vsel %vm405_vm2, %v1893_v36, %v1906_v6  ;;  %v4443_v36 = vld [vmem:[#allocation15 + $0x48] sm:$0xff] }
 0x3d5   :  { %v1908_v23 = vpack.c.bf16 %v1907_v25, %v1907_v25  ;;  %2375 = vmatpush.bf16.msra.mxu3 %v4451_v8  ;;  %v4459_v6 = vld [vmem:[#allocation15 + $0xc8] sm:$0xff]  ;;  %v4450_v25 = vld [vmem:[#allocation15 + $0x80] sm:$0xff]  ;;  %v4480_v8 = vld [vmem:[#allocation16 + $0x30] sm:$0xff] }
 0x3d6   :  { %2356 = vmatpush.bf16.msra.mxu2 %v4443_v36  ;;  %2394 = vmatpush.bf16.msrb.mxu0 %v4459_v6  ;;  %v4488_v6 = vld [vmem:[#allocation16 + $0x70] sm:$0xff] }
 0x3d7   :  { %1917 = vmatmul.bf16.vlgmr.msra.gmra.mxu0 %v1908_v23  ;;  %2338 = vmatpush.bf16.msra.mxu1 %v4434_v45 }
 0x3d9   :  { %2376 = vmatpush.bf16.msra.mxu3 %v4450_v25 }
 0x3da   :  { %2357 = vmatpush.bf16.msra.mxu2 %v4442_v57  ;;  %2395 = vmatpush.bf16.msrb.mxu0 %v4458_v47  ;;  %v4467_v57 = vld [vmem:[#allocation15 + $0x108] sm:$0xff] }
 0x3db   :  { %2407 = vmatpush.bf16.msrb.mxu1 %v4473_v14 }
 0x3dd   :  { %2689 = vmatpush.bf16.msrb.mxu3 %v4481_v48 }
 0x3de   :  { %2450 = vmatpush.bf16.msrb.mxu2 %v5545_v2  ;;  %2708 = vmatpush.bf16.msra.mxu0 %v4489_v18 }
 0x3df   :  { %2408 = vmatpush.bf16.msrb.mxu1 %v4472_v20 }
 0x3e1   :  { %2690 = vmatpush.bf16.msrb.mxu3 %v4480_v8 }
 0x3e2   :  { %2451 = vmatpush.bf16.msrb.mxu2 %v5552_v50  ;;  %2709 = vmatpush.bf16.msra.mxu0 %v4488_v6  ;;  %v4496_v6 = vld [vmem:[#allocation16 + $0xb0] sm:$0xff] }
 0x3e3   :  { %2409 = vmatpush.bf16.msrb.mxu1 %v4471_v39 }
 0x3e6   :  { %2452 = vmatpush.bf16.msrb.mxu2 %v5563_v42 }
 0x3e7   :  { %2410 = vmatpush.bf16.msrb.mxu1 %v4470_v33 }
 0x3ea   :  { %2453 = vmatpush.bf16.msrb.mxu2 %v5574_v9 }
 0x3eb   :  { %2411 = vmatpush.bf16.msrb.mxu1 %v4469_v29  ;;  %v4466_v29 = vld [vmem:[#allocation15 + $0x100] sm:$0xff] }
 0x3ee   :  { %2454 = vmatpush.bf16.msrb.mxu2 %v5577_v63 }
 0x3ef   :  { %2412 = vmatpush.bf16.msrb.mxu1 %v4468_v11 }
 0x3f2   :  { %2455 = vmatpush.bf16.msrb.mxu2 %v5591_v30 }
 0x3f3   :  { %2413 = vmatpush.bf16.msrb.mxu1 %v4467_v57 }
 0x3f6   :  { %2456 = vmatpush.bf16.msrb.mxu2 %v5607_v51 }
 0x3f7   :  { %2414 = vmatpush.bf16.msrb.mxu1 %v4466_v29 }
 0x3fa   :  { %2457 = vmatpush.bf16.msrb.mxu2 %v5627_v40 }
 0x454   :  { %v1918_v53 = vpop.f32.mrf.mxu0 }
 0x455   :  { %v1922_v60 = vmul.f32 %v1918_v53, %v1918_v53  ;;  %v1928_v26 = vperm.slane %v1918_v53, 0 }
 0x457   :  { %v1924_v23 = vrot.slane %v1922_v60, 7  ;;  %v1929_v38 = vsub.f32 %v5674_v4, %v1928_v26  ;;  %v1930_v60 = vsub.f32 %v5660_v59, %v1928_v26  ;;  %v1932_v31 = vsub.f32 %v5687_v0, %v1928_v26 }
 0x459   :  { %v1926_v21 = vsub.f32 %v1918_v53, %v1924_v23  ;;  %v1931_v53 = vsub.f32 %v5676_v62, %v1928_v26 }
 0x45b   :  { %v1927_v22 = vmax.f32 %v1926_v21, 0.0  ;;  %v4479_v21 = vld [vmem:[#allocation16 + $0x28] sm:$0xff] }
 0x45c   :  { %v1920_v41 = vpop.f32.mrf.mxu0  ;;  %2691 = vmatpush.bf16.msrb.mxu3 %v4479_v21  ;;  %v4484_v21 = vld [vmem:[#allocation16 + $0x50] sm:$0xff] }
 0x45d   :  { %v1933_v35 = vadd.f32 1e-05, %v1927_v22  ;;  %v4487_v22 = vld [vmem:[#allocation16 + $0x68] sm:$0xff] }
 0x45e   :  { %2710 = vmatpush.bf16.msra.mxu0 %v4487_v22 }
 0x45f   :  { %4564 = vrsqrt.f32 %v1933_v35  ;;  %vm1940_vm11 = vweird.f32 %v1933_v35 }
 0x465   :  { %v4565_v46 = vpop.eup %4564 }
 0x466   :  { %v1935_v52 = vmul.f32 %v4565_v46, %v1933_v35  ;;  %vm1941_vm12 = vweird.f32 %v4565_v46 }
 0x467   :  { %vm1942_vm6 = vmor %vm1940_vm11, %vm1941_vm12 }
 0x468   :  { %v1936_v61 = vmul.f32 %v4565_v46, %v1935_v52 }
 0x46a   :  { %v1937_v5 = vmul.f32 0.5, %v1936_v61  ;;  %v4478_v61 = vld [vmem:[#allocation16 + $0x20] sm:$0xff] }
 0x46b   :  { %2692 = vmatpush.bf16.msrb.mxu3 %v4478_v61 }
 0x46c   :  { %v1938_v43 = vsub.f32 1.5, %v1937_v5 }
 0x46e   :  { %v1939_v15 = vmul.f32 %v4565_v46, %v1938_v43 }
 0x470   :  { %v1943_v49 = vsel %vm1942_vm6, %v4565_v46, %v1939_v15 }
 0x471   :  { %v1944_v36 = vperm.slane %v1943_v49, 1 }
 0x473   :  { %v1945_v25 = vmul.f32 %v1944_v36, %v1929_v38  ;;  %v1946_v23 = vmul.f32 %v1944_v36, %v1930_v60  ;;  %v1947_v45 = vmul.f32 %v1944_v36, %v1931_v53  ;;  %v1948_v4 = vmul.f32 %v1944_v36, %v1932_v31  ;;  %v4497_v53 = vld [vmem:[#allocation16 + $0xb8] sm:$0xff]  ;;  %v4486_v36 = vld [vmem:[#allocation16 + $0x60] sm:$0xff] }
 0x474   :  { %v4477_v31 = vld [vmem:[#allocation16 + $0x18] sm:$0xff]  ;;  %2711 = vmatpush.bf16.msra.mxu0 %v4486_v36 }
 0x475   :  { %v5703_v47 = vmax.f32 %v1945_v25, 0.0  ;;  %v5705_v59 = vmax.f32 %v1946_v23, 0.0  ;;  %v5707_v62 = vmax.f32 %v1947_v45, 0.0  ;;  %v5709_v0 = vmax.f32 %v1948_v4, 0.0  ;;  %2693 = vmatpush.bf16.msrb.mxu3 %v4477_v31  ;;  %v4476_v25 = vld [vmem:[#allocation16 + $0x10] sm:$0xff]  ;;  %v4485_v23 = vld [vmem:[#allocation16 + $0x58] sm:$0xff] }
 0x476   :  { %v4495_v4 = vld [vmem:[#allocation16 + $0xa8] sm:$0xff] }
 0x477   :  { %v2083_v41 = vpack.c.bf16 %v5705_v59, %v5703_v47  ;;  %v1953_v35 = vrot.slane %v5703_v47, 6  ;;  %v1954_v14 = vrot.slane %v5705_v59, 6  ;;  %v1956_v20 = vrot.slane %v5709_v0, 6 }
 0x478   :  { %v1965_v39 = vrot.slane %v5703_v47, 7  ;;  %v1966_v46 = vrot.slane %v5705_v59, 7  ;;  %v1968_v52 = vrot.slane %v5709_v0, 7  ;;  %v1977_v33 = vrot.slane %v5703_v47, 1  ;;  %2712 = vmatpush.bf16.msra.mxu0 %v4485_v23 }
 0x479   :  { %2377 = vmatmul.bf16.vlgmr.msra.gmra.mxu3 %v2083_v41  ;;  %v1959_v5 = vsel %vm1412_vm5, %v1953_v35, %v1954_v14  ;;  %v1960_v26 = vsel %vm1412_vm5, %v1956_v20, %v1953_v35  ;;  %v1978_v43 = vrot.slane %v5705_v59, 1  ;;  %v1979_v15 = vrot.slane %v5707_v62, 1  ;;  %v4494_v35 = vld [vmem:[#allocation16 + $0xa0] sm:$0xff] }
 0x47a   :  { %v4013_v48 = vpack.c.bf16 %v1959_v5, %v1960_v26  ;;  %v1971_v18 = vsel %vm218_vm0, %v1965_v39, %v1966_v46  ;;  %v1972_v38 = vsel %vm218_vm0, %v1968_v52, %v1965_v39  ;;  %v1955_v45 = vrot.slane %v5707_v62, 6  ;;  %2694 = vmatpush.bf16.msrb.mxu3 %v4476_v25  ;;  %v4483_v26 = vld [vmem:[#allocation16 + $0x48] sm:$0xff] }
 0x47b   :  { %v4019_v49 = vpack.c.bf16 %v1971_v18, %v1972_v38  ;;  %v1982_v11 = vsel %vm321_vm3, %v1978_v43, %v1979_v15  ;;  %v1983_v8 = vsel %vm321_vm3, %v1977_v33, %v1978_v43  ;;  %v1967_v57 = vrot.slane %v5707_v62, 7  ;;  %v4490_v18 = vld [vmem:[#allocation16 + $0x80] sm:$0xff] }
 0x47c   :  { %4014 = vmatmul.msk.bf16.vlgmr.msra.gmra.mxu1 %vm5536_vm7, %v4013_v48  ;;  %v4025_v60 = vpack.c.bf16 %v1982_v11, %v1983_v8  ;;  %v1980_v58 = vrot.slane %v5709_v0, 1  ;;  %v2088_v22 = vpack.c.bf16 %v5709_v0, %v5707_v62  ;;  %v1958_v41 = vsel %vm1412_vm5, %v1954_v14, %v1955_v45  ;;  %2713 = vmatpush.bf16.msra.mxu0 %v4484_v21  ;;  %v4503_v21 = vld [vmem:[#allocation18 + $0x28] sm:$0xff] }
 0x47d   :  { %4020 = vmatmul.msk.bf16.vlgmr.msra.gmra.mxu2 %vm5312_vm13, %v4019_v49  ;;  %2727 = vmatpush.bf16.msra.mxu1 %v4497_v53  ;;  %v1969_v39 = vsel %vm218_vm0, %v1967_v57, %v1968_v52  ;;  %v1970_v61 = vsel %vm218_vm0, %v1966_v46, %v1967_v57  ;;  %v4493_v52 = vld [vmem:[#allocation16 + $0x98] sm:$0xff]  ;;  %v1990_v29 = vrot.slane %v5705_v59, 2  ;;  %v1991_v48 = vrot.slane %v5707_v62, 2 }
 0x47e   :  { %4026 = vmatmul.msk.bf16.vlgmr.msrb.gmra.mxu0 %vm5361_vm14, %v4025_v60  ;;  %2770 = vmatpush.bf16.msra.mxu2 %v5545_v2  ;;  %v1957_v2 = vsel %vm1412_vm5, %v1955_v45, %v1956_v20  ;;  %v1981_v5 = vsel %vm321_vm3, %v1979_v15, %v1980_v58  ;;  %v1984_v20 = vsel %vm321_vm3, %v1980_v58, %v1977_v33  ;;  %v4482_v15 = vld [vmem:[#allocation16 + $0x40] sm:$0xff]  ;;  %v1989_v33 = vrot.slane %v5703_v47, 2  ;;  %v4513_v57 = vld [vmem:[#allocation18 + $0x78] sm:$0xff] }
 0x47f   :  { %2695 = vmatpush.bf16.msrb.mxu3 %v4475_v12  ;;  %v4016_v14 = vpack.c.bf16 %v1957_v2, %v1958_v41  ;;  %v4022_v43 = vpack.c.bf16 %v1969_v39, %v1970_v61  ;;  %v4028_v46 = vpack.c.bf16 %v1984_v20, %v1981_v5  ;;  %v1994_v16 = vsel %vm1441_vm10, %v1990_v29, %v1991_v48  ;;  %v4521_v58 = vld [vmem:[#allocation18 + $0xb8] sm:$0xff]  ;;  %v4512_v2 = vld [vmem:[#allocation18 + $0x70] sm:$0xff]  ;;  %v4502_v61 = vld [vmem:[#allocation18 + $0x20] sm:$0xff] }
 0x480   :  { %2714 = vmatpush.bf16.msra.mxu0 %v4483_v26  ;;  %v4520_v39 = vld [vmem:[#allocation18 + $0xb0] sm:$0xff]  ;;  %v4511_v20 = vld [vmem:[#allocation18 + $0x68] sm:$0xff]  ;;  %vm2821_vm0 = vcmp.lt.s32.totalorder %v4995_v7, 4  ;;  %vm5987_vm13 = vmmov 1  }
 0x481   :  { %2728 = vmatpush.bf16.msra.mxu1 %v4496_v6  ;;  %v4505_v6 = vld [vmem:[#allocation18 + $0x38] sm:$0xff] }
 0x482   :  { %2771 = vmatpush.bf16.msra.mxu2 %v5552_v50  ;;  %v4474_v50 = vld [vmem:[#allocation16] sm:$0xff] }
 0x483   :  { %2696 = vmatpush.bf16.msrb.mxu3 %v4474_v50 }
 0x484   :  { %2715 = vmatpush.bf16.msra.mxu0 %v4482_v15  ;;  %v4501_v15 = vld [vmem:[#allocation18 + $0x18] sm:$0xff] }
 0x485   :  { %2729 = vmatpush.bf16.msra.mxu1 %v4495_v4  ;;  %v4504_v4 = vld [vmem:[#allocation18 + $0x30] sm:$0xff] }
 0x486   :  { %2772 = vmatpush.bf16.msra.mxu2 %v5563_v42  ;;  %v4492_v42 = vld [vmem:[#allocation16 + $0x90] sm:$0xff] }
 0x487   :  { %3190 = vmatpush.bf16.msra.mxu3 %v4505_v6 }
 0x488   :  { %3209 = vmatpush.bf16.msrb.mxu0 %v4513_v57 }
 0x489   :  { %2382 = vmatmul.bf16.gmra.mxu3 %v2088_v22  ;;  %2730 = vmatpush.bf16.msra.mxu1 %v4494_v35 }
 0x48a   :  { %2773 = vmatpush.bf16.msra.mxu2 %v5574_v9  ;;  %v1995_v9 = vsel %vm1441_vm10, %v1989_v33, %v1990_v29 }
 0x48b   :  { %3191 = vmatpush.bf16.msra.mxu3 %v4504_v4  ;;  %v4498_v4 = vld [vmem:[#allocation18] sm:$0xff] }
 0x48c   :  { %4017 = vmatmul.msk.bf16.gmra.mxu1 %vm5567_vm9, %v4016_v14  ;;  %3210 = vmatpush.bf16.msrb.mxu0 %v4512_v2  ;;  %v5984_v2 = vld [vmem:[#allocation31_spill] sm:$0xff] }
 0x48d   :  { %4023 = vmatmul.msk.bf16.gmra.mxu2 %vm5396_vm15, %v4022_v43  ;;  %2731 = vmatpush.bf16.msra.mxu1 %v4493_v52  ;;  %v4519_v52 = vld [vmem:[#allocation18 + $0xa8] sm:$0xff] }
 0x48e   :  { %4029 = vmatmul.msk.bf16.gmra.mxu0 %vm5419_vm1, %v4028_v46  ;;  %2774 = vmatpush.bf16.msra.mxu2 %v5577_v63  ;;  %v4031_v63 = vpack.c.bf16 %v1994_v16, %v1995_v9 }
 0x48f   :  { %3192 = vmatpush.bf16.msra.mxu3 %v4503_v21 }
 0x490   :  { %3211 = vmatpush.bf16.msrb.mxu0 %v4511_v20 }
 0x491   :  { %2732 = vmatpush.bf16.msra.mxu1 %v4492_v42 }
 0x492   :  { %2775 = vmatpush.bf16.msra.mxu2 %v5591_v30  ;;  %v1992_v30 = vrot.slane %v5709_v0, 2 }
 0x493   :  { %3193 = vmatpush.bf16.msra.mxu3 %v4502_v61 }
 0x494   :  { %v1993_v47 = vsel %vm1441_vm10, %v1991_v48, %v1992_v30  ;;  %v1996_v59 = vsel %vm1441_vm10, %v1992_v30, %v1989_v33  ;;  %v4510_v48 = vld [vmem:[#allocation18 + $0x60] sm:$0xff] }
 0x495   :  { %2733 = vmatpush.bf16.msra.mxu1 %v4491_v55  ;;  %3212 = vmatpush.bf16.msrb.mxu0 %v4510_v48 }
 0x496   :  { %2776 = vmatpush.bf16.msra.mxu2 %v5607_v51  ;;  %v4034_v51 = vpack.c.bf16 %v1996_v59, %v1993_v47 }
 0x497   :  { %3194 = vmatpush.bf16.msra.mxu3 %v4501_v15 }
 0x499   :  { %4135 = vmatmul.msk.bf16.vlgmr.msrb.gmra.mxu3 %vm5536_vm7, %v5533_v37  ;;  %2734 = vmatpush.bf16.msra.mxu1 %v4490_v18  ;;  %v4518_v18 = vld [vmem:[#allocation18 + $0xa0] sm:$0xff] }
 0x49a   :  { %2777 = vmatpush.bf16.msra.mxu2 %v5627_v40 }
 0x49c   :  { %4032 = vmatmul.msk.bf16.vlgmr.msrb.gmra.mxu1 %vm5617_vm4, %v4031_v63  ;;  %v4500_v63 = vld [vmem:[#allocation18 + $0x10] sm:$0xff] }
 0x49d   :  { %3228 = vmatpush.bf16.msrb.mxu1 %v4521_v58  ;;  %3195 = vmatpush.bf16.msra.mxu3 %v4500_v63  ;;  %v4507_v58 = vld [vmem:[#allocation18 + $0x48] sm:$0xff] }
 0x49e   :  { %2716 = vmatmul.bf16.vlgmr.msra.gmra.mxu0 %v5433_v27 }
 0x4a1   :  { %3229 = vmatpush.bf16.msrb.mxu1 %v4520_v39 }
 0x4a5   :  { %3230 = vmatpush.bf16.msrb.mxu1 %v4519_v52 }
 0x4a9   :  { %4138 = vmatmul.msk.bf16.gmra.mxu3 %vm5567_vm9, %v5561_v28  ;;  %3231 = vmatpush.bf16.msrb.mxu1 %v4518_v18 }
 0x4ac   :  { %4035 = vmatmul.msk.bf16.gmra.mxu1 %vm5642_vm8, %v4034_v51  ;;  %v4509_v51 = vld [vmem:[#allocation18 + $0x58] sm:$0xff] }
 0x4ad   :  { %3213 = vmatpush.bf16.msrb.mxu0 %v4509_v51  ;;  %v4536_v51 = vld [vmem:[#allocation18 + $0x130] sm:$0xff] }
 0x4ae   :  { %2721 = vmatmul.bf16.gmra.mxu0 %v5442_v19 }
 0x4bc   :  { %4141 = vmatmul.msk.bf16.vlgmr.msra.gmra.mxu1 %vm5617_vm4, %v5605_v34 }
 0x4cc   :  { %4144 = vmatmul.msk.bf16.gmra.mxu1 %vm5642_vm8, %v5639_v56 }
 0x4f9   :  { %v2340_v40 = vpop.f32.mrf.mxu1 }
 0x4fb   :  { %v2397_v38 = vpop.f32.mrf.mxu0 }
 0x4fc   :  { %v2378_v49 = vpop.f32.mrf.mxu3 }
 0x500   :  { %v2359_v0 = vpop.f32.mrf.mxu2 }
 0x501   :  { %v2342_v62 = vpop.f32.mrf.mxu1  ;;  %v2360_v41 = vadd.f32 %v2359_v0, %v2340_v40 }
 0x503   :  { %v2399_v53 = vpop.f32.mrf.mxu0  ;;  %v2379_v26 = vadd.f32 %v2378_v49, %v2360_v41  ;;  %v4499_v49 = vld [vmem:[#allocation18 + $0x8] sm:$0xff]  ;;  %v2818_v41 = vrot.slane %v5984_v2, 4 }
 0x504   :  { %v2380_v31 = vpop.f32.mrf.mxu3  ;;  %3196 = vmatpush.bf16.msra.mxu3 %v4499_v49  ;;  %v4580_v49 = vld [vmem:[#allocation9 + $0x38] sm:$0xff] }
 0x505   :  { %v2398_v55 = vadd.f32 %v2397_v38, %v2379_v26  ;;  %v4517_v38 = vld [vmem:[#allocation18 + $0x98] sm:$0xff] }
 0x506   :  { %3232 = vmatpush.bf16.msrb.mxu1 %v4517_v38 }
 0x508   :  { %v2361_v8 = vpop.f32.mrf.mxu2  ;;  %3197 = vmatpush.bf16.msra.mxu3 %v4498_v4 }
 0x509   :  { %v2345_v11 = vpop.f32.mrf.mxu1  ;;  %v2362_v12 = vadd.f32 %v2361_v8, %v2342_v62 }
 0x50b   :  { %v2402_v23 = vpop.f32.mrf.mxu0  ;;  %v2381_v50 = vadd.f32 %v2380_v31, %v2362_v12 }
 0x50c   :  { %v2383_v45 = vpop.f32.mrf.mxu3 }
 0x50d   :  { %v2400_v33 = vadd.f32 %v2399_v53, %v2381_v50 }
 0x510   :  { %v2364_v25 = vpop.f32.mrf.mxu2 }
 0x511   :  { %v2347_v60 = vpop.f32.mrf.mxu1  ;;  %v2365_v35 = vadd.f32 %v2364_v25, %v2345_v11 }
 0x513   :  { %v2384_v14 = vadd.f32 %v2383_v45, %v2365_v35  ;;  %v2404_v43 = vpop.f32.mrf.mxu0  ;;  %v4516_v45 = vld [vmem:[#allocation18 + $0x90] sm:$0xff]  ;;  %v5985_v35 = vld [vmem:[#allocation32_spill] sm:$0xff] }
 0x514   :  { %v2385_v46 = vpop.f32.mrf.mxu3  ;;  %v2820_v39 = vrot.slane %v5985_v35, 4  ;;  %3233 = vmatpush.bf16.msrb.mxu1 %v4516_v45  ;;  %v4533_v35 = vld [vmem:[#allocation18 + $0x118] sm:$0xff] }
 0x515   :  { %v2403_v9 = vadd.f32 %v2402_v23, %v2384_v14 }
 0x518   :  { %v2366_v5 = vpop.f32.mrf.mxu2 }
 0x519   :  { %v2416_v36 = vpop.f32.mrf.mxu1  ;;  %v2367_v42 = vadd.f32 %v2366_v5, %v2347_v60  ;;  %v5986_v5 = vld [vmem:[#allocation27_spill] sm:$0xff] }
 0x51a   :  { %v5805_v47 = vadd.f32 %v2416_v36, %v2398_v55  ;;  %v4508_v36 = vld [vmem:[#allocation18 + $0x50] sm:$0xff]  ;;  %v2826_v20 = vadd.s32 4294967292, %v5986_v5 }
 0x51b   :  { %v2386_v30 = vadd.f32 %v2385_v46, %v2367_v42  ;;  %v5813_v0 = vpop.f32.mrf.mxu0  ;;  %3214 = vmatpush.bf16.msrb.mxu0 %v4508_v36 }
 0x51c   :  { %v5811_v62 = vpop.f32.mrf.mxu3  ;;  %v2435_v11 = vmul.f32 %v5805_v47, %v5805_v47  ;;  %vm2830_vm3 = vcmp.ge.s32.totalorder %v2826_v20, 0 }
 0x51d   :  { %v2405_v53 = vadd.f32 %v2404_v43, %v2386_v30  ;;  %vm4306_vm14 = vmpackc.low %vm5987_vm13, %vm2830_vm3  ;;  %v4514_v30 = vld [vmem:[#allocation18 + $0x80] sm:$0xff]  ;;  %v2718_v7 = vadd.f32 %v5813_v0, %v5811_v62  ;;  %v4527_v62 = vld [vmem:[#allocation18 + $0xe8] sm:$0xff] }
 0x51e   :  { %v4583_v0 = vld [vmem:[#allocation9 + $0x20] sm:$0xff] }
 0x51f   :  { %3215 = vmatpush.bf16.msrb.mxu0 %v4507_v58 }
 0x521   :  { %v2418_v22 = vpop.f32.mrf.mxu1 }
 0x522   :  { %v5803_v16 = vadd.f32 %v2418_v22, %v2400_v33  ;;  %v2817_v22 = vrot.slane %v5267_v24, 4  ;;  %v4515_v33 = vld [vmem:[#allocation18 + $0x88] sm:$0xff] }
 0x523   :  { %v2719_v52 = vpop.f32.mrf.mxu0  ;;  %3234 = vmatpush.bf16.msrb.mxu1 %v4515_v33 }
 0x524   :  { %v2436_v40 = vmul.f32 %v5803_v16, %v5803_v16  ;;  %v2426_v8 = vadd.f32 %v5803_v16, %v5805_v47  ;;  %v5834_v26 = vsel %vm2821_vm0, %v2817_v22, %v2818_v41  ;;  %v5838_v14 = vsel %vm2821_vm0, %v2820_v39, %v2817_v22  ;;  %v2700_v46 = vpop.f32.mrf.mxu3  ;;  %v4529_v22 = vld [vmem:[#allocation18 + $0xf8] sm:$0xff] }
 0x525   :  { %v4307_v15 = vpack.c.bf16 %v5834_v26, %v5838_v14 }
 0x526   :  { %v2439_v6 = vadd.f32 %v2436_v40, %v2435_v11 }
 0x527   :  { %4308 = vmatmul.msk.bf16.vlgmr.msra.gmra.mxu3 %vm4306_vm14, %v4307_v15  ;;  %3235 = vmatpush.bf16.msrb.mxu1 %v4514_v30 }
 0x529   :  { %v2421_v29 = vpop.f32.mrf.mxu1 }
 0x52a   :  { %v5807_v59 = vadd.f32 %v2421_v29, %v2403_v9  ;;  %v4537_v29 = vld [vmem:[#allocation18 + $0x138] sm:$0xff]  ;;  %v4506_v9 = vld [vmem:[#allocation18 + $0x40] sm:$0xff]  ;;  %3236 = vmatmul.bf16.vlgmr.msrb.gmra.mxu1 %v5433_v27 }
 0x52b   :  { %3266 = vmatpush.bf16.msrb.mxu3 %v4537_v29  ;;  %3216 = vmatpush.bf16.msrb.mxu0 %v4506_v9  ;;  %v2722_v4 = vpop.f32.mrf.mxu0 }
 0x52c   :  { %v2437_v60 = vmul.f32 %v5807_v59, %v5807_v59  ;;  %v2427_v25 = vadd.f32 %v2426_v8, %v5807_v59  ;;  %v4535_v8 = vld [vmem:[#allocation18 + $0x128] sm:$0xff]  ;;  %v2703_v45 = vpop.f32.mrf.mxu3 }
 0x52e   :  { %v2440_v57 = vadd.f32 %v2439_v6, %v2437_v60  ;;  %4314 = vmatmul.msk.bf16.vlgmr.msrb.gmra.mxu0 %vm5536_vm7, %v5533_v37  ;;  %v5988_v60 = vld [vmem:[#allocation33_spill] sm:$0xff] }
 0x52f   :  { %3309 = vmatpush.bf16.msra.mxu0 %v4580_v49  ;;  %3267 = vmatpush.bf16.msrb.mxu3 %v4536_v51 }
 0x531   :  { %v2423_v31 = vpop.f32.mrf.mxu1 }
 0x532   :  { %v5822_v23 = vadd.f32 %v2423_v31, %v2405_v53  ;;  %v2819_v53 = vrot.slane %v5988_v60, 4  ;;  %v5989_v31 = vld [vmem:[#allocation28_spill] sm:$0xff] }
 0x533   :  { %v2828_v36 = vadd.s32 4294967292, %v5989_v31  ;;  %3268 = vmatpush.bf16.msrb.mxu3 %v4535_v8  ;;  %3310 = vmatpush.bf16.msra.mxu0 %v4581_v44  ;;  %v2724_v33 = vpop.f32.mrf.mxu0  ;;  %v4530_v8 = vld [vmem:[#allocation18 + $0x100] sm:$0xff]  ;;  %v4585_v31 = vld [vmem:[#allocation9 + $0x10] sm:$0xff] }
 0x534   :  { %v2428_v12 = vadd.f32 %v2427_v25, %v5822_v23  ;;  %v2438_v21 = vmul.f32 %v5822_v23, %v5822_v23  ;;  %v5855_v37 = vsel %vm2821_vm0, %v2818_v41, %v2819_v53  ;;  %v2720_v41 = vadd.f32 %v2719_v52, %v2700_v46  ;;  %v2705_v15 = vpop.f32.mrf.mxu3 }
 0x535   :  { %vm2832_vm15 = vcmp.ge.s32.totalorder %v2828_v36, 0  ;;  %v2725_v52 = vadd.f32 %v2724_v33, %v2705_v15 }
 0x536   :  { %v2429_v61 = vrot.slane %v2428_v12, 4  ;;  %v2441_v50 = vadd.f32 %v2440_v57, %v2438_v21  ;;  %v5851_v21 = vsel %vm2821_vm0, %v2819_v53, %v2820_v39  ;;  %vm4309_vm1 = vmpackc.low %vm5987_vm13, %vm2832_vm15  ;;  %v2723_v39 = vadd.f32 %v2722_v4, %v2703_v45  ;;  %v4524_v4 = vld [vmem:[#allocation18 + $0xd0] sm:$0xff] }
 0x537   :  { %v4310_v27 = vpack.c.bf16 %v5851_v21, %v5855_v37  ;;  %v4328_v15 = vpack.c.bf16 %v5838_v14, %v5851_v21 }
 0x538   :  { %v2430_v24 = vadd.f32 %v2429_v61, %v2428_v12  ;;  %v2442_v43 = vrot.slane %v2441_v50, 4  ;;  %v4534_v12 = vld [vmem:[#allocation18 + $0x120] sm:$0xff]  ;;  %v4528_v61 = vld [vmem:[#allocation18 + $0xf0] sm:$0xff] }
 0x539   :  { %v2736_v42 = vpop.f32.mrf.mxu1  ;;  %3269 = vmatpush.bf16.msrb.mxu3 %v4534_v12 }
 0x53a   :  { %v2431_v48 = vrot.slane %v2430_v24, 2  ;;  %v2443_v55 = vadd.f32 %v2442_v43, %v2441_v50  ;;  %v4582_v50 = vld [vmem:[#allocation9 + $0x28] sm:$0xff]  ;;  %4311 = vmatmul.msk.bf16.gmra.mxu3 %vm4309_vm1, %v4310_v27  ;;  %v5865_v43 = vadd.f32 %v2736_v42, %v2718_v7  ;;  %3241 = vmatmul.bf16.gmra.mxu1 %v5442_v19  ;;  %v4587_v27 = vld [vmem:[#allocation9] sm:$0xff] }
 0x53b   :  { %3311 = vmatpush.bf16.msra.mxu0 %v4582_v50  ;;  %v4522_v7 = vld [vmem:[#allocation18 + $0xc0] sm:$0xff] }
 0x53c   :  { %v2432_v18 = vadd.f32 %v2431_v48, %v2430_v24  ;;  %v2444_v63 = vrot.slane %v2443_v55, 2  ;;  %v4532_v24 = vld [vmem:[#allocation18 + $0x110] sm:$0xff]  ;;  %v4531_v48 = vld [vmem:[#allocation18 + $0x108] sm:$0xff] }
 0x53d   :  { %3270 = vmatpush.bf16.msrb.mxu3 %v4533_v35 }
 0x53e   :  { %v2433_v40 = vrot.slane %v2432_v18, 1  ;;  %v2445_v38 = vadd.f32 %v2444_v63, %v2443_v55  ;;  %v2755_v55 = vmul.f32 %v5865_v43, %v5865_v43  ;;  %4317 = vmatmul.msk.bf16.gmra.mxu0 %vm5567_vm9, %v5561_v28  ;;  %v5990_v63 = vld [vmem:[#allocation29_spill] sm:$0xff] }
 0x53f   :  { %3312 = vmatpush.bf16.msra.mxu0 %v4583_v0  ;;  %v2847_v30 = vadd.s32 4, %v5990_v63 }
 0x540   :  { %v2446_v11 = vrot.slane %v2445_v38, 1  ;;  %v2434_v25 = vadd.f32 %v2433_v40, %v2432_v18  ;;  %v4526_v18 = vld [vmem:[#allocation18 + $0xe0] sm:$0xff]  ;;  %v4584_v40 = vld [vmem:[#allocation9 + $0x18] sm:$0xff] }
 0x541   :  { %v2738_v6 = vpop.f32.mrf.mxu1  ;;  %3271 = vmatpush.bf16.msrb.mxu3 %v4532_v24  ;;  %vm2855_vm5 = vcmp.lt.s32.totalorder %v2847_v30, 16  ;;  %v2485_v30 = vstv %s3667_s17 }
 0x542   :  { %v2447_v57 = vadd.f32 %v2446_v11, %v2445_v38  ;;  %v5863_v20 = vadd.f32 %v2738_v6, %v2720_v41  ;;  %vm4324_vm7 = vmpackc.low %vm2855_vm5, %vm5987_vm13  ;;  %v5991_v41 = vld [vmem:[#allocation30_spill] sm:$0xff] }
 0x543   :  { %3313 = vmatpush.bf16.msra.mxu0 %v4584_v40 }
 0x544   :  { %v2448_v58 = vsel %vm405_vm2, %v2434_v25, %v2447_v57  ;;  %v2756_v46 = vmul.f32 %v5863_v20, %v5863_v20  ;;  %v2746_v42 = vadd.f32 %v5863_v20, %v5865_v43  ;;  %v4325_v25 = vpack.c.bf16 %v5855_v37, %v5834_v26  ;;  %v4586_v57 = vld [vmem:[#allocation9 + $0x8] sm:$0xff] }
 0x545   :  { %v2449_v2 = vpack.c.bf16 %v2448_v58, %v2448_v58  ;;  %3272 = vmatpush.bf16.msrb.mxu3 %v4531_v48 }
 0x546   :  { %v2759_v38 = vadd.f32 %v2756_v46, %v2755_v55 }
 0x547   :  { %2458 = vmatmul.bf16.vlgmr.msrb.gmra.mxu2 %v2449_v2  ;;  %3314 = vmatpush.bf16.msra.mxu0 %v4585_v31  ;;  %v4523_v2 = vld [vmem:[#allocation18 + $0xc8] sm:$0xff] }
 0x548   :  { %3247 = vmatpush.bf16.msrb.mxu2 %v4529_v22 }
 0x549   :  { %v2741_v5 = vpop.f32.mrf.mxu1  ;;  %3273 = vmatpush.bf16.msrb.mxu3 %v4530_v8 }
 0x54a   :  { %v5867_v29 = vadd.f32 %v2741_v5, %v2723_v39  ;;  %v2849_v39 = vadd.s32 4, %v5991_v41 }
 0x54b   :  { %3315 = vmatpush.bf16.msra.mxu0 %v4586_v57 }
 0x54c   :  { %3248 = vmatpush.bf16.msrb.mxu2 %v4528_v61  ;;  %v2757_v9 = vmul.f32 %v5867_v29, %v5867_v29  ;;  %v2747_v49 = vadd.f32 %v2746_v42, %v5867_v29  ;;  %4326 = vmatmul.msk.bf16.vlgmr.msrb.gmra.mxu3 %vm4324_vm7, %v4325_v25  ;;  %vm2857_vm9 = vcmp.lt.s32.totalorder %v2849_v39, 16 }
 0x54d   :  { %vm4327_vm10 = vmpackc.low %vm2857_vm9, %vm5987_vm13 }
 0x54e   :  { %v2760_v60 = vadd.f32 %v2759_v38, %v2757_v9 }
 0x54f   :  { %3316 = vmatpush.bf16.msra.mxu0 %v4587_v27 }
 0x550   :  { %3249 = vmatpush.bf16.msrb.mxu2 %v4527_v62 }
 0x551   :  { %v2743_v51 = vpop.f32.mrf.mxu1 }
 0x552   :  { %v5882_v11 = vadd.f32 %v2743_v51, %v2725_v52 }
 0x554   :  { %v2748_v53 = vadd.f32 %v2747_v49, %v5882_v11  ;;  %v2758_v28 = vmul.f32 %v5882_v11, %v5882_v11  ;;  %3250 = vmatpush.bf16.msrb.mxu2 %v4526_v18 }
 0x556   :  { %v2749_v36 = vrot.slane %v2748_v53, 4  ;;  %v2761_v6 = vadd.f32 %v2760_v60, %v2758_v28 }
 0x558   :  { %v2750_v19 = vadd.f32 %v2749_v36, %v2748_v53  ;;  %v2762_v45 = vrot.slane %v2761_v6, 4  ;;  %3251 = vmatpush.bf16.msrb.mxu2 %v4525_v1 }
 0x55a   :  { %v2751_v12 = vrot.slane %v2750_v19, 2  ;;  %v2763_v44 = vadd.f32 %v2762_v45, %v2761_v6 }
 0x55c   :  { %v2752_v58 = vadd.f32 %v2751_v12, %v2750_v19  ;;  %v2764_v22 = vrot.slane %v2763_v44, 2  ;;  %3252 = vmatpush.bf16.msrb.mxu2 %v4524_v4  ;;  %4329 = vmatmul.msk.bf16.gmra.mxu3 %vm4327_vm10, %v4328_v15 }
 0x55e   :  { %v2753_v35 = vrot.slane %v2752_v58, 1  ;;  %v2765_v26 = vadd.f32 %v2764_v22, %v2763_v44 }
 0x560   :  { %v2766_v37 = vrot.slane %v2765_v26, 1  ;;  %3253 = vmatpush.bf16.msrb.mxu2 %v4523_v2  ;;  %v2754_v61 = vadd.f32 %v2753_v35, %v2752_v58 }
 0x562   :  { %v2767_v50 = vadd.f32 %v2766_v37, %v2765_v26 }
 0x564   :  { %v2768_v5 = vsel %vm405_vm2, %v2754_v61, %v2767_v50  ;;  %3254 = vmatpush.bf16.msrb.mxu2 %v4522_v7 }
 0x565   :  { %v2769_v24 = vpack.c.bf16 %v2768_v5, %v2768_v5 }
 0x567   :  { %2778 = vmatmul.bf16.vlgmr.msra.gmra.mxu2 %v2769_v24 }
 0x577   :  { %4320 = vmatmul.msk.bf16.vlgmr.msrb.gmra.mxu2 %vm5617_vm4, %v5605_v34 }
 0x587   :  { %4323 = vmatmul.msk.bf16.gmra.mxu2 %vm5642_vm8, %v5639_v56 }
 0x5a7   :  { %v3237_v12 = vpop.f32.mrf.mxu1 }
 0x5aa   :  { %v3199_v46 = vpop.f32.mrf.mxu3 }
 0x5ab   :  { %v3218_v25 = vpop.f32.mrf.mxu0 }
 0x5ac   :  { %v3219_v50 = vadd.f32 %v3218_v25, %v3199_v46 }
 0x5af   :  { %v3239_v35 = vpop.f32.mrf.mxu1 }
 0x5b2   :  { %v3201_v21 = vpop.f32.mrf.mxu3 }
 0x5b3   :  { %v3220_v2 = vpop.f32.mrf.mxu0 }
 0x5b7   :  { %v3242_v24 = vpop.f32.mrf.mxu1 }
 0x5bb   :  { %v3223_v7 = vpop.f32.mrf.mxu0 }
 0x5bd   :  { %v3204_v63 = vpop.f32.mrf.mxu3 }
 0x5be   :  { %v3224_v5 = vadd.f32 %v3223_v7, %v3204_v63 }
 0x5c5   :  { %v3206_v45 = vpop.f32.mrf.mxu3 }
 0x5ca   :  { %v2459_v33 = vpop.f32.mrf.mxu2 }
 0x5cb   :  { %v2463_v62 = vmul.f32 %v2459_v33, %v2459_v33  ;;  %v2469_v32 = vperm.slane %v2459_v33, 0 }
 0x5cd   :  { %v2465_v0 = vrot.slane %v2463_v62, 7  ;;  %v2470_v38 = vsub.f32 %v5805_v47, %v2469_v32  ;;  %v2471_v49 = vsub.f32 %v5803_v16, %v2469_v32  ;;  %v2472_v8 = vsub.f32 %v5807_v59, %v2469_v32 }
 0x5ce   :  { %v2473_v60 = vsub.f32 %v5822_v23, %v2469_v32  ;;  %v2805_v62 = vstv %s4036_s18 }
 0x5cf   :  { %v2467_v52 = vsub.f32 %v2459_v33, %v2465_v0  ;;  %v3275_v27 = vpop.f32.mrf.mxu3 }
 0x5d1   :  { %v2468_v48 = vmax.f32 %v2467_v52, 0.0 }
 0x5d2   :  { %v2461_v55 = vpop.f32.mrf.mxu2 }
 0x5d3   :  { %v2474_v14 = vadd.f32 1e-05, %v2468_v48  ;;  %v3238_v55 = vadd.f32 %v3237_v12, %v3219_v50 }
 0x5d5   :  { %4566 = vrsqrt.f32 %v2474_v14  ;;  %vm2481_vm8 = vweird.f32 %v2474_v14 }
 0x5d7   :  { %v3277_v41 = vpop.f32.mrf.mxu3 }
 0x5db   :  { %v4567_v42 = vpop.eup %4566 }
 0x5dc   :  { %v2476_v9 = vmul.f32 %v4567_v42, %v2474_v14  ;;  %vm2482_vm4 = vweird.f32 %v4567_v42  ;;  %v3243_v14 = vadd.f32 %v3242_v24, %v3224_v5 }
 0x5dd   :  { %vm2483_vm12 = vmor %vm2481_vm8, %vm2482_vm4 }
 0x5de   :  { %v2477_v18 = vmul.f32 %v4567_v42, %v2476_v9  ;;  %v3225_v9 = vpop.f32.mrf.mxu0 }
 0x5df   :  { %v3280_v63 = vpop.f32.mrf.mxu3 }
 0x5e0   :  { %v2478_v54 = vmul.f32 0.5, %v2477_v18 }
 0x5e2   :  { %v2479_v34 = vsub.f32 1.5, %v2478_v54 }
 0x5e4   :  { %v2480_v56 = vmul.f32 %v4567_v42, %v2479_v34 }
 0x5e6   :  { %v2484_v51 = vsel %vm2483_vm12, %v4567_v42, %v2480_v56 }
 0x5e7   :  { %v2486_v40 = vmul.f32 %v2485_v30, %v2484_v51 }
 0x5e9   :  { %v2487_v53 = vperm.slane %v2486_v40, 1 }
 0x5ea   :  { %v2779_v28 = vpop.f32.mrf.mxu2 }
 0x5eb   :  { %v2488_v1 = vmul.f32 %v2487_v53, %v2470_v38  ;;  %v2489_v31 = vmul.f32 %v2487_v53, %v2471_v49  ;;  %v2490_v36 = vmul.f32 %v2487_v53, %v2472_v8  ;;  %v2491_v6 = vmul.f32 %v2487_v53, %v2473_v60 }
 0x5ec   :  { %v2783_v19 = vmul.f32 %v2779_v28, %v2779_v28  ;;  %v2789_v15 = vperm.slane %v2779_v28, 0  ;;  %v3226_v8 = vadd.f32 %v3225_v9, %v3206_v45 }
 0x5ed   :  { %v2492_v4 = vadd.f32 %v2488_v1, %v5663_v3  ;;  %v2493_v57 = vadd.f32 %v2489_v31, %v5666_v13  ;;  %v2494_v47 = vadd.f32 %v2490_v36, %v5669_v10  ;;  %v2495_v16 = vadd.f32 %v2491_v6, %v5672_v17 }
 0x5ee   :  { %v2785_v59 = vrot.slane %v2783_v19, 7  ;;  %v3221_v17 = vadd.f32 %v3220_v2, %v3201_v21  ;;  %v2790_v42 = vsub.f32 %v5865_v43, %v2789_v15  ;;  %v2791_v21 = vsub.f32 %v5863_v20, %v2789_v15  ;;  %v3244_v43 = vpop.f32.mrf.mxu1 }
 0x5ef   :  { %v2792_v46 = vsub.f32 %v5867_v29, %v2789_v15  ;;  %v2793_v54 = vsub.f32 %v5882_v11, %v2789_v15  ;;  %v3245_v31 = vadd.f32 %v3244_v43, %v3226_v8 }
 0x5f0   :  { %v2787_v23 = vsub.f32 %v2779_v28, %v2785_v59  ;;  %v3240_v0 = vadd.f32 %v3239_v35, %v3221_v17 }
 0x5f2   :  { %v2788_v44 = vmax.f32 %v2787_v23, 0.0  ;;  %v2781_v58 = vpop.f32.mrf.mxu2 }
 0x5f4   :  { %v2794_v22 = vadd.f32 1e-05, %v2788_v44 }
 0x5f6   :  { %4568 = vrsqrt.f32 %v2794_v22  ;;  %vm2801_vm6 = vweird.f32 %v2794_v22 }
 0x5fa   :  { %v3256_v26 = vpop.f32.mrf.mxu2 }
 0x5fb   :  { %v3257_v56 = vadd.f32 %v3256_v26, %v3238_v55 }
 0x5fc   :  { %v4569_v37 = vpop.eup %4568 }
 0x5fd   :  { %v2796_v3 = vmul.f32 %v4569_v37, %v2794_v22  ;;  %vm2802_vm11 = vweird.f32 %v4569_v37  ;;  %v3276_v28 = vadd.f32 %v3275_v27, %v3257_v56 }
 0x5fe   :  { %vm2803_vm0 = vmor %vm2801_vm6, %vm2802_vm11 }
 0x5ff   :  { %v2797_v13 = vmul.f32 %v4569_v37, %v2796_v3  ;;  %v3294_v25 = vmul.f32 %v3276_v28, %v3276_v28 }
 0x601   :  { %v2798_v10 = vmul.f32 0.5, %v2797_v13 }
 0x602   :  { %v3258_v39 = vpop.f32.mrf.mxu2 }
 0x603   :  { %v2799_v61 = vsub.f32 1.5, %v2798_v10  ;;  %v3259_v18 = vadd.f32 %v3258_v39, %v3240_v0 }
 0x605   :  { %v2800_v33 = vmul.f32 %v4569_v37, %v2799_v61  ;;  %v5914_v60 = vadd.f32 %v3277_v41, %v3259_v18 }
 0x607   :  { %v2804_v52 = vsel %vm2803_vm0, %v4569_v37, %v2800_v33  ;;  %v3295_v36 = vmul.f32 %v5914_v60, %v5914_v60  ;;  %v3285_v19 = vadd.f32 %v5914_v60, %v3276_v28 }
 0x608   :  { %v2806_v48 = vmul.f32 %v2805_v62, %v2804_v52 }
 0x609   :  { %v3298_v12 = vadd.f32 %v3295_v36, %v3294_v25 }
 0x60a   :  { %v2807_v34 = vperm.slane %v2806_v48, 1  ;;  %v3261_v32 = vpop.f32.mrf.mxu2 }
 0x60b   :  { %v3262_v30 = vadd.f32 %v3261_v32, %v3243_v14 }
 0x60c   :  { %v2808_v51 = vmul.f32 %v2807_v34, %v2790_v42  ;;  %v2809_v40 = vmul.f32 %v2807_v34, %v2791_v21  ;;  %v2810_v38 = vmul.f32 %v2807_v34, %v2792_v46  ;;  %v2811_v49 = vmul.f32 %v2807_v34, %v2793_v54 }
 0x60d   :  { %v3281_v1 = vadd.f32 %v3280_v63, %v3262_v30  ;;  %v3344_v21 = vstv %s4145_s19 }
 0x60e   :  { %v5916_v53 = vadd.f32 %v2808_v51, %v2492_v4  ;;  %v5918_v20 = vadd.f32 %v2809_v40, %v2493_v57  ;;  %v5920_v29 = vadd.f32 %v2810_v38, %v2494_v47  ;;  %v5922_v11 = vadd.f32 %v2811_v49, %v2495_v16  ;;  %v3282_v4 = vpop.f32.mrf.mxu3 }
 0x60f   :  { %v3296_v45 = vmul.f32 %v3281_v1, %v3281_v1  ;;  %v3286_v57 = vadd.f32 %v3285_v19, %v3281_v1 }
 0x611   :  { %v3299_v47 = vadd.f32 %v3298_v12, %v3296_v45 }
 0x612   :  { %v3263_v6 = vpop.f32.mrf.mxu2 }
 0x613   :  { %v3264_v59 = vadd.f32 %v3263_v6, %v3245_v31 }
 0x615   :  { %v3283_v23 = vadd.f32 %v3282_v4, %v3264_v59 }
 0x617   :  { %v3287_v44 = vadd.f32 %v3286_v57, %v3283_v23  ;;  %v3297_v16 = vmul.f32 %v3283_v23, %v3283_v23 }
 0x619   :  { %v3288_v58 = vrot.slane %v3287_v44, 4  ;;  %v3300_v22 = vadd.f32 %v3299_v47, %v3297_v16 }
 0x61b   :  { %v3289_v2 = vadd.f32 %v3288_v58, %v3287_v44  ;;  %v3301_v27 = vrot.slane %v3300_v22, 4 }
 0x61d   :  { %v3290_v35 = vrot.slane %v3289_v2, 2  ;;  %v3302_v26 = vadd.f32 %v3301_v27, %v3300_v22 }
 0x61f   :  { %v3291_v37 = vadd.f32 %v3290_v35, %v3289_v2  ;;  %v3303_v3 = vrot.slane %v3302_v26, 2 }
 0x621   :  { %v3292_v7 = vrot.slane %v3291_v37, 1  ;;  %v3304_v13 = vadd.f32 %v3303_v3, %v3302_v26 }
 0x623   :  { %v3305_v41 = vrot.slane %v3304_v13, 1  ;;  %v3293_v10 = vadd.f32 %v3292_v7, %v3291_v37 }
 0x625   :  { %v3306_v39 = vadd.f32 %v3305_v41, %v3304_v13 }
 0x627   :  { %v3307_v17 = vsel %vm405_vm2, %v3293_v10, %v3306_v39 }
 0x628   :  { %v3308_v61 = vpack.c.bf16 %v3307_v17, %v3307_v17 }
 0x62a   :  { %3317 = vmatmul.bf16.vlgmr.msra.gmra.mxu0 %v3308_v61 }
 0x6a7   :  { %v3318_v50 = vpop.f32.mrf.mxu0 }
 0x6a8   :  { %v3322_v5 = vmul.f32 %v3318_v50, %v3318_v50  ;;  %v3328_v9 = vperm.slane %v3318_v50, 0 }
 0x6aa   :  { %v3324_v24 = vrot.slane %v3322_v5, 7  ;;  %v3329_v34 = vsub.f32 %v3276_v28, %v3328_v9  ;;  %v3330_v63 = vsub.f32 %v5914_v60, %v3328_v9  ;;  %v3331_v32 = vsub.f32 %v3281_v1, %v3328_v9 }
 0x6ab   :  { %v3332_v56 = vsub.f32 %v3283_v23, %v3328_v9 }
 0x6ac   :  { %v3326_v15 = vsub.f32 %v3318_v50, %v3324_v24 }
 0x6ae   :  { %v3327_v33 = vmax.f32 %v3326_v15, 0.0 }
 0x6af   :  { %v3320_v62 = vpop.f32.mrf.mxu0 }
 0x6b0   :  { %v3333_v0 = vadd.f32 1e-05, %v3327_v33 }
 0x6b2   :  { %4570 = vrsqrt.f32 %v3333_v0  ;;  %vm3340_vm2 = vweird.f32 %v3333_v0 }
 0x6b8   :  { %v4571_v52 = vpop.eup %4570 }
 0x6b9   :  { %v3335_v48 = vmul.f32 %v4571_v52, %v3333_v0  ;;  %vm3341_vm3 = vweird.f32 %v4571_v52 }
 0x6ba   :  { %vm3342_vm13 = vmor %vm3340_vm2, %vm3341_vm3 }
 0x6bb   :  { %v3336_v55 = vmul.f32 %v4571_v52, %v3335_v48 }
 0x6bd   :  { %v3337_v14 = vmul.f32 0.5, %v3336_v55 }
 0x6bf   :  { %v3338_v42 = vsub.f32 1.5, %v3337_v14 }
 0x6c1   :  { %v3339_v18 = vmul.f32 %v4571_v52, %v3338_v42 }
 0x6c3   :  { %v3343_v46 = vsel %vm3342_vm13, %v4571_v52, %v3339_v18 }
 0x6c4   :  { %v3345_v54 = vmul.f32 %v3344_v21, %v3343_v46 }
 0x6c6   :  { %v3346_v30 = vperm.slane %v3345_v54, 1 }
 0x6c8   :  { %v3347_v51 = vmul.f32 %v3346_v30, %v3329_v34  ;;  %v3348_v40 = vmul.f32 %v3346_v30, %v3330_v63  ;;  %v3349_v38 = vmul.f32 %v3346_v30, %v3331_v32  ;;  %v3350_v49 = vmul.f32 %v3346_v30, %v3332_v56 }
 0x6ca   :  { %v3351_v8 = vadd.f32 %v3347_v51, %v5916_v53  ;;  %v3352_v43 = vadd.f32 %v3348_v40, %v5918_v20  ;;  %v3353_v31 = vadd.f32 %v3349_v38, %v5920_v29  ;;  %v3354_v60 = vadd.f32 %v3350_v49, %v5922_v11 }
 0x6cc   :  { %3355 = vst [vmem:[#allocation19] sm:$0xff] %v3351_v8 }
 0x6cd   :  { %3356 = vst [vmem:[#allocation19 + $0x8] sm:$0xff] %v3352_v43 }
 0x6ce   :  { %3357 = vst [vmem:[#allocation19 + $0x10] sm:$0xff] %v3353_v31 }
 0x6cf   :  { %3358 = vst [vmem:[#allocation19 + $0x18] sm:$0xff] %v3354_v60 }
 0x6d0   :  { %3371 = dma.vmem_to_hbm [thread:$0]  %s3364_s24, 512, %s3366_s26, [#allocation4], %s4862_s20, %s4862_s20, %s4863_s23  }
 0x6d1   :  { %4852 = dma.done.wait [#allocation4], 512  }
 0x6d2   :  { %4853 = vsyncadd [#allocation4], 4294966784 }
 0x6d3   :  { %3376 = vsyncpa [#allocation3], 1 }
 0x6d4   :  { %3377 = vsyncpa [#allocation8], 1 }
 0x6d5   :  { %3378 = vsyncpa [#allocation11], 1 }
 0x6d6   :  { %3379 = vsyncpa [#allocation14], 1 }
 0x6d7   :  { %3380 = vsyncpa [#allocation17], 1 }
 0x6d8   :  { %3381 = vsyncpa [#allocation4], 1 }
 0x6d9   :  { %3382 = vsyncpa [#allocation5], 1 }

</bundles_post_ra>
